<compile_context>
chip_gen: v6e
topology: v6e:2x2x1
jax: 0.10.0
libtpu: 0.0.40
codegen_flags: <defaults>
</compile_context>

<pallas_src>
import functools

import jax
import jax.numpy as jnp
from jax import lax
from jax.experimental import pallas as pl
from jax.experimental.pallas import tpu as pltpu


# ----------------------------------------------------------------------------
# Static (Python-level) structure of the upsample+conv fusion.
# ----------------------------------------------------------------------------

def _row_groups(s, kh=3):
    """Group row phases p by their set of row offsets dr = (p-1+ky)//s."""
    groups = []
    for p in range(s):
        drs = tuple(sorted({(p - 1 + ky) // s for ky in range(kh)}))
        if groups and groups[-1][0] == drs:
            groups[-1] = (drs, groups[-1][1] + (p,))
        else:
            groups.append((drs, (p,)))
    return tuple(groups)


def _pack_weights(weight, s, groups):
    """Per-row-group packed weights: (|drs|*Cin, n_phases*(s+2)*Cout) bf16.

    For the conv on the nearest-upsampled image (kernel 3, padding 1), output
    pixel (s*o+p, s*c+q) only reads original pixels (o+dr, c+dc),
    dr,dc in {-1,0,1}; taps sharing the same (dr, dc) are pre-summed.  Columns
    per phase are ordered [dc=0 for q=0..s-1] + [(q=0, dc=-1), (q=s-1, dc=+1)]
    so the dc=0 block is contiguous and already in output lane order; dr blocks
    are stacked along K in the same order as the kernel's K-stacked LHS.
    """
    Cout, Cin, KH, KW = weight.shape
    w_taps = jnp.transpose(weight, (2, 3, 1, 0))          # (KH, KW, Cin, Cout)

    def eff(p, q, dr, dc):
        m = None
        for ky in range(KH):
            if (p - 1 + ky) // s != dr:
                continue
            for kx in range(KW):
                if (q - 1 + kx) // s != dc:
                    continue
                m = w_taps[ky, kx] if m is None else m + w_taps[ky, kx]
        assert m is not None, (p, q, dr, dc)
        return m

    col_list = [(q, 0) for q in range(s)] + [(0, -1), (s - 1, +1)]
    packed = []
    for drs, phases in groups:
        blocks = []
        for p in phases:
            for (q, dc) in col_list:
                blocks.append(
                    jnp.concatenate([eff(p, q, dr, dc) for dr in drs], axis=0))
        packed.append(jnp.concatenate(blocks, axis=1).astype(jnp.bfloat16))
    return packed


# ----------------------------------------------------------------------------
# Kernel
# ----------------------------------------------------------------------------

def _fb_connection_kernel(*refs, groups, s, Wi, Cout, lrn_offsets, lrn_scale,
                          lrn_k):
    # refs = (top, body, bot, w_group_0..n-1, bias, out)
    n_groups = len(groups)
    top_ref, body_ref, bot_ref = refs[0], refs[1], refs[2]
    w_refs = refs[3:3 + n_groups]
    b_ref = refs[3 + n_groups]
    o_ref = refs[4 + n_groups]

    r = pl.program_id(1)
    last = pl.num_programs(1) - 1
    T, _, Cin = body_ref.shape
    M = T * Wi                       # flat (row, col) positions in this tile
    C = s * Cout                     # lanes of one row-phase output slab

    # ---- stage inputs in flat 2-D (rows, lanes) form -------------------------
    body = body_ref[...].reshape(M, Cin)
    top_raw = top_ref[...]
    bot_raw = bot_ref[...]
    top = (top_raw * (r > 0).astype(top_raw.dtype)).reshape(Wi, Cin)     # h=-1 pad
    bot = (bot_raw * (r < last).astype(bot_raw.dtype)).reshape(Wi, Cin)  # h=Hi pad

    slabs = {0: body}

    def slab(dr):
        # Original-resolution rows (o + dr) for o in [0, T).
        if dr not in slabs:
            if dr == -1:
                slabs[dr] = top if T == 1 else jnp.concatenate(
                    [top, body[:M - Wi]], axis=0)
            else:  # dr == +1
                slabs[dr] = bot if T == 1 else jnp.concatenate(
                    [body[Wi:], bot], axis=0)
        return slabs[dr]

    bias = b_ref[...].astype(jnp.float32)                 # (1, s*Cout), q-tiled

    # ---- masks, hoisted out of all loops -------------------------------------
    col = lax.broadcasted_iota(jnp.int32, (M, 1), 0) % Wi
    ok_from_left = col >= 1                 # dest col c may read col c-1
    ok_from_right = col < (Wi - 1)          # dest col c may read col c+1
    lane = lax.broadcasted_iota(jnp.int32, (1, C), 1) % Cout
    lrn_ok = {d: (lane + d >= 0) & (lane + d < Cout) for d in lrn_offsets}

    def shift_cols(blk, dc, ok):
        # out[i, :] = blk[i + dc, :] when column (i % Wi) + dc stays inside the
        # image row, else 0.  dc in {-1, +1} (kernel=3), flat row shift + mask.
        # TODO(synk): could be a sublane pltpu.roll; kept as a 1-row
        # slice+concat (only 2 x 64-lane blocks per phase now) for robustness.
        zero = jnp.zeros((1, blk.shape[1]), blk.dtype)
        if dc > 0:
            moved = jnp.concatenate([blk[1:], zero], axis=0)
        else:
            moved = jnp.concatenate([zero, blk[:-1]], axis=0)
        return jnp.where(ok, moved, 0.0)

    ncols_pp = s + 2           # per-phase columns: s x (dc=0) + left + right

    for g, (drs, phases) in enumerate(groups):
        # K-stacked LHS [slab(dr0)|slab(dr1)|...] -> (M, |drs|*Cin) bf16.
        if len(drs) == 1:
            lhs = slab(drs[0])
        else:
            lhs = jnp.concatenate([slab(dr) for dr in drs], axis=-1)
        # One wide MXU matmul per row group (K = |drs|*Cin, N = ncols*Cout),
        # f32 accumulation; dr accumulation happens inside the MXU.
        res = jnp.dot(lhs, w_refs[g][...], preferred_element_type=jnp.float32)

        for j, p in enumerate(phases):
            base = j * ncols_pp * Cout
            # dc = 0 contributions, q-major == output lane order: one
            # contiguous lane slice, no shift needed.
            y = res[:, base:base + s * Cout]
            left = shift_cols(res[:, base + s * Cout:base + (s + 1) * Cout],
                              -1, ok_from_left)
            right = shift_cols(res[:, base + (s + 1) * Cout:base + (s + 2) * Cout],
                               +1, ok_from_right)
            if s == 1:
                y = y + left + right
            elif s == 2:
                y = y + jnp.concatenate([left, right], axis=-1)
            else:
                mid = jnp.zeros((M, (s - 2) * Cout), jnp.float32)
                y = y + jnp.concatenate([left, mid, right], axis=-1)

            y = jnp.maximum(y + bias, 0.0)                 # conv bias + ReLU

            # LocalResponseNorm(size, alpha, beta=0.5, k=1): channel-window sum
            # via XLU lane rolls + masked VPU adds (all f32, no MXU).  The mask
            # keeps each q's 64-channel block independent.
            sq = y * y
            win = sq
            for d in lrn_offsets:
                rolled = pltpu.roll(sq, (-d) % C, axis=1)
                win = win + jnp.where(lrn_ok[d], rolled, 0.0)
            den = lrn_k + lrn_scale * win
            out = (y * lax.rsqrt(den)).astype(o_ref.dtype)
            o_ref[p] = out.reshape(T, Wi, C)               # lane-dense store


# ----------------------------------------------------------------------------
# VMEM budgeting / tiling (generation-aware)
# ----------------------------------------------------------------------------

def _vmem_limit_bytes():
    cap = 128 * 2**20                       # v5e / v6e per-core VMEM
    try:
        cap = int(pltpu.get_tpu_info().vmem_capacity_bytes)
    except Exception:
        pass                                # no TPU info available -> fallback
    # 32 MiB on v7x (64 MiB total), 64 MiB on 128 MiB parts.
    return min(cap // 2, 64 * 2**20), cap


def _pick_row_tile(N, Hi, Wi, Cin, Cout, s, groups, budget, target_m,
                   out_bytes):
    """Largest divisor of Hi whose per-grid-step VMEM estimate fits `budget`."""
    ncols_pp = s + 2
    # grid-resident packed weights (conservatively x2 buffers)
    w_bytes = 2 * sum(len(drs) * Cin * len(ph) * ncols_pp * Cout * 2
                      for drs, ph in groups)

    def step_bytes(t):
        m = t * Wi
        in_blk = 2 * (t + 2) * Wi * Cin * 2                 # body + halos, x2 buf
        out_blk = 2 * s * s * m * Cout * out_bytes          # output block, x2 buf
        slab_b = 2 * m * Cin * 2                            # +/-1 halo slabs
        lhs_b = sum(len(drs) * m * Cin * 2
                    for drs, _ in groups if len(drs) > 1)   # K-stacked LHS
        res_b = sum(len(ph) * ncols_pp * Cout * m * 4
                    for _, ph in groups)                    # f32 group results
        tmp_b = 5 * m * s * Cout * 4                        # y/sq/win/rolled/den
        return w_bytes + in_blk + out_blk + slab_b + lhs_b + res_b + tmp_b

    # Keep >= 2 grid steps when N == 1 so both v7x TensorCores get work.
    max_t = Hi if N > 1 else max(1, Hi // 2)
    best, best_aligned = 1, None
    for t in range(1, max_t + 1):
        if Hi % t:
            continue
        if step_bytes(t) > budget:
            break
        best = t
        if (t * Wi) % 8 == 0:               # prefer sublane-aligned tiles (v5e)
            best_aligned = t
        if t * Wi >= target_m:
            break
    return best_aligned if best_aligned is not None else best


# ----------------------------------------------------------------------------
# Wrapper
# ----------------------------------------------------------------------------

def fb_connection_forward(x_nchw, weight, bias, *, scale_factor,
                          neighborhood=5, alpha=1e-4, row_tile=None,
                          out_dtype=jnp.float32):
    """Pallas implementation of FBConnection.forward.

    x_nchw : (N, 256*scale_factor, Hi, Wi) float32, NCHW
    weight : (64, 256*scale_factor, 3, 3)  float32, OIHW
    bias   : (64,)                         float32
    returns: (N, 64, Hi*scale_factor, Wi*scale_factor) float32, NCHW
    """
    N, Cin, Hi, Wi = x_nchw.shape
    Cout, Cin_w, KH, KW = weight.shape
    assert Cin == Cin_w and (KH, KW) == (3, 3)
    s = int(scale_factor)
    H, W = Hi * s, Wi * s

    groups = _row_groups(s, KH)
    vmem_limit, vmem_cap = _vmem_limit_bytes()
    out_bytes = jnp.dtype(out_dtype).itemsize
    if row_tile is None:
        target_m = 2048 if vmem_cap >= 96 * 2**20 else 1024
        row_tile = _pick_row_tile(N, Hi, Wi, Cin, Cout, s, groups,
                                  int(vmem_limit * 0.9), target_m, out_bytes)
    assert Hi % row_tile == 0, "row_tile must divide the input height"
    T = row_tile
    n_row_tiles = Hi // T

    # Glue: NCHW -> NHWC (channels on the 128-lane axis), bf16 for the MXU.
    x_nhwc = jnp.transpose(x_nchw, (0, 2, 3, 1)).astype(jnp.bfloat16)

    w_packed = _pack_weights(weight, s, groups)
    b_tiled = jnp.tile(bias, (s,)).reshape(1, s * Cout).astype(jnp.float32)

    lo = neighborhood // 2
    hi = neighborhood - 1 - lo
    lrn_offsets = tuple(d for d in range(-lo, hi + 1) if d != 0)

    kernel = functools.partial(
        _fb_connection_kernel,
        groups=groups, s=s, Wi=Wi, Cout=Cout, lrn_offsets=lrn_offsets,
        lrn_scale=float(alpha) / float(neighborhood), lrn_k=1.0)

    in_specs = [
        # top halo: original row r*T - 1 (clamped; zeroed in-kernel at r==0)
        pl.BlockSpec((None, 1, Wi, Cin),
                     lambda n, r: (n, jnp.maximum(r * T - 1, 0), 0, 0)),
        # body: original rows [r*T, r*T + T)
        pl.BlockSpec((None, T, Wi, Cin), lambda n, r: (n, r, 0, 0)),
        # bottom halo: original row r*T + T (clamped; zeroed on last tile)
        pl.BlockSpec((None, 1, Wi, Cin),
                     lambda n, r: (n, jnp.minimum(r * T + T, Hi - 1), 0, 0)),
    ]
    for wg in w_packed:                       # grid-resident packed weights
        in_specs.append(pl.BlockSpec(wg.shape, lambda n, r: (0, 0)))
    in_specs.append(pl.BlockSpec((1, s * Cout), lambda n, r: (0, 0)))  # bias

    out_k = pl.pallas_call(
        kernel,
        out_shape=jax.ShapeDtypeStruct((N, s, Hi, Wi, s * Cout), out_dtype),
        grid=(N, n_row_tiles),
        in_specs=in_specs,
        out_specs=pl.BlockSpec((None, s, T, Wi, s * Cout),
                               lambda n, r: (n, 0, r, 0, 0)),
        compiler_params=pltpu.CompilerParams(
            dimension_semantics=("parallel", "parallel"),
            vmem_limit_bytes=vmem_limit),
    )(x_nhwc, x_nhwc, x_nhwc, *w_packed, b_tiled)

    # Un-interleave phases and return NCHW:
    # out_k[n, p, o, c, q*Cout + ch] == out[n, ch, s*o + p, s*c + q]
    out6 = out_k.reshape(N, s, Hi, Wi, s, Cout)
    out = jnp.transpose(out6, (0, 5, 2, 1, 3, 4)).reshape(N, Cout, H, W)
    return out.astype(jnp.float32)


# ----------------------------------------------------------------------------
# Pure-JAX f32 reference (mirrors the PyTorch module) + self-test
# ----------------------------------------------------------------------------

def _reference_forward(x_nchw, weight, bias, *, scale_factor,
                       neighborhood=5, alpha=1e-4):
    x = jnp.repeat(jnp.repeat(x_nchw, scale_factor, axis=2), scale_factor, axis=3)
    y = lax.conv_general_dilated(
        x, weight, window_strides=(1, 1), padding=[(1, 1), (1, 1)],
        dimension_numbers=("NCHW", "OIHW", "NCHW"))
    y = y + bias[None, :, None, None]
    y = jnp.maximum(y, 0.0)
    sq = y * y
    pad = neighborhood // 2
    sq_p = jnp.pad(sq, ((0, 0), (pad, pad), (0, 0), (0, 0)))
    C = y.shape[1]
    win_sum = sum(sq_p[:, i:i + C] for i in range(neighborhood))
    den = jnp.sqrt(1.0 + (alpha / neighborhood) * win_sum)   # k=1, beta=0.5
    return y / den


if __name__ == "__main__":
    scale_factor = 2
    neighborhood = 5
    alpha = 1e-4
    N, Hi, Wi = 2, 16, 16
    Cin = 256 * scale_factor      # module hard-codes in_channels = 256*scale
    Cout = 64

    key = jax.random.PRNGKey(0)
    k_x, k_w, k_b = jax.random.split(key, 3)
    x = jax.random.normal(k_x, (N, Cin, Hi, Wi), dtype=jnp.float32)
    weight = 0.05 * jax.random.normal(k_w, (Cout, Cin, 3, 3), dtype=jnp.float32)
    bias = 0.1 * jax.random.normal(k_b, (Cout,), dtype=jnp.float32)

    # row_tile=8 -> two row tiles per image: exercises both the interior halo
    # fetch and the zero-padded image-border paths.
    out = fb_connection_forward(
        x, weight, bias, scale_factor=scale_factor,
        neighborhood=neighborhood, alpha=alpha, row_tile=8)
    out = jax.block_until_ready(out)

    ref = _reference_forward(
        x, weight, bias, scale_factor=scale_factor,
        neighborhood=neighborhood, alpha=alpha)
    ref = jax.block_until_ready(ref)

    assert out.shape == (N, Cout, Hi * scale_factor, Wi * scale_factor), out.shape
    max_err = float(jnp.max(jnp.abs(out - ref)))
    # atol allows for bf16 MXU inputs (K up to 1024 bf16 terms, f32 accumulate).
    assert jnp.allclose(out, ref, rtol=2e-2, atol=5e-2), (
        "mismatch vs reference, max abs err = %g" % max_err)

    print("KERNEL_OK")
</pallas_src>

<mosaic_0001>
module attributes {stable_mosaic.version = 11 : i64} {
  func.func @_fb_connection_kernel(%arg0: i32, %arg1: i32, %arg2: memref<1x1x16x512xbf16, #tpu.memory_space<vmem>>, %arg3: memref<1x8x16x512xbf16, #tpu.memory_space<vmem>>, %arg4: memref<1x1x16x512xbf16, #tpu.memory_space<vmem>>, %arg5: memref<1024x256xbf16, #tpu.memory_space<vmem>>, %arg6: memref<1024x256xbf16, #tpu.memory_space<vmem>>, %arg7: memref<1x128xf32, #tpu.memory_space<vmem>>, %arg8: memref<1x2x8x16x128xf32, #tpu.memory_space<vmem>>) attributes {dimension_semantics = [#tpu.dimension_semantics<parallel>, #tpu.dimension_semantics<parallel>], iteration_bounds = array<i64: 2, 2>, scalar_prefetch = 0 : i64, scratch_operands = 0 : i64, tpu.core_type = #tpu.core_type<tc>, window_params = [{transform_indices = @transform_0, window_bounds = array<i64: 1, 1, 16, 512>}, {transform_indices = @transform_1, window_bounds = array<i64: 1, 8, 16, 512>}, {transform_indices = @transform_2, window_bounds = array<i64: 1, 1, 16, 512>}, {pipeline_mode = #tpu.pipeline_mode<synchronous>, transform_indices = @transform_3, window_bounds = array<i64: 1024, 256>}, {pipeline_mode = #tpu.pipeline_mode<synchronous>, transform_indices = @transform_4, window_bounds = array<i64: 1024, 256>}, {pipeline_mode = #tpu.pipeline_mode<synchronous>, transform_indices = @transform_5, window_bounds = array<i64: 1, 128>}, {transform_indices = @transform_6, window_bounds = array<i64: 1, 2, 8, 16, 128>}]} {
    %c0 = arith.constant 0 : index
    %c0_0 = arith.constant 0 : index
    %c0_1 = arith.constant 0 : index
    %c0_2 = arith.constant 0 : index
    %0 = vector.load %arg3[%c0, %c0_0, %c0_1, %c0_2] : memref<1x8x16x512xbf16, #tpu.memory_space<vmem>>, vector<1x8x16x512xbf16>
    %1 = vector.shape_cast %0 : vector<1x8x16x512xbf16> to vector<8x16x512xbf16>
    %2 = vector.shape_cast %1 : vector<8x16x512xbf16> to vector<128x512xbf16>
    %c0_3 = arith.constant 0 : index
    %c0_4 = arith.constant 0 : index
    %c0_5 = arith.constant 0 : index
    %c0_6 = arith.constant 0 : index
    %3 = vector.load %arg2[%c0_3, %c0_4, %c0_5, %c0_6] : memref<1x1x16x512xbf16, #tpu.memory_space<vmem>>, vector<1x1x16x512xbf16>
    %4 = vector.shape_cast %3 : vector<1x1x16x512xbf16> to vector<1x16x512xbf16>
    %c0_7 = arith.constant 0 : index
    %c0_8 = arith.constant 0 : index
    %c0_9 = arith.constant 0 : index
    %c0_10 = arith.constant 0 : index
    %5 = vector.load %arg4[%c0_7, %c0_8, %c0_9, %c0_10] : memref<1x1x16x512xbf16, #tpu.memory_space<vmem>>, vector<1x1x16x512xbf16>
    %6 = vector.shape_cast %5 : vector<1x1x16x512xbf16> to vector<1x16x512xbf16>
    %c0_i32 = arith.constant 0 : i32
    %7 = arith.cmpi sgt, %arg1, %c0_i32 : i32
    %8 = arith.extui %7 : i1 to i32
    %9 = arith.sitofp %8 : i32 to f32
    %10 = arith.truncf %9 : f32 to bf16
    %11 = vector.broadcast %10 : bf16 to vector<1x16x512xbf16>
    %12 = arith.mulf %4, %11 : vector<1x16x512xbf16>
    %13 = vector.shape_cast %12 : vector<1x16x512xbf16> to vector<16x512xbf16>
    %c1_i32 = arith.constant 1 : i32
    %14 = arith.cmpi slt, %arg1, %c1_i32 : i32
    %15 = arith.extui %14 : i1 to i32
    %16 = arith.sitofp %15 : i32 to f32
    %17 = arith.truncf %16 : f32 to bf16
    %18 = vector.broadcast %17 : bf16 to vector<1x16x512xbf16>
    %19 = arith.mulf %6, %18 : vector<1x16x512xbf16>
    %20 = vector.shape_cast %19 : vector<1x16x512xbf16> to vector<16x512xbf16>
    %c0_11 = arith.constant 0 : index
    %c0_12 = arith.constant 0 : index
    %21 = vector.load %arg7[%c0_11, %c0_12] : memref<1x128xf32, #tpu.memory_space<vmem>>, vector<1x128xf32>
    %22 = tpu.iota {dimensions = array<i32: 0>} : vector<128x1xi32>
    %c16_i32 = arith.constant 16 : i32
    %c0_i32_13 = arith.constant 0 : i32
    %23 = arith.cmpi eq, %c16_i32, %c0_i32_13 : i32
    %c1_i32_14 = arith.constant 1 : i32
    %24 = arith.select %23, %c1_i32_14, %c16_i32 : i32
    %25 = vector.broadcast %24 : i32 to vector<128x1xi32>
    %26 = arith.remsi %22, %25 : vector<128x1xi32>
    %c0_i32_15 = arith.constant 0 : i32
    %27 = vector.broadcast %c0_i32_15 : i32 to vector<128x1xi32>
    %28 = arith.cmpi ne, %26, %27 : vector<128x1xi32>
    %c0_i32_16 = arith.constant 0 : i32
    %29 = vector.broadcast %c0_i32_16 : i32 to vector<128x1xi32>
    %30 = arith.cmpi slt, %26, %29 : vector<128x1xi32>
    %c0_i32_17 = arith.constant 0 : i32
    %31 = arith.cmpi slt, %24, %c0_i32_17 : i32
    %32 = vector.broadcast %31 : i1 to vector<128x1xi1>
    %33 = vector.broadcast %32 : vector<128x1xi1> to vector<128x1xi1>
    %34 = arith.xori %30, %33 : vector<128x1xi1>
    %35 = arith.andi %34, %28 : vector<128x1xi1>
    %36 = vector.broadcast %24 : i32 to vector<128x1xi32>
    %37 = arith.addi %26, %36 : vector<128x1xi32>
    %38 = arith.select %35, %37, %26 : vector<128x1xi1>, vector<128x1xi32>
    %c1_i32_18 = arith.constant 1 : i32
    %39 = vector.broadcast %c1_i32_18 : i32 to vector<128x1xi32>
    %40 = arith.cmpi sge, %38, %39 : vector<128x1xi32>
    %c15_i32 = arith.constant 15 : i32
    %41 = vector.broadcast %c15_i32 : i32 to vector<128x1xi32>
    %42 = arith.cmpi slt, %38, %41 : vector<128x1xi32>
    %43 = tpu.iota {dimensions = array<i32: 1>} : vector<1x128xi32>
    %c64_i32 = arith.constant 64 : i32
    %c0_i32_19 = arith.constant 0 : i32
    %44 = arith.cmpi eq, %c64_i32, %c0_i32_19 : i32
    %c1_i32_20 = arith.constant 1 : i32
    %45 = arith.select %44, %c1_i32_20, %c64_i32 : i32
    %46 = vector.broadcast %45 : i32 to vector<1x128xi32>
    %47 = arith.remsi %43, %46 : vector<1x128xi32>
    %c0_i32_21 = arith.constant 0 : i32
    %48 = vector.broadcast %c0_i32_21 : i32 to vector<1x128xi32>
    %49 = arith.cmpi ne, %47, %48 : vector<1x128xi32>
    %c0_i32_22 = arith.constant 0 : i32
    %50 = vector.broadcast %c0_i32_22 : i32 to vector<1x128xi32>
    %51 = arith.cmpi slt, %47, %50 : vector<1x128xi32>
    %c0_i32_23 = arith.constant 0 : i32
    %52 = arith.cmpi slt, %45, %c0_i32_23 : i32
    %53 = vector.broadcast %52 : i1 to vector<1x128xi1>
    %54 = vector.broadcast %53 : vector<1x128xi1> to vector<1x128xi1>
    %55 = arith.xori %51, %54 : vector<1x128xi1>
    %56 = arith.andi %55, %49 : vector<1x128xi1>
    %57 = vector.broadcast %45 : i32 to vector<1x128xi32>
    %58 = arith.addi %47, %57 : vector<1x128xi32>
    %59 = arith.select %56, %58, %47 : vector<1x128xi1>, vector<1x128xi32>
    %c-2_i32 = arith.constant -2 : i32
    %60 = vector.broadcast %c-2_i32 : i32 to vector<1x128xi32>
    %61 = arith.addi %59, %60 : vector<1x128xi32>
    %c0_i32_24 = arith.constant 0 : i32
    %62 = vector.broadcast %c0_i32_24 : i32 to vector<1x128xi32>
    %63 = arith.cmpi sge, %61, %62 : vector<1x128xi32>
    %c-2_i32_25 = arith.constant -2 : i32
    %64 = vector.broadcast %c-2_i32_25 : i32 to vector<1x128xi32>
    %65 = arith.addi %59, %64 : vector<1x128xi32>
    %c64_i32_26 = arith.constant 64 : i32
    %66 = vector.broadcast %c64_i32_26 : i32 to vector<1x128xi32>
    %67 = arith.cmpi slt, %65, %66 : vector<1x128xi32>
    %68 = arith.andi %63, %67 : vector<1x128xi1>
    %c-1_i32 = arith.constant -1 : i32
    %69 = vector.broadcast %c-1_i32 : i32 to vector<1x128xi32>
    %70 = arith.addi %59, %69 : vector<1x128xi32>
    %c0_i32_27 = arith.constant 0 : i32
    %71 = vector.broadcast %c0_i32_27 : i32 to vector<1x128xi32>
    %72 = arith.cmpi sge, %70, %71 : vector<1x128xi32>
    %c-1_i32_28 = arith.constant -1 : i32
    %73 = vector.broadcast %c-1_i32_28 : i32 to vector<1x128xi32>
    %74 = arith.addi %59, %73 : vector<1x128xi32>
    %c64_i32_29 = arith.constant 64 : i32
    %75 = vector.broadcast %c64_i32_29 : i32 to vector<1x128xi32>
    %76 = arith.cmpi slt, %74, %75 : vector<1x128xi32>
    %77 = arith.andi %72, %76 : vector<1x128xi1>
    %c1_i32_30 = arith.constant 1 : i32
    %78 = vector.broadcast %c1_i32_30 : i32 to vector<1x128xi32>
    %79 = arith.addi %59, %78 : vector<1x128xi32>
    %c0_i32_31 = arith.constant 0 : i32
    %80 = vector.broadcast %c0_i32_31 : i32 to vector<1x128xi32>
    %81 = arith.cmpi sge, %79, %80 : vector<1x128xi32>
    %c1_i32_32 = arith.constant 1 : i32
    %82 = vector.broadcast %c1_i32_32 : i32 to vector<1x128xi32>
    %83 = arith.addi %59, %82 : vector<1x128xi32>
    %c64_i32_33 = arith.constant 64 : i32
    %84 = vector.broadcast %c64_i32_33 : i32 to vector<1x128xi32>
    %85 = arith.cmpi slt, %83, %84 : vector<1x128xi32>
    %86 = arith.andi %81, %85 : vector<1x128xi1>
    %c2_i32 = arith.constant 2 : i32
    %87 = vector.broadcast %c2_i32 : i32 to vector<1x128xi32>
    %88 = arith.addi %59, %87 : vector<1x128xi32>
    %c0_i32_34 = arith.constant 0 : i32
    %89 = vector.broadcast %c0_i32_34 : i32 to vector<1x128xi32>
    %90 = arith.cmpi sge, %88, %89 : vector<1x128xi32>
    %c2_i32_35 = arith.constant 2 : i32
    %91 = vector.broadcast %c2_i32_35 : i32 to vector<1x128xi32>
    %92 = arith.addi %59, %91 : vector<1x128xi32>
    %c64_i32_36 = arith.constant 64 : i32
    %93 = vector.broadcast %c64_i32_36 : i32 to vector<1x128xi32>
    %94 = arith.cmpi slt, %92, %93 : vector<1x128xi32>
    %95 = arith.andi %90, %94 : vector<1x128xi1>
    %96 = vector.extract_strided_slice %2 {offsets = [0, 0], sizes = [112, 512], strides = [1, 1]} : vector<128x512xbf16> to vector<112x512xbf16>
    %97 = tpu.concatenate %13, %96 in 0 : vector<16x512xbf16>, vector<112x512xbf16> -> vector<128x512xbf16>
    %98 = tpu.concatenate %97, %2 in 1 : vector<128x512xbf16>, vector<128x512xbf16> -> vector<128x1024xbf16>
    %c0_37 = arith.constant 0 : index
    %c0_38 = arith.constant 0 : index
    %99 = vector.load %arg5[%c0_37, %c0_38] : memref<1024x256xbf16, #tpu.memory_space<vmem>>, vector<1024x256xbf16>
    %cst = arith.constant dense<0.000000e+00> : vector<128x256xf32>
    %100 = tpu.matmul %98, %99, %cst {dimension_numbers = #tpu.dot_dimension_numbers<[1], [0], [0], [1], [0, 0, 1, 1], [], []>} : vector<128x1024xbf16>, vector<1024x256xbf16>, vector<128x256xf32> -> vector<128x256xf32>
    %101 = vector.extract_strided_slice %100 {offsets = [0, 0], sizes = [128, 128], strides = [1, 1]} : vector<128x256xf32> to vector<128x128xf32>
    %102 = vector.extract_strided_slice %100 {offsets = [0, 128], sizes = [128, 64], strides = [1, 1]} : vector<128x256xf32> to vector<128x64xf32>
    %cst_39 = arith.constant 0.000000e+00 : f32
    %103 = vector.broadcast %cst_39 : f32 to vector<1x64xf32>
    %104 = vector.extract_strided_slice %102 {offsets = [0, 0], sizes = [127, 64], strides = [1, 1]} : vector<128x64xf32> to vector<127x64xf32>
    %105 = tpu.concatenate %103, %104 in 0 : vector<1x64xf32>, vector<127x64xf32> -> vector<128x64xf32>
    %cst_40 = arith.constant 0.000000e+00 : f32
    %106 = vector.shape_cast %40 : vector<128x1xi1> to vector<128x1xi1>
    %107 = vector.broadcast %106 : vector<128x1xi1> to vector<128x64xi1>
    %108 = vector.broadcast %cst_40 : f32 to vector<128x64xf32>
    %109 = arith.select %107, %105, %108 : vector<128x64xi1>, vector<128x64xf32>
    %110 = vector.extract_strided_slice %100 {offsets = [0, 192], sizes = [128, 64], strides = [1, 1]} : vector<128x256xf32> to vector<128x64xf32>
    %cst_41 = arith.constant 0.000000e+00 : f32
    %111 = vector.broadcast %cst_41 : f32 to vector<1x64xf32>
    %112 = vector.extract_strided_slice %110 {offsets = [1, 0], sizes = [127, 64], strides = [1, 1]} : vector<128x64xf32> to vector<127x64xf32>
    %113 = tpu.concatenate %112, %111 in 0 : vector<127x64xf32>, vector<1x64xf32> -> vector<128x64xf32>
    %cst_42 = arith.constant 0.000000e+00 : f32
    %114 = vector.shape_cast %42 : vector<128x1xi1> to vector<128x1xi1>
    %115 = vector.broadcast %114 : vector<128x1xi1> to vector<128x64xi1>
    %116 = vector.broadcast %cst_42 : f32 to vector<128x64xf32>
    %117 = arith.select %115, %113, %116 : vector<128x64xi1>, vector<128x64xf32>
    %118 = tpu.concatenate %109, %117 in 1 : vector<128x64xf32>, vector<128x64xf32> -> vector<128x128xf32>
    %119 = arith.addf %101, %118 : vector<128x128xf32>
    %120 = vector.broadcast %21 : vector<1x128xf32> to vector<128x128xf32>
    %121 = arith.addf %119, %120 : vector<128x128xf32>
    %cst_43 = arith.constant 0.000000e+00 : f32
    %122 = vector.broadcast %cst_43 : f32 to vector<128x128xf32>
    %123 = arith.maximumf %121, %122 : vector<128x128xf32>
    %124 = arith.mulf %123, %123 : vector<128x128xf32>
    %c2_i32_44 = arith.constant 2 : i32
    %125 = tpu.dynamic_rotate %124 by %c2_i32_44 dim 1 : vector<128x128xf32>, i32 -> vector<128x128xf32>
    %cst_45 = arith.constant 0.000000e+00 : f32
    %126 = vector.shape_cast %68 : vector<1x128xi1> to vector<1x128xi1>
    %127 = vector.broadcast %126 : vector<1x128xi1> to vector<128x128xi1>
    %128 = vector.broadcast %cst_45 : f32 to vector<128x128xf32>
    %129 = arith.select %127, %125, %128 : vector<128x128xi1>, vector<128x128xf32>
    %130 = arith.addf %124, %129 : vector<128x128xf32>
    %c1_i32_46 = arith.constant 1 : i32
    %131 = tpu.dynamic_rotate %124 by %c1_i32_46 dim 1 : vector<128x128xf32>, i32 -> vector<128x128xf32>
    %cst_47 = arith.constant 0.000000e+00 : f32
    %132 = vector.shape_cast %77 : vector<1x128xi1> to vector<1x128xi1>
    %133 = vector.broadcast %132 : vector<1x128xi1> to vector<128x128xi1>
    %134 = vector.broadcast %cst_47 : f32 to vector<128x128xf32>
    %135 = arith.select %133, %131, %134 : vector<128x128xi1>, vector<128x128xf32>
    %136 = arith.addf %130, %135 : vector<128x128xf32>
    %c127_i32 = arith.constant 127 : i32
    %137 = tpu.dynamic_rotate %124 by %c127_i32 dim 1 : vector<128x128xf32>, i32 -> vector<128x128xf32>
    %cst_48 = arith.constant 0.000000e+00 : f32
    %138 = vector.shape_cast %86 : vector<1x128xi1> to vector<1x128xi1>
    %139 = vector.broadcast %138 : vector<1x128xi1> to vector<128x128xi1>
    %140 = vector.broadcast %cst_48 : f32 to vector<128x128xf32>
    %141 = arith.select %139, %137, %140 : vector<128x128xi1>, vector<128x128xf32>
    %142 = arith.addf %136, %141 : vector<128x128xf32>
    %c126_i32 = arith.constant 126 : i32
    %143 = tpu.dynamic_rotate %124 by %c126_i32 dim 1 : vector<128x128xf32>, i32 -> vector<128x128xf32>
    %cst_49 = arith.constant 0.000000e+00 : f32
    %144 = vector.shape_cast %95 : vector<1x128xi1> to vector<1x128xi1>
    %145 = vector.broadcast %144 : vector<1x128xi1> to vector<128x128xi1>
    %146 = vector.broadcast %cst_49 : f32 to vector<128x128xf32>
    %147 = arith.select %145, %143, %146 : vector<128x128xi1>, vector<128x128xf32>
    %148 = arith.addf %142, %147 : vector<128x128xf32>
    %cst_50 = arith.constant 2.000000e-05 : f32
    %149 = vector.broadcast %cst_50 : f32 to vector<128x128xf32>
    %150 = arith.mulf %149, %148 : vector<128x128xf32>
    %cst_51 = arith.constant 1.000000e+00 : f32
    %151 = vector.broadcast %cst_51 : f32 to vector<128x128xf32>
    %152 = arith.addf %151, %150 : vector<128x128xf32>
    %153 = math.rsqrt %152 : vector<128x128xf32>
    %154 = arith.mulf %123, %153 : vector<128x128xf32>
    %155 = vector.shape_cast %154 : vector<128x128xf32> to vector<8x16x128xf32>
    %c0_52 = arith.constant 0 : index
    %c0_53 = arith.constant 0 : index
    %c0_54 = arith.constant 0 : index
    %c0_55 = arith.constant 0 : index
    %c0_56 = arith.constant 0 : index
    %156 = vector.load %arg8[%c0_52, %c0_53, %c0_54, %c0_55, %c0_56] : memref<1x2x8x16x128xf32, #tpu.memory_space<vmem>>, vector<1x1x8x16x128xf32>
    %157 = vector.shape_cast %156 : vector<1x1x8x16x128xf32> to vector<8x16x128xf32>
    %158 = vector.shape_cast %155 : vector<8x16x128xf32> to vector<1x1x8x16x128xf32>
    tpu.vector_store %arg8[%c0_52, %c0_53, %c0_54, %c0_55, %c0_56], %158 {strides = array<i32>} : memref<1x2x8x16x128xf32, #tpu.memory_space<vmem>>, vector<1x1x8x16x128xf32>,
    %159 = vector.extract_strided_slice %2 {offsets = [16, 0], sizes = [112, 512], strides = [1, 1]} : vector<128x512xbf16> to vector<112x512xbf16>
    %160 = tpu.concatenate %159, %20 in 0 : vector<112x512xbf16>, vector<16x512xbf16> -> vector<128x512xbf16>
    %161 = tpu.concatenate %2, %160 in 1 : vector<128x512xbf16>, vector<128x512xbf16> -> vector<128x1024xbf16>
    %c0_57 = arith.constant 0 : index
    %c0_58 = arith.constant 0 : index
    %162 = vector.load %arg6[%c0_57, %c0_58] : memref<1024x256xbf16, #tpu.memory_space<vmem>>, vector<1024x256xbf16>
    %cst_59 = arith.constant dense<0.000000e+00> : vector<128x256xf32>
    %163 = tpu.matmul %161, %162, %cst_59 {dimension_numbers = #tpu.dot_dimension_numbers<[1], [0], [0], [1], [0, 0, 1, 1], [], []>} : vector<128x1024xbf16>, vector<1024x256xbf16>, vector<128x256xf32> -> vector<128x256xf32>
    %164 = vector.extract_strided_slice %163 {offsets = [0, 0], sizes = [128, 128], strides = [1, 1]} : vector<128x256xf32> to vector<128x128xf32>
    %165 = vector.extract_strided_slice %163 {offsets = [0, 128], sizes = [128, 64], strides = [1, 1]} : vector<128x256xf32> to vector<128x64xf32>
    %cst_60 = arith.constant 0.000000e+00 : f32
    %166 = vector.broadcast %cst_60 : f32 to vector<1x64xf32>
    %167 = vector.extract_strided_slice %165 {offsets = [0, 0], sizes = [127, 64], strides = [1, 1]} : vector<128x64xf32> to vector<127x64xf32>
    %168 = tpu.concatenate %166, %167 in 0 : vector<1x64xf32>, vector<127x64xf32> -> vector<128x64xf32>
    %cst_61 = arith.constant 0.000000e+00 : f32
    %169 = vector.shape_cast %40 : vector<128x1xi1> to vector<128x1xi1>
    %170 = vector.broadcast %169 : vector<128x1xi1> to vector<128x64xi1>
    %171 = vector.broadcast %cst_61 : f32 to vector<128x64xf32>
    %172 = arith.select %170, %168, %171 : vector<128x64xi1>, vector<128x64xf32>
    %173 = vector.extract_strided_slice %163 {offsets = [0, 192], sizes = [128, 64], strides = [1, 1]} : vector<128x256xf32> to vector<128x64xf32>
    %cst_62 = arith.constant 0.000000e+00 : f32
    %174 = vector.broadcast %cst_62 : f32 to vector<1x64xf32>
    %175 = vector.extract_strided_slice %173 {offsets = [1, 0], sizes = [127, 64], strides = [1, 1]} : vector<128x64xf32> to vector<127x64xf32>
    %176 = tpu.concatenate %175, %174 in 0 : vector<127x64xf32>, vector<1x64xf32> -> vector<128x64xf32>
    %cst_63 = arith.constant 0.000000e+00 : f32
    %177 = vector.shape_cast %42 : vector<128x1xi1> to vector<128x1xi1>
    %178 = vector.broadcast %177 : vector<128x1xi1> to vector<128x64xi1>
    %179 = vector.broadcast %cst_63 : f32 to vector<128x64xf32>
    %180 = arith.select %178, %176, %179 : vector<128x64xi1>, vector<128x64xf32>
    %181 = tpu.concatenate %172, %180 in 1 : vector<128x64xf32>, vector<128x64xf32> -> vector<128x128xf32>
    %182 = arith.addf %164, %181 : vector<128x128xf32>
    %183 = vector.broadcast %21 : vector<1x128xf32> to vector<128x128xf32>
    %184 = arith.addf %182, %183 : vector<128x128xf32>
    %cst_64 = arith.constant 0.000000e+00 : f32
    %185 = vector.broadcast %cst_64 : f32 to vector<128x128xf32>
    %186 = arith.maximumf %184, %185 : vector<128x128xf32>
    %187 = arith.mulf %186, %186 : vector<128x128xf32>
    %c2_i32_65 = arith.constant 2 : i32
    %188 = tpu.dynamic_rotate %187 by %c2_i32_65 dim 1 : vector<128x128xf32>, i32 -> vector<128x128xf32>
    %cst_66 = arith.constant 0.000000e+00 : f32
    %189 = vector.shape_cast %68 : vector<1x128xi1> to vector<1x128xi1>
    %190 = vector.broadcast %189 : vector<1x128xi1> to vector<128x128xi1>
    %191 = vector.broadcast %cst_66 : f32 to vector<128x128xf32>
    %192 = arith.select %190, %188, %191 : vector<128x128xi1>, vector<128x128xf32>
    %193 = arith.addf %187, %192 : vector<128x128xf32>
    %c1_i32_67 = arith.constant 1 : i32
    %194 = tpu.dynamic_rotate %187 by %c1_i32_67 dim 1 : vector<128x128xf32>, i32 -> vector<128x128xf32>
    %cst_68 = arith.constant 0.000000e+00 : f32
    %195 = vector.shape_cast %77 : vector<1x128xi1> to vector<1x128xi1>
    %196 = vector.broadcast %195 : vector<1x128xi1> to vector<128x128xi1>
    %197 = vector.broadcast %cst_68 : f32 to vector<128x128xf32>
    %198 = arith.select %196, %194, %197 : vector<128x128xi1>, vector<128x128xf32>
    %199 = arith.addf %193, %198 : vector<128x128xf32>
    %c127_i32_69 = arith.constant 127 : i32
    %200 = tpu.dynamic_rotate %187 by %c127_i32_69 dim 1 : vector<128x128xf32>, i32 -> vector<128x128xf32>
    %cst_70 = arith.constant 0.000000e+00 : f32
    %201 = vector.shape_cast %86 : vector<1x128xi1> to vector<1x128xi1>
    %202 = vector.broadcast %201 : vector<1x128xi1> to vector<128x128xi1>
    %203 = vector.broadcast %cst_70 : f32 to vector<128x128xf32>
    %204 = arith.select %202, %200, %203 : vector<128x128xi1>, vector<128x128xf32>
    %205 = arith.addf %199, %204 : vector<128x128xf32>
    %c126_i32_71 = arith.constant 126 : i32
    %206 = tpu.dynamic_rotate %187 by %c126_i32_71 dim 1 : vector<128x128xf32>, i32 -> vector<128x128xf32>
    %cst_72 = arith.constant 0.000000e+00 : f32
    %207 = vector.shape_cast %95 : vector<1x128xi1> to vector<1x128xi1>
    %208 = vector.broadcast %207 : vector<1x128xi1> to vector<128x128xi1>
    %209 = vector.broadcast %cst_72 : f32 to vector<128x128xf32>
    %210 = arith.select %208, %206, %209 : vector<128x128xi1>, vector<128x128xf32>
    %211 = arith.addf %205, %210 : vector<128x128xf32>
    %cst_73 = arith.constant 2.000000e-05 : f32
    %212 = vector.broadcast %cst_73 : f32 to vector<128x128xf32>
    %213 = arith.mulf %212, %211 : vector<128x128xf32>
    %cst_74 = arith.constant 1.000000e+00 : f32
    %214 = vector.broadcast %cst_74 : f32 to vector<128x128xf32>
    %215 = arith.addf %214, %213 : vector<128x128xf32>
    %216 = math.rsqrt %215 : vector<128x128xf32>
    %217 = arith.mulf %186, %216 : vector<128x128xf32>
    %218 = vector.shape_cast %217 : vector<128x128xf32> to vector<8x16x128xf32>
    %c0_75 = arith.constant 0 : index
    %c1 = arith.constant 1 : index
    %c0_76 = arith.constant 0 : index
    %c0_77 = arith.constant 0 : index
    %c0_78 = arith.constant 0 : index
    %219 = vector.load %arg8[%c0_75, %c1, %c0_76, %c0_77, %c0_78] : memref<1x2x8x16x128xf32, #tpu.memory_space<vmem>>, vector<1x1x8x16x128xf32>
    %220 = vector.shape_cast %219 : vector<1x1x8x16x128xf32> to vector<8x16x128xf32>
    %221 = vector.shape_cast %218 : vector<8x16x128xf32> to vector<1x1x8x16x128xf32>
    tpu.vector_store %arg8[%c0_75, %c1, %c0_76, %c0_77, %c0_78], %221 {strides = array<i32>} : memref<1x2x8x16x128xf32, #tpu.memory_space<vmem>>, vector<1x1x8x16x128xf32>,
    return
  }
  func.func @transform_0(%arg0: i32, %arg1: i32) -> (i32, i32, i32, i32) {
    %c8_i32 = arith.constant 8 : i32
    %0 = arith.muli %arg1, %c8_i32 : i32
    %c1_i32 = arith.constant 1 : i32
    %1 = arith.subi %0, %c1_i32 : i32
    %c0_i32 = arith.constant 0 : i32
    %2 = arith.maxsi %1, %c0_i32 : i32
    %c0_i32_0 = arith.constant 0 : i32
    %c0_i32_1 = arith.constant 0 : i32
    %c0_i32_2 = arith.constant 0 : i32
    return %arg0, %2, %c0_i32_0, %c0_i32_1 : i32, i32, i32, i32
  }
  func.func @transform_1(%arg0: i32, %arg1: i32) -> (i32, i32, i32, i32) {
    %c0_i32 = arith.constant 0 : i32
    %c0_i32_0 = arith.constant 0 : i32
    %c0_i32_1 = arith.constant 0 : i32
    return %arg0, %arg1, %c0_i32, %c0_i32_0 : i32, i32, i32, i32
  }
  func.func @transform_2(%arg0: i32, %arg1: i32) -> (i32, i32, i32, i32) {
    %c8_i32 = arith.constant 8 : i32
    %0 = arith.muli %arg1, %c8_i32 : i32
    %c8_i32_0 = arith.constant 8 : i32
    %1 = arith.addi %0, %c8_i32_0 : i32
    %c15_i32 = arith.constant 15 : i32
    %2 = arith.minsi %1, %c15_i32 : i32
    %c0_i32 = arith.constant 0 : i32
    %c0_i32_1 = arith.constant 0 : i32
    %c0_i32_2 = arith.constant 0 : i32
    return %arg0, %2, %c0_i32, %c0_i32_1 : i32, i32, i32, i32
  }
  func.func @transform_3(%arg0: i32, %arg1: i32) -> (i32, i32) {
    %c0_i32 = arith.constant 0 : i32
    %c0_i32_0 = arith.constant 0 : i32
    %c0_i32_1 = arith.constant 0 : i32
    return %c0_i32, %c0_i32_0 : i32, i32
  }
  func.func @transform_4(%arg0: i32, %arg1: i32) -> (i32, i32) {
    %c0_i32 = arith.constant 0 : i32
    %c0_i32_0 = arith.constant 0 : i32
    %c0_i32_1 = arith.constant 0 : i32
    return %c0_i32, %c0_i32_0 : i32, i32
  }
  func.func @transform_5(%arg0: i32, %arg1: i32) -> (i32, i32) {
    %c0_i32 = arith.constant 0 : i32
    %c0_i32_0 = arith.constant 0 : i32
    %c0_i32_1 = arith.constant 0 : i32
    return %c0_i32, %c0_i32_0 : i32, i32
  }
  func.func @transform_6(%arg0: i32, %arg1: i32) -> (i32, i32, i32, i32, i32) {
    %c0_i32 = arith.constant 0 : i32
    %c0_i32_0 = arith.constant 0 : i32
    %c0_i32_1 = arith.constant 0 : i32
    %c0_i32_2 = arith.constant 0 : i32
    return %arg0, %c0_i32, %arg1, %c0_i32_0, %c0_i32_1 : i32, i32, i32, i32, i32
  }
}

</mosaic_0001>

<bundles_post_ra>
// kernel: tpu_custom_call.1
= control target key start
LH: loop header
LB: loop body
LE: loop exit
PB: predicated region body
PF: predicated region fallthrough
CT: control target
= control target key end

     0   :  { %s8402_s0 = inlined_call_operand.hbm [shape: bf16[2,16,16,512], index: 0, kind: input, shape index: {}]   ;;  %s8403_s1 = inlined_call_operand.hbm [shape: bf16[2,16,16,512], index: 1, kind: input, shape index: {}]   ;;  %s8404_s2 = inlined_call_operand.hbm [shape: bf16[2,16,16,512], index: 2, kind: input, shape index: {}]   ;;  %s8405_s3 = inlined_call_operand.hbm [shape: bf16[1024,256], index: 3, kind: input, shape index: {}]   ;;  %s8406_s4 = inlined_call_operand.hbm [shape: bf16[1024,256], index: 4, kind: input, shape index: {}]   ;;  %s8407_s5 = inlined_call_operand.vmem [shape: f32[1,128], index: 5, kind: input, shape index: {}]   ;;  %s8408_s6 = inlined_call_operand.hbm [shape: f32[2,2,16,16,128], index: 6, kind: output, shape index: {}]  }
   0x1   :  { %8478 = sst [smem:[#allocation75_spill]] %s8402_s0 }
   0x2   :  { %8479 = sst [smem:[#allocation76_spill]] %s8403_s1 }
   0x3   :  { %8480 = sst [smem:[#allocation77_spill]] %s8404_s2 }
   0x4   :  { %8481 = sst [smem:[#allocation78_spill]] %s8405_s3 }
   0x5   :  { %8482 = sst [smem:[#allocation79_spill]] %s8406_s4 }
   0x6   :  { %8483 = sst [smem:[#allocation80_spill]] %s8407_s5 }
   0x7   :  { %8484 = sst [smem:[#allocation81_spill]] %s8408_s6 }
   0x8   :  { %11 = vsyncpa [#allocation3], 0 }
   0x9   :  { %13 = vsyncpa [#allocation3 + $0x1], 0 }
   0xa   :  { %14 = vsyncpa [#allocation6], 0 }
   0xb   :  { %16 = vsyncpa [#allocation6 + $0x1], 0 }
   0xc   :  { %17 = vsyncpa [#allocation9], 0 }
   0xd   :  { %18 = vsyncpa [#allocation4], 0 }
   0xe   :  { %20 = vsyncpa [#allocation4 + $0x1], 0  ;;  %s6215_s21 = smov 0   ;;  %s6217_s22 = smov 0  }
   0xf   :  { %s6219_s23 = smov 0   ;;  %s6221_s24 = smov 0  }
  0x10   :  { %s6223_s25 = smov 0   ;;  %s6225_s26 = smov 0  }
  0x11   :  { %s6227_s27 = smov 0   ;;  %s6229_s28 = smov 0  }
  0x12   :  { %s6231_s29 = smov 0   ;;  %s6233_s30 = smov 0  }
  0x13   :  { %s6235_s7 = smov 0   ;;  %s6237_s8 = smov 0  }
  0x14   :  { %s6239_s9 = smov 0   ;;  %s6241_s10 = smov 0  }
  0x15 LB: > { %8485 = sst [smem:[#allocation19_spill]] %s6106_s21  ;;  %s6286_s11 = sadd.s32 4294967295, %s6158_s10   ;;  %s6158_s10 = sphi %s6241_s10, %s26_s10   ;;  %s6154_s9 = sphi %s6239_s9, %s8763_s9   ;;  %s6150_s8 = sphi %s6237_s8, %s8772_s8   ;;  %s6146_s7 = sphi %s6235_s7, %s8761_s7   ;;  %s6142_s30 = sphi %s6233_s30, %s8771_s30   ;;  %s6138_s29 = sphi %s6231_s29, %s8770_s29   ;;  %s6134_s28 = sphi %s6229_s28, %s8769_s28   ;;  %s6130_s27 = sphi %s6227_s27, %s8768_s27   ;;  %s6126_s26 = sphi %s6225_s26, %s8767_s26   ;;  %s6122_s25 = sphi %s6223_s25, %s8766_s25   ;;  %s6118_s24 = sphi %s6221_s24, %s8759_s24   ;;  %s6114_s23 = sphi %s6219_s23, %s8765_s23   ;;  %s6110_s22 = sphi %s6217_s22, %s8764_s22   ;;  %s6106_s21 = sphi %s6215_s21, %s8758_s21  }
  0x16   : > { %8486 = sst [smem:[#allocation20_spill]] %s6110_s22  ;;  %p4839_p0 = scmp.ge.s32.totalorder %s6158_s10, 1 }
  0x17   : > { %8487 = sst [smem:[#allocation21_spill]] %s6118_s24  ;;  %p8423_p1 = scmp.eq.s32.totalorder %s6286_s11, 0 }
  0x18   : > { %8488 = sst [smem:[#allocation22_spill]] %s6122_s25  ;;  %p221_p2 = scmp.eq.s32.totalorder %s6286_s11, 3 }
  0x19   : > { %8489 = sst [smem:[#allocation23_spill]] %s6142_s30  ;;  %p234_p3 = scmp.lt.s32.totalorder %s6158_s10, 5 }
  0x1a   : > { %8490 = sst [smem:[#allocation24_spill]] %s6146_s7  ;;  %s6160_s13 = smov [#allocation8]  }
  0x1b   : > { %8491 = sst [smem:[#allocation25_spill]] %s6154_s9  ;;  %p6292_p4 = pnand %p4839_p0, %p234_p3 }
  0x1c   : > { %s246_s14 = sshll.u32 %s6160_s13, 4  ;;  %s247_s14 = int_to_ptr.vmem [resolvable:$true] %s246_s14 }
  0x1d   : > { %s8492_s12 = scalar_select %p6292_p4, 1, 0 }
  0x1e   : > { %p5210_p5 = pneg %p6292_p4  ;;  %s5903_s16 = scalar_lea.vmem %s247_s14, 16384 }
  0x1f   : > { %8493 = sst [smem:[#allocation26_spill]] %s8492_s12  ;;  %p5904_p8 = scmp.ne.s32.totalorder %s247_s14, %s5903_s16 }
  0x20   : > { %p6300_p6 = pnand %p5210_p5, %p8423_p1  ;;  %p5911_p11 = scmp.lt.s32.totalorder %s247_s14, %s247_s14 }
  0x21   : > { %p5912_p12 = scmp.lt.s32.totalorder %s5903_s16, %s5903_s16 }
  0x22   : > { %p8426_p7 = pneg %p6300_p6 }
  0x23   : > { %p5913_p13 = por %p5912_p12, %p5911_p11 }
  0x24   : > { %p5906_p9 = pnand %p5904_p8, %p8426_p7 }
  0x26   : > { %p5907_p10 = pneg %p5906_p9 }
  0x28   : > { %p5914_p0 = pnand %p5913_p13, %p5907_p10 }
  0x2a   : > { %5917 = shalt.err (!%p5914_p0)
}
  0x2b   : > { %s8410_s17 = smov 128   ;;  %s8411_s18 = smov 8  }
  0x2c   : > { %s8495_s3 = sld [smem:[#allocation78_spill]]  ;;  %s4832_s13 = sadd.s32 4294967294, %s6158_s10  }
  0x2d   : > { %s35_s16 = sadd.s32 1, %s6150_s8  ;;  %s38_s6 = sadd.s32 1, %s6154_s9 }
  0x2e   : > { %p36_p3 = scmp.ge.s32.totalorder %s35_s16, 2  ;;  %p8424_p5 = scmp.eq.s32.totalorder %s6158_s10, 0 }
  0x2f   : > { %p90_p8 = scmp.ne.s32.totalorder %s6126_s26, %s6122_s25  ;;  %p96_p9 = scmp.ne.s32.totalorder %s6122_s25, %s6118_s24 }
  0x30   : > { %s8774_s16 = smov (%p36_p3, %s35_s16), 0  ;;  %s8776_s6 = smov (!%p36_p3, %s38_s6), %s6154_s9 }
  0x31   : > { %8496 = sst [smem:[#allocation27_spill]] %s8774_s16  ;;  %p227_p10 = scmp.eq.s32.totalorder %s4832_s13, 3 }
  0x32   : > { %5213 = dma.hbm_to_vmem [thread:$0]  (!%p6300_p6), %s8495_s3, 16384, %s247_s14, [#allocation9], %s8410_s17, %s8410_s17, %s8411_s18  }
  0x33   : > { %p6335_p11 = por %p90_p8, %p8424_p5  ;;  %p6341_p12 = por %p221_p2, %p90_p8 }
  0x34   : > { %p6347_p13 = por %p96_p9, %p8423_p1  ;;  %p6351_p0 = por %p227_p10, %p96_p9 }
  0x35   : > { %s8498_s19 = scalar_select %p6341_p12, 1, 0 }
  0x36   : > { %s8500_s20 = scalar_select %p6347_p13, 1, 0 }
  0x37   : > { %8499 = sst [smem:[#allocation28_spill]] %s8498_s19  ;;  %p8425_p3 = scmp.lt.s32.totalorder %s6158_s10, 4 }
  0x38   : > { %8501 = sst [smem:[#allocation29_spill]] %s8500_s20  ;;  %s6357_s13 = sshll.u32 %s6154_s9, 7 }
  0x39   : > { %s8502_s7 = scalar_select %p6351_p0, 1, 0 }
  0x3a   : > { %s303_s5 = sand.u32 1, %s6158_s10   ;;  %s305_s17 = sand.u32 1, %s6126_s26  }
  0x3b   : > { %8503 = sst [smem:[#allocation30_spill]] %s8502_s7  ;;  %s4849_s18 = sshll.u32 %s305_s17, 8 }
  0x3c   : > { %s5186_s3 = sshll.u32 %s6150_s8, 6  ;;  %s307_s30 = scalar_lea.vmem [#allocation5], %s4849_s18 }
  0x3d   : > { %s314_s24 = sadd.s32 %s5186_s3, %s6357_s13  ;;  %s317_s19 = sshll.u32 %s307_s30, 4  ;;  %s318_s19 = int_to_ptr.vmem [resolvable:$true] %s317_s19 }
  0x3e   : > { %s4853_s25 = sshll.u32 %s314_s24, 6  ;;  %s8504_s1 = sld [smem:[#allocation76_spill]] }
  0x3f   : > { %p6370_p2 = pnand %p8425_p3, %p6335_p11  ;;  %s6163_s21 = smov [#allocation10]  }
  0x40   : > { %s259_s22 = sshll.u32 %s6163_s21, 4  ;;  %s6374_s17 = scalar_lea.sflag [#allocation6], %s303_s5  ;;  %s260_s22 = int_to_ptr.vmem [resolvable:$true] %s259_s22 }
  0x41   : > { %p5920_p8 = pneg %p6370_p2  ;;  %s5931_s3 = scalar_lea.vmem %s318_s19, 4096 }
  0x42   : > { %p5932_p9 = scmp.ne.s32.totalorder %s318_s19, %s5931_s3  ;;  %s6164_s24 = smov [#allocation5]  }
  0x43   : > { %s5936_s2 = sshll.u32 %s6164_s24, 4  ;;  %s5937_s2 = int_to_ptr.vmem [resolvable:$false] %s5936_s2 }
  0x44   : > { %s316_s20 = scalar_lea.hbm %s8504_s1, %s4853_s25  ;;  %p5934_p10 = pnand %p5932_p9, %p5920_p8 }
  0x45   : > { %s5938_s25 = scalar_lea.vmem %s5937_s2, 8192  ;;  %p5939_p5 = scmp.lt.s32.totalorder %s318_s19, %s5937_s2 }
  0x46   : > { %p5935_p1 = pneg %p5934_p10  ;;  %p5940_p11 = scmp.lt.s32.totalorder %s5938_s25, %s5931_s3 }
  0x48   : > { %p5941_p3 = por %p5940_p11, %p5939_p5 }
  0x4a   : > { %p5942_p7 = pnand %p5941_p3, %p5935_p1 }
  0x4c   : > { %5945 = shalt.err (!%p5942_p7)
}
  0x4d   : > { %s8427_s30 = smov 256   ;;  %s8429_s5 = smov 16  }
  0x4e   : > { %5223 = dma.hbm_to_vmem [thread:$0]  (!%p6370_p2), %s316_s20, 4096, %s318_s19, %s6374_s17, %s8427_s30, %s8427_s30, %s8429_s5  }
  0x4f   : > { %s5957_s21 = scalar_lea.vmem %s260_s22, 16384  ;;  %p8506_p9 = pneg %p6300_p6 }
  0x50   : > { %p5958_p8 = scmp.ne.s32.totalorder %s260_s22, %s5957_s21  ;;  %p5965_p5 = scmp.lt.s32.totalorder %s260_s22, %s260_s22 }
  0x51   : > { %p5966_p1 = scmp.lt.s32.totalorder %s5957_s21, %s5957_s21 }
  0x52   : > { %p5960_p10 = pnand %p5958_p8, %p8506_p9 }
  0x53   : > { %p5967_p7 = por %p5966_p1, %p5965_p5 }
  0x54   : > { %p5961_p0 = pneg %p5960_p10 }
  0x56   : > { %p5968_p3 = pnand %p5967_p7, %p5961_p0 }
  0x58   : > { %5971 = shalt.err (!%p5968_p3)
}
  0x59   : > { %s8507_s12 = smov 8   ;;  %s8508_s7 = smov 128  }
  0x5a   : > { %s8509_s4 = sld [smem:[#allocation79_spill]]  ;;  %p40_p0 = scmp.ge.s32.totalorder %s8776_s6, 2 }
  0x5b   : > { %s4833_s15 = sshll.u32 %s6150_s8, 3  ;;  %s4835_s20 = sshll.u32 %s8774_s16, 3 }
  0x5c   : > { %s4834_s19 = sadd.s32 4294967295, %s4833_s15  ;;  %s8778_s6 = smov (%p40_p0, %s8776_s6), 0 }
  0x5d   : > { %8510 = sst [smem:[#allocation31_spill]] %s8778_s6  ;;  %p44_p2 = scmp.gt.s32.totalorder %s4834_s19, 0 }
  0x5e   : > { %s4836_s3 = sadd.s32 4294967295, %s4835_s20  ;;  %s6403_s24 = ssub.s32 %s6154_s9, %s8778_s6 }
  0x5f   : > { %p48_p11 = scmp.gt.s32.totalorder %s4836_s3, 0  ;;  %s8780_s19 = smov (!%p44_p2, %s4834_s19), 0 }
  0x60   : > { %5216 = dma.hbm_to_vmem [thread:$0]  (!%p6300_p6), %s8509_s4, 16384, %s260_s22, [#allocation9], %s8508_s7, %s8508_s7, %s8507_s12  }
  0x61   : > { %s8782_s3 = smov (!%p48_p11, %s4836_s3), 0  ;;  %s55_s22 = sadd.s32 1, %s6138_s29 }
  0x62   : > { %p62_p6 = scmp.ne.s32.totalorder %s6138_s29, %s6134_s28  ;;  %s51_s2 = ssub.s32 %s8780_s19, %s8782_s3 }
  0x63   : > { %p68_p8 = scmp.ne.s32.totalorder %s6134_s28, %s6130_s27  ;;  %s52_s25 = sor.u32 %s51_s2, %s6403_s24 }
  0x64   : > { %p8511_p9 = scmp.eq.s32.totalorder %s6158_s10, 0  ;;  %p53_p5 = scmp.eq.s32.totalorder %s52_s25, 0 }
  0x65   : > { %p8513_p1 = scmp.eq.s32.totalorder %s6286_s11, 0  ;;  %s8515_s7 = ssub.s32 %s6150_s8, %s8774_s16 }
  0x66   : > { %p6413_p10 = por %p8511_p9, %p62_p6  ;;  %s80_s18 = sor.u32 %s8515_s7, %s6403_s24 }
  0x67   : > { %p6419_p7 = por %p8513_p1, %p68_p8  ;;  %s6427_s14 = sadd.s32 8, %s4833_s15 }
  0x68   : > { %s6430_s27 = scalar_select %p53_p5, %s6138_s29, %s55_s22  }
  0x69   : > { %p81_p3 = scmp.eq.s32.totalorder %s80_s18, 0  ;;  %s6433_s3 = sadd.s32 8, %s4835_s20 }
  0x6a   : > { %s276_s2 = sand.u32 1, %s6138_s29   ;;  %s8516_s25 = sadd.s32 1, %s6126_s26 }
  0x6b   : > { %s6439_s30 = scalar_select %p81_p3, %s6126_s26, %s8516_s25  }
  0x6c   : > { %s4843_s5 = sshll.u32 %s276_s2, 5  ;;  %s4846_s1 = sshll.u32 %s8780_s19, 3 }
  0x6d   : > { %s290_s7 = sadd.s32 %s6357_s13, %s4846_s1  ;;  %s280_s4 = scalar_lea.vmem [#allocation2], %s4843_s5 }
  0x6e   : > { %s4848_s15 = sshll.u32 %s290_s7, 6  ;;  %s293_s6 = sshll.u32 %s280_s4, 4  ;;  %s294_s6 = int_to_ptr.vmem [resolvable:$true] %s293_s6 }
  0x6f   : > { %s8517_s0 = sld [smem:[#allocation75_spill]]  ;;  %p8518_p11 = scmp.lt.s32.totalorder %s6158_s10, 4 }
  0x70   : > { %s277_s18 = scalar_lea.sflag [#allocation3], %s276_s2  ;;  %s5985_s19 = scalar_lea.vmem %s294_s6, 512 }
  0x71   : > { %p6450_p6 = pnand %p8518_p11, %p6413_p10  ;;  %p5986_p9 = scmp.ne.s32.totalorder %s294_s6, %s5985_s19 }
  0x72   : > { %s6167_s1 = smov [#allocation2]  }
  0x73   : > { %p5974_p8 = pneg %p6450_p6  ;;  %s5990_s4 = sshll.u32 %s6167_s1, 4  ;;  %s5991_s4 = int_to_ptr.vmem [resolvable:$false] %s5990_s4 }
  0x74   : > { %s5992_s9 = scalar_lea.vmem %s5991_s4, 1024  ;;  %p5993_p3 = scmp.lt.s32.totalorder %s294_s6, %s5991_s4 }
  0x75   : > { %s292_s22 = scalar_lea.hbm %s8517_s0, %s4848_s15  ;;  %p5988_p5 = pnand %p5986_p9, %p5974_p8 }
  0x76   : > { %p5994_p2 = scmp.lt.s32.totalorder %s5992_s9, %s5985_s19 }
  0x77   : > { %p5989_p1 = pneg %p5988_p5 }
  0x78   : > { %p5995_p0 = por %p5994_p2, %p5993_p3 }
  0x7a   : > { %p5996_p12 = pnand %p5995_p0, %p5989_p1 }
  0x7c   : > { %5999 = shalt.err (!%p5996_p12)
}
  0x7d   : > { %s8520_s16 = smov 16   ;;  %s8521_s5 = smov 256  }
  0x7e   : > { %s8522_s21 = sld [smem:[#allocation20_spill]]  ;;  %p8524_p12 = scmp.lt.s32.totalorder %s6427_s14, 15 }
  0x7f   : > { %s8523_s2 = sld [smem:[#allocation19_spill]]  ;;  %p8525_p10 = scmp.lt.s32.totalorder %s6433_s3, 15 }
  0x80   : > { %5220 = dma.hbm_to_vmem [thread:$0]  (!%p6450_p6), %s292_s22, 512, %s294_s6, %s277_s18, %s8521_s5, %s8521_s5, %s8520_s16  }
  0x81   : > { %s8784_s14 = smov (!%p8524_p12, %s6427_s14), 15  ;;  %s8786_s3 = smov (!%p8525_p10, %s6433_s3), 15 }
  0x82   : > { %s119_s25 = sadd.s32 1, %s6114_s23  ;;  %s115_s7 = ssub.s32 %s8784_s14, %s8786_s3 }
  0x83   : > { %s116_s15 = sor.u32 %s115_s7, %s6403_s24  ;;  %p8526_p11 = scmp.eq.s32.totalorder %s6158_s10, 0 }
  0x84   : > { %p126_p0 = scmp.ne.s32.totalorder %s6114_s23, %s8522_s21  ;;  %p117_p9 = scmp.eq.s32.totalorder %s116_s15, 0 }
  0x85   : > { %p132_p2 = scmp.ne.s32.totalorder %s8522_s21, %s8523_s2  ;;  %p8528_p5 = scmp.eq.s32.totalorder %s6286_s11, 0 }
  0x86   : > { %p6475_p8 = por %p126_p0, %p8526_p11  ;;  %s329_s22 = sand.u32 1, %s6114_s23  }
  0x87   : > { %p6481_p1 = por %p132_p2, %p8528_p5  ;;  %s4856_s18 = sshll.u32 %s8784_s14, 3 }
  0x88   : > { %s6487_s19 = scalar_select %p117_p9, %s6114_s23, %s119_s25  }
  0x89   : > { %s8529_s6 = scalar_select %p6481_p1, 1, 0 }
  0x8a   : > { %s4854_s3 = sshll.u32 %s329_s22, 5  ;;  %s341_s1 = sadd.s32 %s4856_s18, %s6357_s13 }
  0x8b   : > { %s4858_s4 = sshll.u32 %s341_s1, 6  ;;  %s8530_s21 = sld [smem:[#allocation77_spill]] }
  0x8c   : > { %s331_s7 = scalar_lea.vmem [#allocation7], %s4854_s3  ;;  %p8531_p6 = scmp.lt.s32.totalorder %s6158_s10, 4 }
  0x8d   : > { %s344_s0 = sshll.u32 %s331_s7, 4  ;;  %s6168_s13 = smov [#allocation7]   ;;  %s345_s0 = int_to_ptr.vmem [resolvable:$true] %s344_s0 }
  0x8e   : > { %p6497_p3 = pnand %p8531_p6, %p6475_p8  ;;  %s6013_s14 = scalar_lea.vmem %s345_s0, 512 }
  0x8f   : > { %p6014_p10 = scmp.ne.s32.totalorder %s345_s0, %s6013_s14  ;;  %s6018_s25 = sshll.u32 %s6168_s13, 4  ;;  %s6019_s25 = int_to_ptr.vmem [resolvable:$false] %s6018_s25 }
  0x90   : > { %p6002_p12 = pneg %p6497_p3  ;;  %s6020_s22 = scalar_lea.vmem %s6019_s25, 1024 }
  0x91   : > { %s343_s2 = scalar_lea.hbm %s8530_s21, %s4858_s4  ;;  %p6021_p11 = scmp.lt.s32.totalorder %s345_s0, %s6019_s25 }
  0x92   : > { %p6016_p0 = pnand %p6014_p10, %p6002_p12  ;;  %p6022_p9 = scmp.lt.s32.totalorder %s6020_s22, %s6013_s14 }
  0x94   : > { %p6017_p2 = pneg %p6016_p0  ;;  %p6023_p5 = por %p6022_p9, %p6021_p11 }
  0x96   : > { %p6024_p1 = pnand %p6023_p5, %p6017_p2 }
  0x98   : > { %6027 = shalt.err (!%p6024_p1)
}
  0x99   : > { %5226 = dma.hbm_to_vmem [thread:$0]  (!%p6497_p3), %s343_s2, 512, %s345_s0, %s6374_s17, %s8521_s5, %s8521_s5, %s8520_s16  }
  0x9a   : > { %356 = sbr.rel (%p6292_p4) target bundleno = 955 (0x3bb), region = 44 }
  0x9f   : > { %s358_s18 = sand.u32 1, %s6134_s28  }
  0xa0   : > { %s4860_s3 = sshll.u32 %s358_s18, 5  ;;  %s359_s1 = scalar_lea.sflag [#allocation3], %s358_s18 }
  0xa1   : > { %s6512_s4 = scalar_lea.vmem [#allocation2], %s4860_s3 }
  0xa2   : > { %6085 = dma.done.wait (%p6419_p7), %s359_s1, 512  }
  0xa3   : > { %6087 = vsyncadd (%p6419_p7), %s359_s1, 4294966784  ;;  %s8534_s24 = sld [smem:[#allocation22_spill]]  ;;  %s367_s0 = sand.u32 1, %s6286_s11  }
  0xa4   : > { %s368_s5 = scalar_lea.sflag [#allocation6], %s367_s0 }
  0xa9   : > { %s369_s17 = sand.u32 1, %s8534_s24  }
  0xaa   : > { %s6522_s16 = sshll.u32 %s369_s17, 8 }
  0xab   : > { %s6525_s21 = scalar_lea.vmem [#allocation5], %s6522_s16 }
  0xac   : > { %6089 = dma.done.wait (%p6347_p13), %s368_s5, 4096  }
  0xad   : > { %6091 = vsyncadd (%p6347_p13), %s368_s5, 4294963200  ;;  %s8536_s12 = sld [smem:[#allocation20_spill]]  ;;  %p8537_p4 = scmp.ne.s32.totalorder %s8529_s6, 0 }
  0xb3   : > { %s378_s2 = sand.u32 1, %s8536_s12  }
  0xb4   : > { %s4862_s7 = sshll.u32 %s378_s2, 5 }
  0xb5   : > { %s6532_s15 = scalar_lea.vmem [#allocation7], %s4862_s7 }
  0xb6   : > { %6093 = dma.done.wait (%p8537_p4), %s368_s5, 512  }
  0xb7   : > { %6095 = vsyncadd (%p8537_p4), %s368_s5, 4294966784  ;;  %p8538_p7 = scmp.eq.s32.totalorder %s6286_s11, 0 }
  0xb9   : > { %6097 = dma.done.wait (%p8538_p7), [#allocation9], 32768   ;;  %p8539_p8 = pmov %p8538_p7 }
  0xba   : > { %s8540_s14 = sld [smem:[#allocation23_spill]]  ;;  %v5366_v0 = vld [vmem:[#allocation8 + $0x74] ss:$8 sps:$4 sm:$0xff]   ;;  %v5370_v2 = vld [vmem:[#allocation8 + $0x70] ss:$8 sps:$4 sm:$0xff]   ;;  %v469_v49 = vld [vmem:[%s6512_s4] sm:$0xff] }
  0xbb   : > { %6099 = vsyncadd (%p8539_p8), [#allocation9], 4294934528  ;;  %v5368_v1 = vld [vmem:[#allocation8 + $0x174] ss:$8 sps:$4 sm:$0xff]   ;;  %1739 = vmatprep.subr.bf16.mxu0 %v5366_v0  ;;  %v5371_v3 = vld [vmem:[#allocation8 + $0x170] ss:$8 sps:$4 sm:$0xff]  }
  0xbc   : > { %1852 = vmatprep.subr.bf16.mxu1 %v5368_v1  ;;  %v5372_v4 = vld [vmem:[#allocation8 + $0x64] ss:$8 sps:$4 sm:$0xff]   ;;  %1740 = vmatpush1.bf16.msra.mxu0 %v5370_v2  ;;  %v5376_v6 = vld [vmem:[#allocation8 + $0x60] ss:$8 sps:$4 sm:$0xff]   ;;  %v5378_v8 = vld [vmem:[#allocation8 + $0x54] ss:$8 sps:$4 sm:$0xff]  }
  0xbd   : > { %1853 = vmatpush1.bf16.msra.mxu1 %v5371_v3  ;;  %v5374_v5 = vld [vmem:[#allocation8 + $0x164] ss:$8 sps:$4 sm:$0xff]   ;;  %1741 = vmatprep.subr.bf16.mxu0 %v5372_v4  ;;  %v5377_v7 = vld [vmem:[#allocation8 + $0x160] ss:$8 sps:$4 sm:$0xff]   ;;  %v5380_v9 = vld [vmem:[#allocation8 + $0x154] ss:$8 sps:$4 sm:$0xff]  }
  0xbe   : > { %1854 = vmatprep.subr.bf16.mxu1 %v5374_v5  ;;  %v5382_v10 = vld [vmem:[#allocation8 + $0x50] ss:$8 sps:$4 sm:$0xff]   ;;  %v5384_v12 = vld [vmem:[#allocation8 + $0x44] ss:$8 sps:$4 sm:$0xff]   ;;  %v5388_v14 = vld [vmem:[#allocation8 + $0x40] ss:$8 sps:$4 sm:$0xff]  }
  0xbf   : > { %v5383_v11 = vld [vmem:[#allocation8 + $0x150] ss:$8 sps:$4 sm:$0xff]   ;;  %v5386_v13 = vld [vmem:[#allocation8 + $0x144] ss:$8 sps:$4 sm:$0xff]   ;;  %v5389_v15 = vld [vmem:[#allocation8 + $0x140] ss:$8 sps:$4 sm:$0xff]  }
  0xc0   : > { %p477_p1 = scmp.gt.s32.totalorder %s8540_s14, 0  ;;  %1742 = vmatpush1.bf16.msra.mxu0 %v5376_v6  ;;  %v5390_v16 = vld [vmem:[#allocation8 + $0x34] ss:$8 sps:$4 sm:$0xff]   ;;  %v5394_v18 = vld [vmem:[#allocation8 + $0x30] ss:$8 sps:$4 sm:$0xff]   ;;  %v470_v52 = vld [vmem:[%s6512_s4 + $0x8] sm:$0xff] }
  0xc1   : > { %1855 = vmatpush1.bf16.msra.mxu1 %v5377_v7  ;;  %1743 = vmatprep.subr.bf16.mxu0 %v5378_v8  ;;  %v5392_v17 = vld [vmem:[#allocation8 + $0x134] ss:$8 sps:$4 sm:$0xff]   ;;  %v5395_v19 = vld [vmem:[#allocation8 + $0x130] ss:$8 sps:$4 sm:$0xff]   ;;  %v5396_v20 = vld [vmem:[#allocation8 + $0x24] ss:$8 sps:$4 sm:$0xff]  }
  0xc2   : > { %s478_s13 = scalar_select %p477_p1, 1, 0  ;;  %1856 = vmatprep.subr.bf16.mxu1 %v5380_v9  ;;  %v5398_v21 = vld [vmem:[#allocation8 + $0x124] ss:$8 sps:$4 sm:$0xff]   ;;  %v5400_v22 = vld [vmem:[#allocation8 + $0x20] ss:$8 sps:$4 sm:$0xff]  }
  0xc3   : > { %v5401_v23 = vld [vmem:[#allocation8 + $0x120] ss:$8 sps:$4 sm:$0xff]   ;;  %v5402_v24 = vld [vmem:[#allocation8 + $0x14] ss:$8 sps:$4 sm:$0xff]   ;;  %v5406_v26 = vld [vmem:[#allocation8 + $0x10] ss:$8 sps:$4 sm:$0xff]  }
  0xc4   : > { %s6543_s11 = scvt.s32.f32 %s478_s13  ;;  %1744 = vmatpush1.bf16.msra.mxu0 %v5382_v10  ;;  %v5404_v25 = vld [vmem:[#allocation8 + $0x114] ss:$8 sps:$4 sm:$0xff]   ;;  %v5407_v27 = vld [vmem:[#allocation8 + $0x110] ss:$8 sps:$4 sm:$0xff]   ;;  %v5408_v28 = vld [vmem:[#allocation8 + $0x4] ss:$8 sps:$4 sm:$0xff]  }
  0xc5   : > { %1857 = vmatpush1.bf16.msra.mxu1 %v5383_v11  ;;  %1745 = vmatprep.subr.bf16.mxu0 %v5384_v12  ;;  %v5410_v29 = vld [vmem:[#allocation8 + $0x104] ss:$8 sps:$4 sm:$0xff]   ;;  %v5412_v30 = vld [vmem:[#allocation8] ss:$8 sps:$4 sm:$0xff]   ;;  %v5414_v32 = vld [vmem:[#allocation8 + $0xf4] ss:$8 sps:$4 sm:$0xff]  }
  0xc6   : > { %s482_s6 = sshrl.u32 %s6543_s11, 16  ;;  %1858 = vmatprep.subr.bf16.mxu1 %v5386_v13  ;;  %p481_p13 = scmp.ne.f32.partialorder %s6543_s11, %s6543_s11  ;;  %v5413_v31 = vld [vmem:[#allocation8 + $0x100] ss:$8 sps:$4 sm:$0xff]   ;;  %v5416_v33 = vld [vmem:[#allocation8 + $0x1f4] ss:$8 sps:$4 sm:$0xff]   ;;  %vm8440_vm0 = vcmask 1040384  }
  0xc7   : > { %s483_s25 = sand.u32 1, %s482_s6  ;;  %v5418_v34 = vld [vmem:[#allocation8 + $0xf0] ss:$8 sps:$4 sm:$0xff]   ;;  %v5420_v36 = vld [vmem:[#allocation8 + $0xe4] ss:$8 sps:$4 sm:$0xff]   ;;  %p498_p6 = scmp.lt.s32.totalorder %s8540_s14, 1 }
  0xc8   : > { %1746 = vmatpush1.bf16.msra.mxu0 %v5388_v14  ;;  %s484_s22 = sadd.s32 32767, %s483_s25  ;;  %v5419_v35 = vld [vmem:[#allocation8 + $0x1f0] ss:$8 sps:$4 sm:$0xff]   ;;  %v5422_v37 = vld [vmem:[#allocation8 + $0x1e4] ss:$8 sps:$4 sm:$0xff]   ;;  %vm8439_vm2 = vcmask 1046528  }
  0xc9   : > { %1859 = vmatpush1.bf16.msra.mxu1 %v5389_v15  ;;  %1747 = vmatprep.subr.bf16.mxu0 %v5390_v16  ;;  %s485_s20 = sadd.s32 %s484_s22, %s6543_s11  ;;  %v5424_v38 = vld [vmem:[#allocation8 + $0xe0] ss:$8 sps:$4 sm:$0xff]   ;;  %v5426_v40 = vld [vmem:[#allocation8 + $0xd4] ss:$8 sps:$4 sm:$0xff]   ;;  %v5430_v42 = vld [vmem:[#allocation8 + $0xd0] ss:$8 sps:$4 sm:$0xff]  }
  0xca   : > { %1860 = vmatprep.subr.bf16.mxu1 %v5392_v17  ;;  %s486_s18 = sand.u32 4294901760, %s485_s20  ;;  %v5425_v39 = vld [vmem:[#allocation8 + $0x1e0] ss:$8 sps:$4 sm:$0xff]   ;;  %v5428_v41 = vld [vmem:[#allocation8 + $0x1d4] ss:$8 sps:$4 sm:$0xff]   ;;  %vm8437_vm3 = vcmask 523264  }
  0xcb   : > { %s8788_s18 = smov (%p481_p13, %s486_s18), 2143289344  ;;  %v5431_v43 = vld [vmem:[#allocation8 + $0x1d0] ss:$8 sps:$4 sm:$0xff]   ;;  %v5432_v44 = vld [vmem:[#allocation8 + $0xc4] ss:$8 sps:$4 sm:$0xff]   ;;  %s8543_s22 = sld [smem:[#allocation80_spill]] }
  0xcc   : > { %1748 = vmatpush1.bf16.msra.mxu0 %v5394_v18  ;;  %s489_s3 = sshrl.u32 %s8788_s18, 16  ;;  %v5434_v46 = vld [vmem:[#allocation8 + $0x1c4] ss:$8 sps:$4 sm:$0xff]   ;;  %v5436_v47 = vld [vmem:[#allocation8 + $0xc0] ss:$8 sps:$4 sm:$0xff]   ;;  %v471_v50 = vld [vmem:[%s6512_s4 + $0x10] sm:$0xff] }
  0xcd   : > { %1861 = vmatpush1.bf16.msra.mxu1 %v5395_v19  ;;  %1749 = vmatprep.subr.bf16.mxu0 %v5396_v20  ;;  %s490_s1 = sshll.u32 %s489_s3, 16  ;;  %v5437_v48 = vld [vmem:[#allocation8 + $0x1c0] ss:$8 sps:$4 sm:$0xff]   ;;  %v472_v53 = vld [vmem:[%s6512_s4 + $0x18] sm:$0xff]  ;;  %v5444_v63 = vld [vmem:[#allocation8 + $0xa4] ss:$8 sps:$4 sm:$0xff]  }
  0xce   : > { %1862 = vmatprep.subr.bf16.mxu1 %v5398_v21  ;;  %s491_s9 = sor.u32 %s490_s1, %s489_s3  ;;  %v5438_v54 = vld [vmem:[#allocation8 + $0xb4] ss:$8 sps:$4 sm:$0xff]   ;;  %v5442_v61 = vld [vmem:[#allocation8 + $0xb0] ss:$8 sps:$4 sm:$0xff]   ;;  %v5446_v0 = vld [vmem:[#allocation8 + $0x1a4] ss:$8 sps:$4 sm:$0xff]  }
  0xcf   : > { %v492_v45 = vstv %s491_s9  ;;  %v5440_v58 = vld [vmem:[#allocation8 + $0x1b4] ss:$8 sps:$4 sm:$0xff]   ;;  %v5443_v62 = vld [vmem:[#allocation8 + $0x1b0] ss:$8 sps:$4 sm:$0xff]   ;;  %v5448_v1 = vld [vmem:[#allocation8 + $0xa0] ss:$8 sps:$4 sm:$0xff]  }
  0xd0   : > { %1750 = vmatpush1.bf16.msra.mxu0 %v5400_v22  ;;  %v494_v51 = vmul.bf16 %v492_v45, %v469_v49  ;;  %v496_v55 = vmul.bf16 %v492_v45, %v471_v50  ;;  %v495_v56 = vmul.bf16 %v492_v45, %v470_v52  ;;  %v497_v57 = vmul.bf16 %v492_v45, %v472_v53  ;;  %v5449_v2 = vld [vmem:[#allocation8 + $0x1a0] ss:$8 sps:$4 sm:$0xff]   ;;  %v5450_v3 = vld [vmem:[#allocation8 + $0x94] ss:$8 sps:$4 sm:$0xff]   ;;  %v5454_v5 = vld [vmem:[#allocation8 + $0x90] ss:$8 sps:$4 sm:$0xff]  }
  0xd1   : > { %1863 = vmatpush1.bf16.msra.mxu1 %v5401_v23  ;;  %1751 = vmatprep.subr.bf16.mxu0 %v5402_v24  ;;  %v5452_v4 = vld [vmem:[#allocation8 + $0x194] ss:$8 sps:$4 sm:$0xff]   ;;  %v5455_v6 = vld [vmem:[#allocation8 + $0x190] ss:$8 sps:$4 sm:$0xff]   ;;  %v5456_v7 = vld [vmem:[#allocation8 + $0x84] ss:$8 sps:$4 sm:$0xff]   ;;  %s8544_s20 = smov %s8543_s22 }
  0xd2   : > { %1864 = vmatprep.subr.bf16.mxu1 %v5404_v25  ;;  %v4867_v59 = vcombine.high %v494_v51, %v496_v55  ;;  %v4869_v60 = vcombine.high %v495_v56, %v497_v57  ;;  %v5458_v8 = vld [vmem:[#allocation8 + $0x184] ss:$8 sps:$4 sm:$0xff]   ;;  %v5460_v9 = vld [vmem:[#allocation8 + $0x80] ss:$8 sps:$4 sm:$0xff]   ;;  %v5464_v11 = vld [vmem:[#allocation8 + $0x274] ss:$8 sps:$4 sm:$0xff]   ;;  %v4866_v14 = vcombine.low %v494_v51, %v496_v55  ;;  %v4868_v15 = vcombine.low %v495_v56, %v497_v57 }
  0xd3   : > { %v5461_v10 = vld [vmem:[#allocation8 + $0x180] ss:$8 sps:$4 sm:$0xff]   ;;  %v5467_v12 = vld [vmem:[#allocation8 + $0x374] ss:$8 sps:$4 sm:$0xff]   ;;  %v5462_v13 = vld [vmem:[#allocation8 + $0x270] ss:$8 sps:$4 sm:$0xff]  }
  0xd4   : > { %1752 = vmatpush1.bf16.msra.mxu0 %v5406_v26  ;;  %1771 = vmatprep.mubr.bf16.mxu0 %v4867_v59  ;;  %v5465_v16 = vld [vmem:[#allocation8 + $0x370] ss:$8 sps:$4 sm:$0xff]   ;;  %v5470_v17 = vld [vmem:[#allocation8 + $0x264] ss:$8 sps:$4 sm:$0xff]   ;;  %v5468_v21 = vld [vmem:[#allocation8 + $0x260] ss:$8 sps:$4 sm:$0xff]  }
  0xd5   : > { %1865 = vmatpush1.bf16.msra.mxu1 %v5407_v27  ;;  %1753 = vmatprep.subr.bf16.mxu0 %v5408_v28  ;;  %v5473_v18 = vld [vmem:[#allocation8 + $0x364] ss:$8 sps:$4 sm:$0xff]   ;;  %v5471_v22 = vld [vmem:[#allocation8 + $0x360] ss:$8 sps:$4 sm:$0xff]   ;;  %v5482_v23 = vld [vmem:[#allocation8 + $0x254] ss:$8 sps:$4 sm:$0xff]  }
  0xd6   : > { %1866 = vmatprep.subr.bf16.mxu1 %v5410_v29  ;;  %1884 = vmatprep.mubr.bf16.mxu1 %v4869_v60  ;;  %v6554_v19 = vld [vmem:[%s6525_s21 + $0x4] ss:$16 sps:$4 sm:$0xff]   ;;  %v6557_v20 = vld [vmem:[%s6525_s21 + $0xc] ss:$16 sps:$4 sm:$0xff]   ;;  %v6560_v24 = vld [vmem:[%s6525_s21] ss:$16 sps:$4 sm:$0xff]  }
  0xd7   : > { %v5485_v25 = vld [vmem:[#allocation8 + $0x354] ss:$8 sps:$4 sm:$0xff]   ;;  %v6565_v26 = vld [vmem:[%s6525_s21 + $0x8] ss:$16 sps:$4 sm:$0xff]   ;;  %v5488_v29 = vld [vmem:[#allocation8 + $0x244] ss:$8 sps:$4 sm:$0xff]  }
  0xd8   : > { %1754 = vmatpush1.bf16.msra.mxu0 %v5412_v30  ;;  %v5480_v27 = vld [vmem:[#allocation8 + $0x250] ss:$8 sps:$4 sm:$0xff]   ;;  %v5491_v30 = vld [vmem:[#allocation8 + $0x344] ss:$8 sps:$4 sm:$0xff]   ;;  %v5504_v45 = vld [vmem:[#allocation8 + $0x220] ss:$8 sps:$4 sm:$0xff]  }
  0xd9   : > { %1867 = vmatpush1.bf16.msra.mxu1 %v5413_v31  ;;  %1755 = vmatprep.subr.bf16.mxu0 %v5414_v32  ;;  %v5483_v28 = vld [vmem:[#allocation8 + $0x350] ss:$8 sps:$4 sm:$0xff]   ;;  %v6568_v31 = vld [vmem:[%s6525_s21 + $0x24] ss:$16 sps:$4 sm:$0xff]   ;;  %v6571_v32 = vld [vmem:[%s6525_s21 + $0x2c] ss:$16 sps:$4 sm:$0xff]  }
  0xda   : > { %1868 = vmatprep.subr.bf16.mxu1 %v5416_v33  ;;  %v5486_v33 = vld [vmem:[#allocation8 + $0x240] ss:$8 sps:$4 sm:$0xff]   ;;  %v5521_v49 = vld [vmem:[#allocation8 + $0x314] ss:$8 sps:$4 sm:$0xff]   ;;  %v5516_v51 = vld [vmem:[#allocation8 + $0x210] ss:$8 sps:$4 sm:$0xff]  }
  0xdb   : > { %v6597_v50 = vld [vmem:[%s6525_s21 + $0x48] ss:$16 sps:$4 sm:$0xff]   ;;  %v5524_v53 = vld [vmem:[#allocation8 + $0x204] ss:$8 sps:$4 sm:$0xff]   ;;  %v5536_v59 = vld [vmem:[#allocation8 + $0x2f4] ss:$8 sps:$4 sm:$0xff]  }
  0xdc   : > { %1756 = vmatpush2.bf16.msra.mxu0 %v5418_v34  ;;  %v5489_v34 = vld [vmem:[#allocation8 + $0x340] ss:$8 sps:$4 sm:$0xff]   ;;  %v5519_v52 = vld [vmem:[#allocation8 + $0x310] ss:$8 sps:$4 sm:$0xff]   ;;  %v6600_v55 = vld [vmem:[%s6525_s21 + $0x64] ss:$16 sps:$4 sm:$0xff]  }
  0xdd   : > { %1869 = vmatpush2.bf16.msra.mxu1 %v5419_v35  ;;  %1757 = vmatprep.subr.bf16.mxu0 %v5420_v36  ;;  %v5500_v35 = vld [vmem:[#allocation8 + $0x234] ss:$8 sps:$4 sm:$0xff]   ;;  %v6576_v36 = vld [vmem:[%s6525_s21 + $0x20] ss:$16 sps:$4 sm:$0xff]   ;;  %s499_s4 = scalar_select %p498_p6, 1, 0 }
  0xde   : > { %1870 = vmatprep.subr.bf16.mxu1 %v5422_v37  ;;  %v5503_v37 = vld [vmem:[#allocation8 + $0x334] ss:$8 sps:$4 sm:$0xff]   ;;  %v5522_v57 = vld [vmem:[#allocation8 + $0x200] ss:$8 sps:$4 sm:$0xff]   ;;  %s6169_s18 = smov 2   ;;  %s6170_s3 = smov 1  }
  0xdf   : > { %v6603_v56 = vld [vmem:[%s6525_s21 + $0x6c] ss:$16 sps:$4 sm:$0xff]   ;;  %v6608_v60 = vld [vmem:[%s6525_s21 + $0x60] ss:$16 sps:$4 sm:$0xff]   ;;  %s6762_s0 = scvt.s32.f32 %s499_s4  ;;  %s6171_s1 = smov 127  }
  0xe0   : > { %1758 = vmatpush2.bf16.msra.mxu0 %v5424_v38  ;;  %v6581_v38 = vld [vmem:[%s6525_s21 + $0x28] ss:$16 sps:$4 sm:$0xff]   ;;  %s6172_s9 = smov 126  }
  0xe1   : > { %1871 = vmatpush2.bf16.msra.mxu1 %v5425_v39  ;;  %1759 = vmatprep.subr.bf16.mxu0 %v5426_v40  ;;  %v5498_v39 = vld [vmem:[#allocation8 + $0x230] ss:$8 sps:$4 sm:$0xff]   ;;  %s503_s5 = sshrl.u32 %s6762_s0, 16  ;;  %p502_p3 = scmp.ne.f32.partialorder %s6762_s0, %s6762_s0 }
  0xe2   : > { %1872 = vmatprep.subr.bf16.mxu1 %v5428_v41  ;;  %v5501_v40 = vld [vmem:[#allocation8 + $0x330] ss:$8 sps:$4 sm:$0xff]   ;;  %v5506_v41 = vld [vmem:[#allocation8 + $0x224] ss:$8 sps:$4 sm:$0xff]   ;;  %s504_s12 = sand.u32 1, %s503_s5  ;;  %s7664_s5 = scalar_lea.vmem [#allocation11], %s6522_s16 }
  0xe3   : > { %s505_s2 = sadd.s32 32767, %s504_s12 }
  0xe4   : > { %1760 = vmatpush2.bf16.msra.mxu0 %v5430_v42  ;;  %v5509_v42 = vld [vmem:[#allocation8 + $0x324] ss:$8 sps:$4 sm:$0xff]   ;;  %s506_s7 = sadd.s32 %s505_s2, %s6762_s0  ;;  %s4634_s2 = scalar_lea.sflag [#allocation4], %s369_s17 }
  0xe5   : > { %1873 = vmatpush2.bf16.msra.mxu1 %v5431_v43  ;;  %1761 = vmatprep.subr.bf16.mxu0 %v5432_v44  ;;  %v6584_v43 = vld [vmem:[%s6525_s21 + $0x44] ss:$16 sps:$4 sm:$0xff]   ;;  %v6587_v44 = vld [vmem:[%s6525_s21 + $0x4c] ss:$16 sps:$4 sm:$0xff]   ;;  %s507_s13 = sand.u32 4294901760, %s506_s7 }
  0xe6   : > { %1874 = vmatprep.subr.bf16.mxu1 %v5434_v46  ;;  %v5507_v46 = vld [vmem:[#allocation8 + $0x320] ss:$8 sps:$4 sm:$0xff]   ;;  %s8790_s13 = smov (%p502_p3, %s507_s13), 2143289344 }
  0xe7   : > { %s510_s11 = sshrl.u32 %s8790_s13, 16 }
  0xe8   : > { %1762 = vmatpush2.bf16.msra.mxu0 %v5436_v47  ;;  %v5518_v47 = vld [vmem:[#allocation8 + $0x214] ss:$8 sps:$4 sm:$0xff]   ;;  %s511_s6 = sshll.u32 %s510_s11, 16 }
  0xe9   : > { %1875 = vmatpush2.bf16.msra.mxu1 %v5437_v48  ;;  %1763 = vmatprep.subr.bf16.mxu0 %v5438_v54  ;;  %v6592_v48 = vld [vmem:[%s6525_s21 + $0x40] ss:$16 sps:$4 sm:$0xff]   ;;  %v5527_v54 = vld [vmem:[#allocation8 + $0x304] ss:$8 sps:$4 sm:$0xff]   ;;  %s512_s25 = sor.u32 %s511_s6, %s510_s11 }
  0xea   : > { %1876 = vmatprep.subr.bf16.mxu1 %v5440_v58  ;;  %v5525_v58 = vld [vmem:[#allocation8 + $0x300] ss:$8 sps:$4 sm:$0xff]  }
  0xec   : > { %1764 = vmatpush2.bf16.msra.mxu0 %v5442_v61  ;;  %v5539_v61 = vld [vmem:[#allocation8 + $0x3f4] ss:$8 sps:$4 sm:$0xff]  }
  0xed   : > { %1877 = vmatpush2.bf16.msra.mxu1 %v5443_v62  ;;  %1765 = vmatprep.subr.bf16.mxu0 %v5444_v63  ;;  %v6613_v62 = vld [vmem:[%s6525_s21 + $0x68] ss:$16 sps:$4 sm:$0xff]  }
  0xee   : > { %1878 = vmatprep.subr.bf16.mxu1 %v5446_v0  ;;  %v5534_v63 = vld [vmem:[#allocation8 + $0x2f0] ss:$8 sps:$4 sm:$0xff]  }
  0xef   : > { %v5537_v0 = vld [vmem:[#allocation8 + $0x3f0] ss:$8 sps:$4 sm:$0xff]  }
  0xf0   : > { %1766 = vmatpush2.bf16.msra.mxu0 %v5448_v1  ;;  %v5542_v1 = vld [vmem:[#allocation8 + $0x2e4] ss:$8 sps:$4 sm:$0xff]  }
  0xf1   : > { %1879 = vmatpush2.bf16.msra.mxu1 %v5449_v2  ;;  %1767 = vmatprep.subr.bf16.mxu0 %v5450_v3  ;;  %v5545_v2 = vld [vmem:[#allocation8 + $0x3e4] ss:$8 sps:$4 sm:$0xff]  }
  0xf2   : > { %1880 = vmatprep.subr.bf16.mxu1 %v5452_v4  ;;  %v6616_v3 = vld [vmem:[%s6525_s21 + $0x84] ss:$16 sps:$4 sm:$0xff]   ;;  %v6619_v4 = vld [vmem:[%s6525_s21 + $0x8c] ss:$16 sps:$4 sm:$0xff]  }
  0xf4   : > { %1768 = vmatpush2.bf16.msra.mxu0 %v5454_v5  ;;  %v5540_v5 = vld [vmem:[#allocation8 + $0x2e0] ss:$8 sps:$4 sm:$0xff]  }
  0xf5   : > { %1881 = vmatpush2.bf16.msra.mxu1 %v5455_v6  ;;  %1769 = vmatprep.subr.bf16.mxu0 %v5456_v7  ;;  %v5543_v6 = vld [vmem:[#allocation8 + $0x3e0] ss:$8 sps:$4 sm:$0xff]   ;;  %v5554_v7 = vld [vmem:[#allocation8 + $0x2d4] ss:$8 sps:$4 sm:$0xff]  }
  0xf6   : > { %1882 = vmatprep.subr.bf16.mxu1 %v5458_v8  ;;  %v5557_v8 = vld [vmem:[#allocation8 + $0x3d4] ss:$8 sps:$4 sm:$0xff]  }
  0xf8   : > { %1770 = vmatpush2.bf16.msra.mxu0 %v5460_v9  ;;  %v6626_v9 = vld [vmem:[%s6525_s21 + $0x80] ss:$16 sps:$4 sm:$0xff]  }
  0xf9   : > { %1883 = vmatpush2.bf16.msra.mxu1 %v5461_v10  ;;  %1965 = vmatprep.subr.bf16.mxu0 %v5464_v11  ;;  %v6629_v10 = vld [vmem:[%s6525_s21 + $0x88] ss:$16 sps:$4 sm:$0xff]  }
  0xfa   : > { %2078 = vmatprep.subr.bf16.mxu1 %v5467_v12  ;;  %v5552_v11 = vld [vmem:[#allocation8 + $0x2d0] ss:$8 sps:$4 sm:$0xff]  }
  0xfb   : > { %1772 = vmatmul.mubr.bf16.vlgmr.msra.gmra.mxu0 %v4866_v14  ;;  %v5555_v12 = vld [vmem:[#allocation8 + $0x3d0] ss:$8 sps:$4 sm:$0xff]   ;;  %v5563_v14 = vld [vmem:[#allocation8 + $0x3c4] ss:$8 sps:$4 sm:$0xff]  }
  0xfc   : > { %1885 = vmatmul.mubr.bf16.vlgmr.msra.gmra.mxu1 %v4868_v15  ;;  %1966 = vmatpush1.bf16.msra.mxu0 %v5462_v13  ;;  %v5560_v13 = vld [vmem:[#allocation8 + $0x2c4] ss:$8 sps:$4 sm:$0xff]  }
  0xfd   : > { %2079 = vmatpush1.bf16.msra.mxu1 %v5465_v16  ;;  %1967 = vmatprep.subr.bf16.mxu0 %v5470_v17  ;;  %v6632_v15 = vld [vmem:[%s6525_s21 + $0xa4] ss:$16 sps:$4 sm:$0xff]   ;;  %v6635_v16 = vld [vmem:[%s6525_s21 + $0xac] ss:$16 sps:$4 sm:$0xff]   ;;  %v5558_v17 = vld [vmem:[#allocation8 + $0x2c0] ss:$8 sps:$4 sm:$0xff]  }
  0xfe   : > { %2080 = vmatprep.subr.bf16.mxu1 %v5473_v18  ;;  %1781 = vmatprep.mubr.bf16.mxu0 %v6554_v19  ;;  %v5561_v18 = vld [vmem:[#allocation8 + $0x3c0] ss:$8 sps:$4 sm:$0xff]  }
  0xff   : > { %1894 = vmatprep.mubr.bf16.mxu1 %v6557_v20 }
 0x100   : > { %1968 = vmatpush1.bf16.msra.mxu0 %v5468_v21  ;;  %v5572_v21 = vld [vmem:[#allocation8 + $0x2b4] ss:$8 sps:$4 sm:$0xff]  }
 0x101   : > { %2081 = vmatpush1.bf16.msra.mxu1 %v5471_v22  ;;  %1969 = vmatprep.subr.bf16.mxu0 %v5482_v23  ;;  %v5575_v22 = vld [vmem:[#allocation8 + $0x3b4] ss:$8 sps:$4 sm:$0xff]   ;;  %v6642_v23 = vld [vmem:[%s6525_s21 + $0xa0] ss:$16 sps:$4 sm:$0xff]  }
 0x102   : > { %2082 = vmatprep.subr.bf16.mxu1 %v5485_v25  ;;  %v6645_v25 = vld [vmem:[%s6525_s21 + $0xa8] ss:$16 sps:$4 sm:$0xff]  }
 0x103   : > { %1782 = vmatmul.mubr.bf16.gmra.mxu0 %v6560_v24 }
 0x104   : > { %1895 = vmatmul.mubr.bf16.gmra.mxu1 %v6565_v26  ;;  %1970 = vmatpush1.bf16.msra.mxu0 %v5480_v27  ;;  %v5570_v27 = vld [vmem:[#allocation8 + $0x2b0] ss:$8 sps:$4 sm:$0xff]  }
 0x105   : > { %2083 = vmatpush1.bf16.msra.mxu1 %v5483_v28  ;;  %1971 = vmatprep.subr.bf16.mxu0 %v5488_v29  ;;  %v5573_v28 = vld [vmem:[#allocation8 + $0x3b0] ss:$8 sps:$4 sm:$0xff]   ;;  %v5578_v29 = vld [vmem:[#allocation8 + $0x2a4] ss:$8 sps:$4 sm:$0xff]  }
 0x106   : > { %2084 = vmatprep.subr.bf16.mxu1 %v5491_v30  ;;  %1791 = vmatprep.mubr.bf16.mxu0 %v6568_v31  ;;  %v5581_v30 = vld [vmem:[#allocation8 + $0x3a4] ss:$8 sps:$4 sm:$0xff]  }
 0x107   : > { %1904 = vmatprep.mubr.bf16.mxu1 %v6571_v32 }
 0x108   : > { %1972 = vmatpush1.bf16.msra.mxu0 %v5486_v33  ;;  %v6648_v33 = vld [vmem:[%s6525_s21 + $0xc4] ss:$16 sps:$4 sm:$0xff]  }
 0x109   : > { %2085 = vmatpush1.bf16.msra.mxu1 %v5489_v34  ;;  %1973 = vmatprep.subr.bf16.mxu0 %v5500_v35  ;;  %v6651_v34 = vld [vmem:[%s6525_s21 + $0xcc] ss:$16 sps:$4 sm:$0xff]   ;;  %v5576_v35 = vld [vmem:[#allocation8 + $0x2a0] ss:$8 sps:$4 sm:$0xff]  }
 0x10a   : > { %2086 = vmatprep.subr.bf16.mxu1 %v5503_v37  ;;  %v5579_v37 = vld [vmem:[#allocation8 + $0x3a0] ss:$8 sps:$4 sm:$0xff]  }
 0x10b   : > { %1792 = vmatmul.mubr.bf16.gmra.mxu0 %v6576_v36 }
 0x10c   : > { %1905 = vmatmul.mubr.bf16.gmra.mxu1 %v6581_v38  ;;  %1974 = vmatpush1.bf16.msra.mxu0 %v5498_v39  ;;  %v5590_v39 = vld [vmem:[#allocation8 + $0x294] ss:$8 sps:$4 sm:$0xff]  }
 0x10d   : > { %2087 = vmatpush1.bf16.msra.mxu1 %v5501_v40  ;;  %1975 = vmatprep.subr.bf16.mxu0 %v5506_v41  ;;  %v5593_v40 = vld [vmem:[#allocation8 + $0x394] ss:$8 sps:$4 sm:$0xff]   ;;  %v6658_v41 = vld [vmem:[%s6525_s21 + $0xc0] ss:$16 sps:$4 sm:$0xff]  }
 0x10e   : > { %2088 = vmatprep.subr.bf16.mxu1 %v5509_v42  ;;  %1801 = vmatprep.mubr.bf16.mxu0 %v6584_v43  ;;  %v6661_v42 = vld [vmem:[%s6525_s21 + $0xc8] ss:$16 sps:$4 sm:$0xff]  }
 0x10f   : > { %1914 = vmatprep.mubr.bf16.mxu1 %v6587_v44 }
 0x110   : > { %1976 = vmatpush1.bf16.msra.mxu0 %v5504_v45  ;;  %v5588_v45 = vld [vmem:[#allocation8 + $0x290] ss:$8 sps:$4 sm:$0xff]  }
 0x111   : > { %2089 = vmatpush1.bf16.msra.mxu1 %v5507_v46  ;;  %1977 = vmatprep.subr.bf16.mxu0 %v5518_v47  ;;  %v5591_v46 = vld [vmem:[#allocation8 + $0x390] ss:$8 sps:$4 sm:$0xff]   ;;  %v5596_v47 = vld [vmem:[#allocation8 + $0x284] ss:$8 sps:$4 sm:$0xff]  }
 0x112   : > { %2090 = vmatprep.subr.bf16.mxu1 %v5521_v49  ;;  %v5599_v49 = vld [vmem:[#allocation8 + $0x384] ss:$8 sps:$4 sm:$0xff]  }
 0x113   : > { %1802 = vmatmul.mubr.bf16.gmra.mxu0 %v6592_v48 }
 0x114   : > { %1915 = vmatmul.mubr.bf16.gmra.mxu1 %v6597_v50  ;;  %1978 = vmatpush1.bf16.msra.mxu0 %v5516_v51  ;;  %v5594_v51 = vld [vmem:[#allocation8 + $0x280] ss:$8 sps:$4 sm:$0xff]  }
 0x115   : > { %2091 = vmatpush1.bf16.msra.mxu1 %v5519_v52  ;;  %1979 = vmatprep.subr.bf16.mxu0 %v5524_v53  ;;  %v5597_v52 = vld [vmem:[#allocation8 + $0x380] ss:$8 sps:$4 sm:$0xff]   ;;  %v5602_v53 = vld [vmem:[#allocation10 + $0x74] ss:$8 sps:$4 sm:$0xff]  }
 0x116   : > { %2092 = vmatprep.subr.bf16.mxu1 %v5527_v54  ;;  %1811 = vmatprep.mubr.bf16.mxu0 %v6600_v55  ;;  %v5605_v54 = vld [vmem:[#allocation10 + $0x174] ss:$8 sps:$4 sm:$0xff]  }
 0x117   : > { %1924 = vmatprep.mubr.bf16.mxu1 %v6603_v56 }
 0x118   : > { %1980 = vmatpush1.bf16.msra.mxu0 %v5522_v57  ;;  %v5600_v57 = vld [vmem:[#allocation10 + $0x70] ss:$8 sps:$4 sm:$0xff]  }
 0x119   : > { %2093 = vmatpush1.bf16.msra.mxu1 %v5525_v58  ;;  %1981 = vmatprep.subr.bf16.mxu0 %v5536_v59  ;;  %v5603_v58 = vld [vmem:[#allocation10 + $0x170] ss:$8 sps:$4 sm:$0xff]   ;;  %v5608_v59 = vld [vmem:[#allocation10 + $0x64] ss:$8 sps:$4 sm:$0xff]  }
 0x11a   : > { %2094 = vmatprep.subr.bf16.mxu1 %v5539_v61  ;;  %v5611_v61 = vld [vmem:[#allocation10 + $0x164] ss:$8 sps:$4 sm:$0xff]  }
 0x11b   : > { %1812 = vmatmul.mubr.bf16.gmra.mxu0 %v6608_v60 }
 0x11c   : > { %1925 = vmatmul.mubr.bf16.gmra.mxu1 %v6613_v62  ;;  %1982 = vmatpush2.bf16.msra.mxu0 %v5534_v63  ;;  %v5606_v63 = vld [vmem:[#allocation10 + $0x60] ss:$8 sps:$4 sm:$0xff]  }
 0x11d   : > { %2095 = vmatpush2.bf16.msra.mxu1 %v5537_v0  ;;  %1983 = vmatprep.subr.bf16.mxu0 %v5542_v1  ;;  %v5609_v0 = vld [vmem:[#allocation10 + $0x160] ss:$8 sps:$4 sm:$0xff]   ;;  %v5614_v1 = vld [vmem:[#allocation10 + $0x54] ss:$8 sps:$4 sm:$0xff]  }
 0x11e   : > { %2096 = vmatprep.subr.bf16.mxu1 %v5545_v2  ;;  %1821 = vmatprep.mubr.bf16.mxu0 %v6616_v3  ;;  %v5615_v2 = vld [vmem:[#allocation10 + $0x150] ss:$8 sps:$4 sm:$0xff]  }
 0x11f   : > { %1934 = vmatprep.mubr.bf16.mxu1 %v6619_v4 }
 0x120   : > { %1984 = vmatpush2.bf16.msra.mxu0 %v5540_v5  ;;  %v5620_v5 = vld [vmem:[#allocation10 + $0x44] ss:$8 sps:$4 sm:$0xff]  }
 0x121   : > { %2097 = vmatpush2.bf16.msra.mxu1 %v5543_v6  ;;  %1985 = vmatprep.subr.bf16.mxu0 %v5554_v7  ;;  %v5621_v6 = vld [vmem:[#allocation10 + $0x140] ss:$8 sps:$4 sm:$0xff]   ;;  %v5626_v7 = vld [vmem:[#allocation10 + $0x34] ss:$8 sps:$4 sm:$0xff]  }
 0x122   : > { %2098 = vmatprep.subr.bf16.mxu1 %v5557_v8  ;;  %v5627_v8 = vld [vmem:[#allocation10 + $0x130] ss:$8 sps:$4 sm:$0xff]  }
 0x123   : > { %1822 = vmatmul.mubr.bf16.gmra.mxu0 %v6626_v9 }
 0x124   : > { %1935 = vmatmul.mubr.bf16.gmra.mxu1 %v6629_v10  ;;  %1986 = vmatpush2.bf16.msra.mxu0 %v5552_v11  ;;  %v5632_v11 = vld [vmem:[#allocation10 + $0x24] ss:$8 sps:$4 sm:$0xff]  }
 0x125   : > { %2099 = vmatpush2.bf16.msra.mxu1 %v5555_v12  ;;  %1987 = vmatprep.subr.bf16.mxu0 %v5560_v13  ;;  %v5635_v12 = vld [vmem:[#allocation10 + $0x124] ss:$8 sps:$4 sm:$0xff]   ;;  %v5630_v13 = vld [vmem:[#allocation10 + $0x20] ss:$8 sps:$4 sm:$0xff]  }
 0x126   : > { %2100 = vmatprep.subr.bf16.mxu1 %v5563_v14  ;;  %1831 = vmatprep.mubr.bf16.mxu0 %v6632_v15  ;;  %v5633_v14 = vld [vmem:[#allocation10 + $0x120] ss:$8 sps:$4 sm:$0xff]  }
 0x127   : > { %1944 = vmatprep.mubr.bf16.mxu1 %v6635_v16 }
 0x128   : > { %1988 = vmatpush2.bf16.msra.mxu0 %v5558_v17  ;;  %v5638_v17 = vld [vmem:[#allocation10 + $0x14] ss:$8 sps:$4 sm:$0xff]  }
 0x129   : > { %2101 = vmatpush2.bf16.msra.mxu1 %v5561_v18  ;;  %1989 = vmatprep.subr.bf16.mxu0 %v5572_v21  ;;  %v5641_v18 = vld [vmem:[#allocation10 + $0x114] ss:$8 sps:$4 sm:$0xff]   ;;  %v5636_v21 = vld [vmem:[#allocation10 + $0x10] ss:$8 sps:$4 sm:$0xff]  }
 0x12a   : > { %2102 = vmatprep.subr.bf16.mxu1 %v5575_v22  ;;  %v5639_v22 = vld [vmem:[#allocation10 + $0x110] ss:$8 sps:$4 sm:$0xff]  }
 0x12b   : > { %1832 = vmatmul.mubr.bf16.gmra.mxu0 %v6642_v23 }
 0x12c   : > { %1945 = vmatmul.mubr.bf16.gmra.mxu1 %v6645_v25  ;;  %1990 = vmatpush2.bf16.msra.mxu0 %v5570_v27  ;;  %v5644_v27 = vld [vmem:[#allocation10 + $0x4] ss:$8 sps:$4 sm:$0xff]  }
 0x12d   : > { %2103 = vmatpush2.bf16.msra.mxu1 %v5573_v28  ;;  %1991 = vmatprep.subr.bf16.mxu0 %v5578_v29  ;;  %v5647_v28 = vld [vmem:[#allocation10 + $0x104] ss:$8 sps:$4 sm:$0xff]   ;;  %v5642_v29 = vld [vmem:[#allocation10] ss:$8 sps:$4 sm:$0xff]  }
 0x12e   : > { %2104 = vmatprep.subr.bf16.mxu1 %v5581_v30  ;;  %1841 = vmatprep.mubr.bf16.mxu0 %v6648_v33  ;;  %v5645_v30 = vld [vmem:[#allocation10 + $0x100] ss:$8 sps:$4 sm:$0xff]  }
 0x12f   : > { %1954 = vmatprep.mubr.bf16.mxu1 %v6651_v34 }
 0x130   : > { %1992 = vmatpush2.bf16.msra.mxu0 %v5576_v35  ;;  %v5650_v35 = vld [vmem:[#allocation10 + $0xf4] ss:$8 sps:$4 sm:$0xff]  }
 0x131   : > { %2105 = vmatpush2.bf16.msra.mxu1 %v5579_v37  ;;  %1993 = vmatprep.subr.bf16.mxu0 %v5590_v39  ;;  %v5653_v37 = vld [vmem:[#allocation10 + $0x1f4] ss:$8 sps:$4 sm:$0xff]   ;;  %v5648_v39 = vld [vmem:[#allocation10 + $0xf0] ss:$8 sps:$4 sm:$0xff]  }
 0x132   : > { %2106 = vmatprep.subr.bf16.mxu1 %v5593_v40  ;;  %v5651_v40 = vld [vmem:[#allocation10 + $0x1f0] ss:$8 sps:$4 sm:$0xff]  }
 0x133   : > { %1842 = vmatmul.mubr.bf16.gmra.mxu0 %v6658_v41 }
 0x134   : > { %1955 = vmatmul.mubr.bf16.gmra.mxu1 %v6661_v42  ;;  %1994 = vmatpush2.bf16.msra.mxu0 %v5588_v45  ;;  %v5656_v45 = vld [vmem:[#allocation10 + $0xe4] ss:$8 sps:$4 sm:$0xff]  }
 0x135   : > { %2107 = vmatpush2.bf16.msra.mxu1 %v5591_v46  ;;  %1995 = vmatprep.subr.bf16.mxu0 %v5596_v47  ;;  %v5659_v46 = vld [vmem:[#allocation10 + $0x1e4] ss:$8 sps:$4 sm:$0xff]   ;;  %v5654_v47 = vld [vmem:[#allocation10 + $0xe0] ss:$8 sps:$4 sm:$0xff]  }
 0x136   : > { %2108 = vmatprep.subr.bf16.mxu1 %v5599_v49  ;;  %1997 = vmatprep.mubr.bf16.mxu0 %v6554_v19  ;;  %v5617_v19 = vld [vmem:[#allocation10 + $0x154] ss:$8 sps:$4 sm:$0xff]   ;;  %v5657_v49 = vld [vmem:[#allocation10 + $0x1e0] ss:$8 sps:$4 sm:$0xff]  }
 0x137   : > { %2110 = vmatprep.mubr.bf16.mxu1 %v6557_v20  ;;  %v5612_v20 = vld [vmem:[#allocation10 + $0x50] ss:$8 sps:$4 sm:$0xff]  }
 0x138   : > { %1996 = vmatpush2.bf16.msra.mxu0 %v5594_v51  ;;  %v5662_v51 = vld [vmem:[#allocation10 + $0xd4] ss:$8 sps:$4 sm:$0xff]  }
 0x139   : > { %2109 = vmatpush2.bf16.msra.mxu1 %v5597_v52  ;;  %3620 = vmatprep.subr.bf16.mxu0 %v5602_v53  ;;  %v5665_v52 = vld [vmem:[#allocation10 + $0x1d4] ss:$8 sps:$4 sm:$0xff]   ;;  %v5660_v53 = vld [vmem:[#allocation10 + $0xd0] ss:$8 sps:$4 sm:$0xff]  }
 0x13a   : > { %3733 = vmatprep.subr.bf16.mxu1 %v5605_v54  ;;  %v5663_v54 = vld [vmem:[#allocation10 + $0x1d0] ss:$8 sps:$4 sm:$0xff]  }
 0x13b   : > { %1998 = vmatmul.mubr.bf16.vlgmr.msra.gmra.mxu0 %v6560_v24  ;;  %v5623_v24 = vld [vmem:[#allocation10 + $0x144] ss:$8 sps:$4 sm:$0xff]  }
 0x13c   : > { %2111 = vmatmul.mubr.bf16.vlgmr.msra.gmra.mxu1 %v6565_v26  ;;  %3621 = vmatpush1.bf16.msra.mxu0 %v5600_v57  ;;  %v5618_v26 = vld [vmem:[#allocation10 + $0x40] ss:$8 sps:$4 sm:$0xff]   ;;  %v5668_v57 = vld [vmem:[#allocation10 + $0xc4] ss:$8 sps:$4 sm:$0xff]  }
 0x13d   : > { %3734 = vmatpush1.bf16.msra.mxu1 %v5603_v58  ;;  %3622 = vmatprep.subr.bf16.mxu0 %v5608_v59  ;;  %v5671_v58 = vld [vmem:[#allocation10 + $0x1c4] ss:$8 sps:$4 sm:$0xff]   ;;  %v5666_v59 = vld [vmem:[#allocation10 + $0xc0] ss:$8 sps:$4 sm:$0xff]  }
 0x13e   : > { %3735 = vmatprep.subr.bf16.mxu1 %v5611_v61  ;;  %2007 = vmatprep.mubr.bf16.mxu0 %v6568_v31  ;;  %v5629_v31 = vld [vmem:[#allocation10 + $0x134] ss:$8 sps:$4 sm:$0xff]   ;;  %v5669_v61 = vld [vmem:[#allocation10 + $0x1c0] ss:$8 sps:$4 sm:$0xff]  }
 0x13f   : > { %2120 = vmatprep.mubr.bf16.mxu1 %v6571_v32  ;;  %v5624_v32 = vld [vmem:[#allocation10 + $0x30] ss:$8 sps:$4 sm:$0xff]  }
 0x140   : > { %3623 = vmatpush1.bf16.msra.mxu0 %v5606_v63  ;;  %v5674_v63 = vld [vmem:[#allocation10 + $0xb4] ss:$8 sps:$4 sm:$0xff]  }
 0x141   : > { %3736 = vmatpush1.bf16.msra.mxu1 %v5609_v0  ;;  %3624 = vmatprep.subr.bf16.mxu0 %v5614_v1  ;;  %v5677_v0 = vld [vmem:[#allocation10 + $0x1b4] ss:$8 sps:$4 sm:$0xff]   ;;  %v5672_v1 = vld [vmem:[#allocation10 + $0xb0] ss:$8 sps:$4 sm:$0xff]  }
 0x142   : > { %3737 = vmatprep.subr.bf16.mxu1 %v5617_v19  ;;  %v5675_v19 = vld [vmem:[#allocation10 + $0x1b0] ss:$8 sps:$4 sm:$0xff]  }
 0x143   : > { %2008 = vmatmul.mubr.bf16.gmra.mxu0 %v6576_v36 }
 0x144   : > { %2121 = vmatmul.mubr.bf16.gmra.mxu1 %v6581_v38  ;;  %3625 = vmatpush1.bf16.msra.mxu0 %v5612_v20  ;;  %v5680_v20 = vld [vmem:[#allocation10 + $0xa4] ss:$8 sps:$4 sm:$0xff]  }
 0x145   : > { %3738 = vmatpush1.bf16.msra.mxu1 %v5615_v2  ;;  %3626 = vmatprep.subr.bf16.mxu0 %v5620_v5  ;;  %v5683_v2 = vld [vmem:[#allocation10 + $0x1a4] ss:$8 sps:$4 sm:$0xff]  }
 0x146   : > { %3739 = vmatprep.subr.bf16.mxu1 %v5623_v24  ;;  %2017 = vmatprep.mubr.bf16.mxu0 %v6584_v43  ;;  %v6692_v5 = vld [vmem:[%s6525_s21 + $0xe4] ss:$16 sps:$4 sm:$0xff]   ;;  %v6695_v24 = vld [vmem:[%s6525_s21 + $0xec] ss:$16 sps:$4 sm:$0xff]  }
 0x147   : > { %2130 = vmatprep.mubr.bf16.mxu1 %v6587_v44 }
 0x148   : > { %3627 = vmatpush1.bf16.msra.mxu0 %v5618_v26  ;;  %v5678_v26 = vld [vmem:[#allocation10 + $0xa0] ss:$8 sps:$4 sm:$0xff]  }
 0x149   : > { %3740 = vmatpush1.bf16.msra.mxu1 %v5621_v6  ;;  %3628 = vmatprep.subr.bf16.mxu0 %v5626_v7  ;;  %v5681_v6 = vld [vmem:[#allocation10 + $0x1a0] ss:$8 sps:$4 sm:$0xff]   ;;  %v5692_v7 = vld [vmem:[#allocation10 + $0x94] ss:$8 sps:$4 sm:$0xff]  }
 0x14a   : > { %3741 = vmatprep.subr.bf16.mxu1 %v5629_v31  ;;  %v5695_v31 = vld [vmem:[#allocation10 + $0x194] ss:$8 sps:$4 sm:$0xff]  }
 0x14b   : > { %2018 = vmatmul.mubr.bf16.gmra.mxu0 %v6592_v48 }
 0x14c   : > { %2131 = vmatmul.mubr.bf16.gmra.mxu1 %v6597_v50  ;;  %3629 = vmatpush1.bf16.msra.mxu0 %v5624_v32  ;;  %v6702_v32 = vld [vmem:[%s6525_s21 + $0xe0] ss:$16 sps:$4 sm:$0xff]  }
 0x14d   : > { %3742 = vmatpush1.bf16.msra.mxu1 %v5627_v8  ;;  %3630 = vmatprep.subr.bf16.mxu0 %v5632_v11  ;;  %v6705_v8 = vld [vmem:[%s6525_s21 + $0xe8] ss:$16 sps:$4 sm:$0xff]  }
 0x14e   : > { %3743 = vmatprep.subr.bf16.mxu1 %v5635_v12  ;;  %2027 = vmatprep.mubr.bf16.mxu0 %v6600_v55  ;;  %v5690_v11 = vld [vmem:[#allocation10 + $0x90] ss:$8 sps:$4 sm:$0xff]  }
 0x14f   : > { %2140 = vmatprep.mubr.bf16.mxu1 %v6603_v56  ;;  %v5693_v12 = vld [vmem:[#allocation10 + $0x190] ss:$8 sps:$4 sm:$0xff]  }
 0x150   : > { %3631 = vmatpush1.bf16.msra.mxu0 %v5630_v13  ;;  %v5698_v13 = vld [vmem:[#allocation10 + $0x84] ss:$8 sps:$4 sm:$0xff]  }
 0x151   : > { %3744 = vmatpush1.bf16.msra.mxu1 %v5633_v14  ;;  %3632 = vmatprep.subr.bf16.mxu0 %v5638_v17  ;;  %v5701_v14 = vld [vmem:[#allocation10 + $0x184] ss:$8 sps:$4 sm:$0xff]   ;;  %v5696_v17 = vld [vmem:[#allocation10 + $0x80] ss:$8 sps:$4 sm:$0xff]  }
 0x152   : > { %3745 = vmatprep.subr.bf16.mxu1 %v5641_v18  ;;  %v5699_v18 = vld [vmem:[#allocation10 + $0x180] ss:$8 sps:$4 sm:$0xff]  }
 0x153   : > { %2028 = vmatmul.mubr.bf16.gmra.mxu0 %v6608_v60 }
 0x154   : > { %2141 = vmatmul.mubr.bf16.gmra.mxu1 %v6613_v62  ;;  %3633 = vmatpush1.bf16.msra.mxu0 %v5636_v21  ;;  %v5704_v21 = vld [vmem:[#allocation10 + $0x274] ss:$8 sps:$4 sm:$0xff]  }
 0x155   : > { %3746 = vmatpush1.bf16.msra.mxu1 %v5639_v22  ;;  %3634 = vmatprep.subr.bf16.mxu0 %v5644_v27  ;;  %v5707_v22 = vld [vmem:[#allocation10 + $0x374] ss:$8 sps:$4 sm:$0xff]  }
 0x156   : > { %3747 = vmatprep.subr.bf16.mxu1 %v5647_v28  ;;  %2037 = vmatprep.mubr.bf16.mxu0 %v6616_v3  ;;  %v5862_v27 = vld [vmem:[%s6525_s21 + $0x4] ss:$16 sps:$4 sm:$0xff]   ;;  %v5863_v28 = vld [vmem:[%s6525_s21 + $0xc] ss:$16 sps:$4 sm:$0xff]  }
 0x157   : > { %2150 = vmatprep.mubr.bf16.mxu1 %v6619_v4 }
 0x158   : > { %3635 = vmatpush1.bf16.msra.mxu0 %v5642_v29  ;;  %v5702_v29 = vld [vmem:[#allocation10 + $0x270] ss:$8 sps:$4 sm:$0xff]  }
 0x159   : > { %3748 = vmatpush1.bf16.msra.mxu1 %v5645_v30  ;;  %3636 = vmatprep.subr.bf16.mxu0 %v5650_v35  ;;  %v5705_v30 = vld [vmem:[#allocation10 + $0x370] ss:$8 sps:$4 sm:$0xff]   ;;  %v5710_v35 = vld [vmem:[#allocation10 + $0x264] ss:$8 sps:$4 sm:$0xff]  }
 0x15a   : > { %3749 = vmatprep.subr.bf16.mxu1 %v5653_v37  ;;  %v5713_v37 = vld [vmem:[#allocation10 + $0x364] ss:$8 sps:$4 sm:$0xff]  }
 0x15b   : > { %2038 = vmatmul.mubr.bf16.gmra.mxu0 %v6626_v9 }
 0x15c   : > { %2151 = vmatmul.mubr.bf16.gmra.mxu1 %v6629_v10  ;;  %3637 = vmatpush2.bf16.msra.mxu0 %v5648_v39  ;;  %v5864_v39 = vld [vmem:[%s6525_s21] ss:$16 sps:$4 sm:$0xff]  }
 0x15d   : > { %3750 = vmatpush2.bf16.msra.mxu1 %v5651_v40  ;;  %3638 = vmatprep.subr.bf16.mxu0 %v5656_v45  ;;  %v5865_v40 = vld [vmem:[%s6525_s21 + $0x8] ss:$16 sps:$4 sm:$0xff]  }
 0x15e   : > { %3751 = vmatprep.subr.bf16.mxu1 %v5659_v46  ;;  %2047 = vmatprep.mubr.bf16.mxu0 %v6632_v15  ;;  %v5708_v45 = vld [vmem:[#allocation10 + $0x260] ss:$8 sps:$4 sm:$0xff]  }
 0x15f   : > { %2160 = vmatprep.mubr.bf16.mxu1 %v6635_v16  ;;  %v5711_v46 = vld [vmem:[#allocation10 + $0x360] ss:$8 sps:$4 sm:$0xff]  }
 0x160   : > { %3639 = vmatpush2.bf16.msra.mxu0 %v5654_v47  ;;  %v5716_v47 = vld [vmem:[#allocation10 + $0x254] ss:$8 sps:$4 sm:$0xff]  }
 0x161   : > { %3752 = vmatpush2.bf16.msra.mxu1 %v5657_v49  ;;  %3640 = vmatprep.subr.bf16.mxu0 %v5662_v51  ;;  %v5719_v49 = vld [vmem:[#allocation10 + $0x354] ss:$8 sps:$4 sm:$0xff]  }
 0x162   : > { %3753 = vmatprep.subr.bf16.mxu1 %v5665_v52  ;;  %v6714_v51 = vld [vmem:[%s6525_s21 + $0x24] ss:$16 sps:$4 sm:$0xff]   ;;  %v6718_v52 = vld [vmem:[%s6525_s21 + $0x2c] ss:$16 sps:$4 sm:$0xff]  }
 0x163   : > { %2048 = vmatmul.mubr.bf16.gmra.mxu0 %v6642_v23 }
 0x164   : > { %2161 = vmatmul.mubr.bf16.gmra.mxu1 %v6645_v25  ;;  %3641 = vmatpush2.bf16.msra.mxu0 %v5660_v53  ;;  %v5714_v53 = vld [vmem:[#allocation10 + $0x250] ss:$8 sps:$4 sm:$0xff]  }
 0x165   : > { %3754 = vmatpush2.bf16.msra.mxu1 %v5663_v54  ;;  %3642 = vmatprep.subr.bf16.mxu0 %v5668_v57  ;;  %v5717_v54 = vld [vmem:[#allocation10 + $0x350] ss:$8 sps:$4 sm:$0xff]   ;;  %v5722_v57 = vld [vmem:[#allocation10 + $0x244] ss:$8 sps:$4 sm:$0xff]  }
 0x166   : > { %3755 = vmatprep.subr.bf16.mxu1 %v5671_v58  ;;  %2057 = vmatprep.mubr.bf16.mxu0 %v6648_v33  ;;  %v5725_v58 = vld [vmem:[#allocation10 + $0x344] ss:$8 sps:$4 sm:$0xff]  }
 0x167   : > { %2170 = vmatprep.mubr.bf16.mxu1 %v6651_v34 }
 0x168   : > { %3643 = vmatpush2.bf16.msra.mxu0 %v5666_v59  ;;  %v5720_v59 = vld [vmem:[#allocation10 + $0x240] ss:$8 sps:$4 sm:$0xff]  }
 0x169   : > { %3756 = vmatpush2.bf16.msra.mxu1 %v5669_v61  ;;  %3644 = vmatprep.subr.bf16.mxu0 %v5674_v63  ;;  %v5723_v61 = vld [vmem:[#allocation10 + $0x340] ss:$8 sps:$4 sm:$0xff]   ;;  %v5728_v63 = vld [vmem:[#allocation10 + $0x234] ss:$8 sps:$4 sm:$0xff]  }
 0x16a   : > { %3757 = vmatprep.subr.bf16.mxu1 %v5677_v0  ;;  %v5731_v0 = vld [vmem:[#allocation10 + $0x334] ss:$8 sps:$4 sm:$0xff]  }
 0x16b   : > { %2058 = vmatmul.mubr.bf16.gmra.mxu0 %v6658_v41 }
 0x16c   : > { %2171 = vmatmul.mubr.bf16.gmra.mxu1 %v6661_v42  ;;  %3645 = vmatpush2.bf16.msra.mxu0 %v5672_v1  ;;  %v5726_v1 = vld [vmem:[#allocation10 + $0x230] ss:$8 sps:$4 sm:$0xff]  }
 0x16d   : > { %3758 = vmatpush2.bf16.msra.mxu1 %v5675_v19  ;;  %3646 = vmatprep.subr.bf16.mxu0 %v5680_v20  ;;  %v5729_v19 = vld [vmem:[#allocation10 + $0x330] ss:$8 sps:$4 sm:$0xff]   ;;  %v5732_v20 = vld [vmem:[#allocation10 + $0x220] ss:$8 sps:$4 sm:$0xff]  }
 0x16e   : > { %3759 = vmatprep.subr.bf16.mxu1 %v5683_v2  ;;  %2067 = vmatprep.mubr.bf16.mxu0 %v6692_v5  ;;  %v5735_v2 = vld [vmem:[#allocation10 + $0x320] ss:$8 sps:$4 sm:$0xff]  }
 0x16f   : > { %2180 = vmatprep.mubr.bf16.mxu1 %v6695_v24 }
 0x170   : > { %3647 = vmatpush2.bf16.msra.mxu0 %v5678_v26  ;;  %v5738_v26 = vld [vmem:[#allocation10 + $0x210] ss:$8 sps:$4 sm:$0xff]  }
 0x171   : > { %3760 = vmatpush2.bf16.msra.mxu1 %v5681_v6  ;;  %3648 = vmatprep.subr.bf16.mxu0 %v5692_v7  ;;  %v5741_v6 = vld [vmem:[#allocation10 + $0x310] ss:$8 sps:$4 sm:$0xff]   ;;  %v5744_v7 = vld [vmem:[#allocation10 + $0x200] ss:$8 sps:$4 sm:$0xff]  }
 0x172   : > { %3761 = vmatprep.subr.bf16.mxu1 %v5695_v31  ;;  %v5747_v31 = vld [vmem:[#allocation10 + $0x300] ss:$8 sps:$4 sm:$0xff]  }
 0x173   : > { %2068 = vmatmul.mubr.bf16.gmra.mxu0 %v6702_v32 }
 0x174   : > { %2181 = vmatmul.mubr.bf16.gmra.mxu1 %v6705_v8  ;;  %3649 = vmatpush2.bf16.msra.mxu0 %v5690_v11  ;;  %v5750_v11 = vld [vmem:[#allocation10 + $0x2f0] ss:$8 sps:$4 sm:$0xff]  }
 0x175   : > { %3762 = vmatpush2.bf16.msra.mxu1 %v5693_v12  ;;  %3650 = vmatprep.subr.bf16.mxu0 %v5698_v13  ;;  %v5753_v12 = vld [vmem:[#allocation10 + $0x3f0] ss:$8 sps:$4 sm:$0xff]   ;;  %v5756_v13 = vld [vmem:[#allocation10 + $0x2e0] ss:$8 sps:$4 sm:$0xff]  }
 0x176   : > { %3763 = vmatprep.subr.bf16.mxu1 %v5701_v14  ;;  %3652 = vmatprep.mubr.bf16.mxu0 %v5862_v27  ;;  %v5759_v14 = vld [vmem:[#allocation10 + $0x3e0] ss:$8 sps:$4 sm:$0xff]   ;;  %v5774_v27 = vld [vmem:[#allocation10 + $0x2b0] ss:$8 sps:$4 sm:$0xff]  }
 0x177   : > { %3765 = vmatprep.mubr.bf16.mxu1 %v5863_v28  ;;  %v5777_v28 = vld [vmem:[#allocation10 + $0x3b0] ss:$8 sps:$4 sm:$0xff]  }
 0x178   : > { %3651 = vmatpush2.bf16.msra.mxu0 %v5696_v17  ;;  %v5762_v17 = vld [vmem:[#allocation10 + $0x2d0] ss:$8 sps:$4 sm:$0xff]  }
 0x179   : > { %3764 = vmatpush2.bf16.msra.mxu1 %v5699_v18  ;;  %3846 = vmatprep.subr.bf16.mxu0 %v5704_v21  ;;  %v5765_v18 = vld [vmem:[#allocation10 + $0x3d0] ss:$8 sps:$4 sm:$0xff]   ;;  %v5768_v21 = vld [vmem:[#allocation10 + $0x2c0] ss:$8 sps:$4 sm:$0xff]  }
 0x17a   : > { %3959 = vmatprep.subr.bf16.mxu1 %v5707_v22  ;;  %v5771_v22 = vld [vmem:[#allocation10 + $0x3c0] ss:$8 sps:$4 sm:$0xff]  }
 0x17b   : > { %3653 = vmatmul.mubr.bf16.vlgmr.msra.gmra.mxu0 %v5864_v39  ;;  %v5792_v39 = vld [vmem:[#allocation10 + $0x280] ss:$8 sps:$4 sm:$0xff]  }
 0x17c   : > { %3766 = vmatmul.mubr.bf16.vlgmr.msra.gmra.mxu1 %v5865_v40  ;;  %3847 = vmatpush1.bf16.msra.mxu0 %v5702_v29  ;;  %v5780_v29 = vld [vmem:[#allocation10 + $0x2a0] ss:$8 sps:$4 sm:$0xff]  }
 0x17d   : > { %3960 = vmatpush1.bf16.msra.mxu1 %v5705_v30  ;;  %3848 = vmatprep.subr.bf16.mxu0 %v5710_v35  ;;  %v5783_v30 = vld [vmem:[#allocation10 + $0x3a0] ss:$8 sps:$4 sm:$0xff]   ;;  %v5786_v35 = vld [vmem:[#allocation10 + $0x290] ss:$8 sps:$4 sm:$0xff]  }
 0x17e   : > { %3961 = vmatprep.subr.bf16.mxu1 %v5713_v37  ;;  %3662 = vmatprep.mubr.bf16.mxu0 %v6714_v51  ;;  %v5789_v37 = vld [vmem:[#allocation10 + $0x390] ss:$8 sps:$4 sm:$0xff]   ;;  %v5795_v40 = vld [vmem:[#allocation10 + $0x380] ss:$8 sps:$4 sm:$0xff]  }
 0x17f   : > { %3775 = vmatprep.mubr.bf16.mxu1 %v6718_v52 }
 0x180   : > { %3849 = vmatpush1.bf16.msra.mxu0 %v5708_v45 }
 0x181   : > { %3962 = vmatpush1.bf16.msra.mxu1 %v5711_v46  ;;  %3850 = vmatprep.subr.bf16.mxu0 %v5716_v47  ;;  %v5868_v47 = vld [vmem:[%s6525_s21 + $0x20] ss:$16 sps:$4 sm:$0xff]  }
 0x182   : > { %3963 = vmatprep.subr.bf16.mxu1 %v5719_v49  ;;  %v5869_v49 = vld [vmem:[%s6525_s21 + $0x28] ss:$16 sps:$4 sm:$0xff]  }
 0x183   : > { %3663 = vmatmul.mubr.bf16.gmra.mxu0 %v6576_v36  ;;  %v5734_v36 = vld [vmem:[#allocation10 + $0x224] ss:$8 sps:$4 sm:$0xff]  }
 0x184   : > { %3776 = vmatmul.mubr.bf16.gmra.mxu1 %v6581_v38  ;;  %3851 = vmatpush1.bf16.msra.mxu0 %v5714_v53  ;;  %v5737_v38 = vld [vmem:[#allocation10 + $0x324] ss:$8 sps:$4 sm:$0xff]  }
 0x185   : > { %3964 = vmatpush1.bf16.msra.mxu1 %v5717_v54  ;;  %3852 = vmatprep.subr.bf16.mxu0 %v5722_v57  ;;  %v5870_v54 = vld [vmem:[%s6525_s21 + $0x44] ss:$16 sps:$4 sm:$0xff]   ;;  %v5871_v57 = vld [vmem:[%s6525_s21 + $0x4c] ss:$16 sps:$4 sm:$0xff]  }
 0x186   : > { %3965 = vmatprep.subr.bf16.mxu1 %v5725_v58  ;;  %3672 = vmatprep.mubr.bf16.mxu0 %v6584_v43  ;;  %v5740_v43 = vld [vmem:[#allocation10 + $0x214] ss:$8 sps:$4 sm:$0xff]  }
 0x187   : > { %3785 = vmatprep.mubr.bf16.mxu1 %v6587_v44  ;;  %v5743_v44 = vld [vmem:[#allocation10 + $0x314] ss:$8 sps:$4 sm:$0xff]  }
 0x188   : > { %3853 = vmatpush1.bf16.msra.mxu0 %v5720_v59 }
 0x189   : > { %3966 = vmatpush1.bf16.msra.mxu1 %v5723_v61  ;;  %3854 = vmatprep.subr.bf16.mxu0 %v5728_v63 }
 0x18a   : > { %3967 = vmatprep.subr.bf16.mxu1 %v5731_v0 }
 0x18b   : > { %3673 = vmatmul.mubr.bf16.gmra.mxu0 %v6592_v48  ;;  %v5746_v48 = vld [vmem:[#allocation10 + $0x204] ss:$8 sps:$4 sm:$0xff]  }
 0x18c   : > { %3786 = vmatmul.mubr.bf16.gmra.mxu1 %v6597_v50  ;;  %3855 = vmatpush1.bf16.msra.mxu0 %v5726_v1  ;;  %v5749_v50 = vld [vmem:[#allocation10 + $0x304] ss:$8 sps:$4 sm:$0xff]  }
 0x18d   : > { %3968 = vmatpush1.bf16.msra.mxu1 %v5729_v19  ;;  %3856 = vmatprep.subr.bf16.mxu0 %v5734_v36  ;;  %v5872_v36 = vld [vmem:[%s6525_s21 + $0x40] ss:$16 sps:$4 sm:$0xff]  }
 0x18e   : > { %3969 = vmatprep.subr.bf16.mxu1 %v5737_v38  ;;  %3682 = vmatprep.mubr.bf16.mxu0 %v6600_v55  ;;  %v5752_v55 = vld [vmem:[#allocation10 + $0x2f4] ss:$8 sps:$4 sm:$0xff]   ;;  %v5873_v38 = vld [vmem:[%s6525_s21 + $0x48] ss:$16 sps:$4 sm:$0xff]  }
 0x18f   : > { %3795 = vmatprep.mubr.bf16.mxu1 %v6603_v56  ;;  %v5755_v56 = vld [vmem:[#allocation10 + $0x3f4] ss:$8 sps:$4 sm:$0xff]  }
 0x190   : > { %3857 = vmatpush1.bf16.msra.mxu0 %v5732_v20 }
 0x191   : > { %3970 = vmatpush1.bf16.msra.mxu1 %v5735_v2  ;;  %3858 = vmatprep.subr.bf16.mxu0 %v5740_v43  ;;  %v5874_v2 = vld [vmem:[%s6525_s21 + $0x64] ss:$16 sps:$4 sm:$0xff]   ;;  %v5875_v43 = vld [vmem:[%s6525_s21 + $0x6c] ss:$16 sps:$4 sm:$0xff]  }
 0x192   : > { %3971 = vmatprep.subr.bf16.mxu1 %v5743_v44 }
 0x193   : > { %3683 = vmatmul.mubr.bf16.gmra.mxu0 %v6608_v60  ;;  %v5758_v60 = vld [vmem:[#allocation10 + $0x2e4] ss:$8 sps:$4 sm:$0xff]  }
 0x194   : > { %3796 = vmatmul.mubr.bf16.gmra.mxu1 %v6613_v62  ;;  %3859 = vmatpush1.bf16.msra.mxu0 %v5738_v26  ;;  %v5761_v62 = vld [vmem:[#allocation10 + $0x3e4] ss:$8 sps:$4 sm:$0xff]  }
 0x195   : > { %3972 = vmatpush1.bf16.msra.mxu1 %v5741_v6  ;;  %3860 = vmatprep.subr.bf16.mxu0 %v5746_v48 }
 0x196   : > { %3973 = vmatprep.subr.bf16.mxu1 %v5749_v50  ;;  %3692 = vmatprep.mubr.bf16.mxu0 %v6616_v3  ;;  %v5764_v3 = vld [vmem:[#allocation10 + $0x2d4] ss:$8 sps:$4 sm:$0xff]  }
 0x197   : > { %3805 = vmatprep.mubr.bf16.mxu1 %v6619_v4  ;;  %v5767_v4 = vld [vmem:[#allocation10 + $0x3d4] ss:$8 sps:$4 sm:$0xff]  }
 0x198   : > { %3861 = vmatpush1.bf16.msra.mxu0 %v5744_v7 }
 0x199   : > { %3974 = vmatpush1.bf16.msra.mxu1 %v5747_v31  ;;  %3862 = vmatprep.subr.bf16.mxu0 %v5752_v55 }
 0x19a   : > { %3975 = vmatprep.subr.bf16.mxu1 %v5755_v56 }
 0x19b   : > { %3693 = vmatmul.mubr.bf16.gmra.mxu0 %v6626_v9  ;;  %v5770_v9 = vld [vmem:[#allocation10 + $0x2c4] ss:$8 sps:$4 sm:$0xff]  }
 0x19c   : > { %3806 = vmatmul.mubr.bf16.gmra.mxu1 %v6629_v10  ;;  %3863 = vmatpush2.bf16.msra.mxu0 %v5750_v11  ;;  %v5773_v10 = vld [vmem:[#allocation10 + $0x3c4] ss:$8 sps:$4 sm:$0xff]  }
 0x19d   : > { %3976 = vmatpush2.bf16.msra.mxu1 %v5753_v12  ;;  %3864 = vmatprep.subr.bf16.mxu0 %v5758_v60  ;;  %v5876_v12 = vld [vmem:[%s6525_s21 + $0x60] ss:$16 sps:$4 sm:$0xff]   ;;  %v5877_v60 = vld [vmem:[%s6525_s21 + $0x68] ss:$16 sps:$4 sm:$0xff]  }
 0x19e   : > { %3977 = vmatprep.subr.bf16.mxu1 %v5761_v62  ;;  %3702 = vmatprep.mubr.bf16.mxu0 %v6632_v15  ;;  %v5776_v15 = vld [vmem:[#allocation10 + $0x2b4] ss:$8 sps:$4 sm:$0xff]  }
 0x19f   : > { %3815 = vmatprep.mubr.bf16.mxu1 %v6635_v16  ;;  %v5779_v16 = vld [vmem:[#allocation10 + $0x3b4] ss:$8 sps:$4 sm:$0xff]  }
 0x1a0   : > { %3865 = vmatpush2.bf16.msra.mxu0 %v5756_v13  ;;  %v5878_v13 = vld [vmem:[%s6525_s21 + $0x84] ss:$16 sps:$4 sm:$0xff]  }
 0x1a1   : > { %3978 = vmatpush2.bf16.msra.mxu1 %v5759_v14  ;;  %3866 = vmatprep.subr.bf16.mxu0 %v5764_v3  ;;  %v5879_v14 = vld [vmem:[%s6525_s21 + $0x8c] ss:$16 sps:$4 sm:$0xff]  }
 0x1a2   : > { %3979 = vmatprep.subr.bf16.mxu1 %v5767_v4 }
 0x1a3   : > { %3703 = vmatmul.mubr.bf16.gmra.mxu0 %v6642_v23  ;;  %v5782_v23 = vld [vmem:[#allocation10 + $0x2a4] ss:$8 sps:$4 sm:$0xff]  }
 0x1a4   : > { %3816 = vmatmul.mubr.bf16.gmra.mxu1 %v6645_v25  ;;  %3867 = vmatpush2.bf16.msra.mxu0 %v5762_v17  ;;  %v5785_v25 = vld [vmem:[#allocation10 + $0x3a4] ss:$8 sps:$4 sm:$0xff]  }
 0x1a5   : > { %3980 = vmatpush2.bf16.msra.mxu1 %v5765_v18  ;;  %3868 = vmatprep.subr.bf16.mxu0 %v5770_v9 }
 0x1a6   : > { %3981 = vmatprep.subr.bf16.mxu1 %v5773_v10  ;;  %3712 = vmatprep.mubr.bf16.mxu0 %v6648_v33  ;;  %v5788_v33 = vld [vmem:[#allocation10 + $0x294] ss:$8 sps:$4 sm:$0xff]  }
 0x1a7   : > { %3825 = vmatprep.mubr.bf16.mxu1 %v6651_v34  ;;  %v5791_v34 = vld [vmem:[#allocation10 + $0x394] ss:$8 sps:$4 sm:$0xff]  }
 0x1a8   : > { %3869 = vmatpush2.bf16.msra.mxu0 %v5768_v21 }
 0x1a9   : > { %3982 = vmatpush2.bf16.msra.mxu1 %v5771_v22  ;;  %3870 = vmatprep.subr.bf16.mxu0 %v5776_v15 }
 0x1aa   : > { %3983 = vmatprep.subr.bf16.mxu1 %v5779_v16 }
 0x1ab   : > { %3713 = vmatmul.mubr.bf16.gmra.mxu0 %v6658_v41  ;;  %v5794_v41 = vld [vmem:[#allocation10 + $0x284] ss:$8 sps:$4 sm:$0xff]  }
 0x1ac   : > { %3826 = vmatmul.mubr.bf16.gmra.mxu1 %v6661_v42  ;;  %3871 = vmatpush2.bf16.msra.mxu0 %v5774_v27  ;;  %v5797_v42 = vld [vmem:[#allocation10 + $0x384] ss:$8 sps:$4 sm:$0xff]  }
 0x1ad   : > { %3984 = vmatpush2.bf16.msra.mxu1 %v5777_v28  ;;  %3872 = vmatprep.subr.bf16.mxu0 %v5782_v23  ;;  %v5880_v28 = vld [vmem:[%s6525_s21 + $0x80] ss:$16 sps:$4 sm:$0xff]   ;;  %v5881_v23 = vld [vmem:[%s6525_s21 + $0x88] ss:$16 sps:$4 sm:$0xff]  }
 0x1ae   : > { %3985 = vmatprep.subr.bf16.mxu1 %v5785_v25  ;;  %3722 = vmatprep.mubr.bf16.mxu0 %v6692_v5 }
 0x1af   : > { %3835 = vmatprep.mubr.bf16.mxu1 %v6695_v24 }
 0x1b0   : > { %3873 = vmatpush2.bf16.msra.mxu0 %v5780_v29  ;;  %v5882_v29 = vld [vmem:[%s6525_s21 + $0xa4] ss:$16 sps:$4 sm:$0xff]  }
 0x1b1   : > { %3986 = vmatpush2.bf16.msra.mxu1 %v5783_v30  ;;  %3874 = vmatprep.subr.bf16.mxu0 %v5788_v33  ;;  %v5883_v30 = vld [vmem:[%s6525_s21 + $0xac] ss:$16 sps:$4 sm:$0xff]  }
 0x1b2   : > { %3987 = vmatprep.subr.bf16.mxu1 %v5791_v34 }
 0x1b3   : > { %3723 = vmatmul.mubr.bf16.gmra.mxu0 %v6702_v32 }
 0x1b4   : > { %3836 = vmatmul.mubr.bf16.gmra.mxu1 %v6705_v8  ;;  %3875 = vmatpush2.bf16.msra.mxu0 %v5786_v35 }
 0x1b5   : > { %3988 = vmatpush2.bf16.msra.mxu1 %v5789_v37  ;;  %3876 = vmatprep.subr.bf16.mxu0 %v5794_v41 }
 0x1b6   : > { %3989 = vmatprep.subr.bf16.mxu1 %v5797_v42  ;;  %3878 = vmatprep.mubr.bf16.mxu0 %v6714_v51 }
 0x1b7   : > { %3991 = vmatprep.mubr.bf16.mxu1 %v6718_v52 }
 0x1b8   : > { %3877 = vmatpush2.bf16.msra.mxu0 %v5792_v39 }
 0x1b9   : > { %3990 = vmatpush2.bf16.msra.mxu1 %v5795_v40 }
 0x1bb   : > { %v1773_v45 = vpop.f32.mrf.mxu0  ;;  %3879 = vmatmul.mubr.bf16.vlgmr.msra.gmra.mxu0 %v5868_v47 }
 0x1bc   : > { %v1886_v46 = vpop.f32.mrf.mxu1  ;;  %3992 = vmatmul.mubr.bf16.vlgmr.msra.gmra.mxu1 %v5869_v49  ;;  %3888 = vmatprep.mubr.bf16.mxu0 %v5870_v54  ;;  %v5884_v49 = vld [vmem:[%s6525_s21 + $0xa0] ss:$16 sps:$4 sm:$0xff]   ;;  %v5885_v54 = vld [vmem:[%s6525_s21 + $0xa8] ss:$16 sps:$4 sm:$0xff]  }
 0x1bd   : > { %v6752_v53 = vadd.f32 %v1886_v46, %v1773_v45  ;;  %4001 = vmatprep.mubr.bf16.mxu1 %v5871_v57  ;;  %v6756_v51 = vpop.f32.mrf.mxu0 }
 0x1be   : > { %v6758_v52 = vpop.f32.mrf.mxu1 }
 0x1bf   : > { %v1777_v58 = vpop.f32.mrf.mxu0 }
 0x1c0   : > { %v1890_v59 = vpop.f32.mrf.mxu1 }
 0x1c1   : > { %v6760_v61 = vadd.f32 %v1890_v59, %v1777_v58  ;;  %v6764_v63 = vpop.f32.mrf.mxu0  ;;  %v5886_v58 = vld [vmem:[%s6525_s21 + $0xc4] ss:$16 sps:$4 sm:$0xff]   ;;  %v5887_v59 = vld [vmem:[%s6525_s21 + $0xcc] ss:$16 sps:$4 sm:$0xff]  }
 0x1c2   : > { %v6766_v0 = vpop.f32.mrf.mxu1 }
 0x1c3   : > { %v1783_v1 = vpop.f32.mrf.mxu0  ;;  %3889 = vmatmul.mubr.bf16.gmra.mxu0 %v5872_v36 }
 0x1c4   : > { %v1896_v19 = vpop.f32.mrf.mxu1  ;;  %4002 = vmatmul.mubr.bf16.gmra.mxu1 %v5873_v38  ;;  %3898 = vmatprep.mubr.bf16.mxu0 %v5874_v2 }
 0x1c5   : > { %v6770_v20 = vadd.f32 %v1896_v19, %v1783_v1  ;;  %4011 = vmatprep.mubr.bf16.mxu1 %v5875_v43  ;;  %v6775_v44 = vpop.f32.mrf.mxu0 }
 0x1c6   : > { %v6777_v26 = vpop.f32.mrf.mxu1 }
 0x1c7   : > { %v1787_v6 = vpop.f32.mrf.mxu0 }
 0x1c8   : > { %v1900_v48 = vpop.f32.mrf.mxu1 }
 0x1c9   : > { %v6779_v50 = vadd.f32 %v1900_v48, %v1787_v6  ;;  %v1789_v7 = vpop.f32.mrf.mxu0  ;;  %v473_v6 = vld [vmem:[%s6532_s15] sm:$0xff]  ;;  %v475_v48 = vld [vmem:[%s6532_s15 + $0x10] sm:$0xff] }
 0x1ca   : > { %v1902_v31 = vpop.f32.mrf.mxu1 }
 0x1cb   : > { %v6781_v55 = vadd.f32 %v1902_v31, %v1789_v7  ;;  %v1793_v56 = vpop.f32.mrf.mxu0  ;;  %3899 = vmatmul.mubr.bf16.gmra.mxu0 %v5876_v12  ;;  %v513_v7 = vstv %s512_s25  ;;  %v476_v12 = vld [vmem:[%s6532_s15 + $0x18] sm:$0xff] }
 0x1cc   : > { %v1906_v11 = vpop.f32.mrf.mxu1  ;;  %4012 = vmatmul.mubr.bf16.gmra.mxu1 %v5877_v60  ;;  %3908 = vmatprep.mubr.bf16.mxu0 %v5878_v13 }
 0x1cd   : > { %v6785_v62 = vadd.f32 %v1906_v11, %v1793_v56  ;;  %4021 = vmatprep.mubr.bf16.mxu1 %v5879_v14  ;;  %v1795_v3 = vpop.f32.mrf.mxu0  ;;  %v474_v11 = vld [vmem:[%s6532_s15 + $0x8] sm:$0xff] }
 0x1ce   : > { %v1908_v4 = vpop.f32.mrf.mxu1 }
 0x1cf   : > { %v6790_v17 = vadd.f32 %v1908_v4, %v1795_v3  ;;  %v1797_v18 = vpop.f32.mrf.mxu0  ;;  %v5888_v3 = vld [vmem:[%s6525_s21 + $0xc0] ss:$16 sps:$4 sm:$0xff]   ;;  %v5889_v4 = vld [vmem:[%s6525_s21 + $0xc8] ss:$16 sps:$4 sm:$0xff]  }
 0x1d0   : > { %v1910_v9 = vpop.f32.mrf.mxu1 }
 0x1d1   : > { %v6794_v10 = vadd.f32 %v1910_v9, %v1797_v18  ;;  %v1799_v21 = vpop.f32.mrf.mxu0  ;;  %v515_v18 = vmul.bf16 %v513_v7, %v473_v6  ;;  %v517_v9 = vmul.bf16 %v513_v7, %v475_v48 }
 0x1d2   : > { %v1912_v22 = vpop.f32.mrf.mxu1 }
 0x1d3   : > { %v6796_v15 = vadd.f32 %v1912_v22, %v1799_v21  ;;  %v1803_v16 = vpop.f32.mrf.mxu0  ;;  %3909 = vmatmul.mubr.bf16.gmra.mxu0 %v5880_v28  ;;  %v516_v22 = vmul.bf16 %v513_v7, %v474_v11 }
 0x1d4   : > { %v1916_v27 = vpop.f32.mrf.mxu1  ;;  %4022 = vmatmul.mubr.bf16.gmra.mxu1 %v5881_v23  ;;  %3918 = vmatprep.mubr.bf16.mxu0 %v5882_v29 }
 0x1d5   : > { %v6802_v25 = vadd.f32 %v1916_v27, %v1803_v16  ;;  %4031 = vmatprep.mubr.bf16.mxu1 %v5883_v30  ;;  %v1805_v33 = vpop.f32.mrf.mxu0  ;;  %v518_v16 = vmul.bf16 %v513_v7, %v476_v12 }
 0x1d6   : > { %v1918_v34 = vpop.f32.mrf.mxu1 }
 0x1d7   : > { %v6806_v35 = vadd.f32 %v1918_v34, %v1805_v33  ;;  %v1807_v37 = vpop.f32.mrf.mxu0  ;;  %v5032_v34 = vcombine.high %v515_v18, %v517_v9 }
 0x1d8   : > { %v1920_v41 = vpop.f32.mrf.mxu1 }
 0x1d9   : > { %v6809_v42 = vadd.f32 %v1920_v41, %v1807_v37  ;;  %v1809_v39 = vpop.f32.mrf.mxu0  ;;  %v5034_v37 = vcombine.high %v516_v22, %v518_v16 }
 0x1da   : > { %v1922_v40 = vpop.f32.mrf.mxu1 }
 0x1db   : > { %v6811_v45 = vadd.f32 %v1922_v40, %v1809_v39  ;;  %v1813_v46 = vpop.f32.mrf.mxu0  ;;  %3919 = vmatmul.mubr.bf16.gmra.mxu0 %v5884_v49 }
 0x1dc   : > { %v1926_v47 = vpop.f32.mrf.mxu1  ;;  %4032 = vmatmul.mubr.bf16.gmra.mxu1 %v5885_v54  ;;  %3928 = vmatprep.mubr.bf16.mxu0 %v5886_v58 }
 0x1dd   : > { %v6815_v57 = vadd.f32 %v1926_v47, %v1813_v46  ;;  %4041 = vmatprep.mubr.bf16.mxu1 %v5887_v59  ;;  %v1815_v1 = vpop.f32.mrf.mxu0 }
 0x1de   : > { %v1928_v19 = vpop.f32.mrf.mxu1 }
 0x1df   : > { %v6819_v36 = vadd.f32 %v1928_v19, %v1815_v1  ;;  %v1817_v38 = vpop.f32.mrf.mxu0  ;;  %v5031_v1 = vcombine.low %v515_v18, %v517_v9  ;;  %v5033_v19 = vcombine.low %v516_v22, %v518_v16 }
 0x1e0   : > { %v1930_v2 = vpop.f32.mrf.mxu1 }
 0x1e1   : > { %v6821_v43 = vadd.f32 %v1930_v2, %v1817_v38  ;;  %v1819_v31 = vpop.f32.mrf.mxu0 }
 0x1e2   : > { %v1932_v56 = vpop.f32.mrf.mxu1 }
 0x1e3   : > { %v6827_v60 = vadd.f32 %v1932_v56, %v1819_v31  ;;  %v1823_v13 = vpop.f32.mrf.mxu0  ;;  %3929 = vmatmul.mubr.bf16.gmra.mxu0 %v5888_v3  ;;  %v8436_v3 = vlaneseq }
 0x1e4   : > { %v1936_v14 = vpop.f32.mrf.mxu1  ;;  %4042 = vmatmul.mubr.bf16.gmra.mxu1 %v5889_v4  ;;  %3938 = vmatprep.mubr.bf16.mxu0 %v6692_v5 }
 0x1e5   : > { %v6831_v21 = vadd.f32 %v1936_v14, %v1823_v13  ;;  %4051 = vmatprep.mubr.bf16.mxu1 %v6695_v24  ;;  %v1825_v27 = vpop.f32.mrf.mxu0 }
 0x1e6   : > { %v1938_v28 = vpop.f32.mrf.mxu1 }
 0x1e7   : > { %v6835_v23 = vadd.f32 %v1938_v28, %v1825_v27  ;;  %v1827_v29 = vpop.f32.mrf.mxu0  ;;  %v1889_v27 = vadd.f32 %v6758_v52, %v6756_v51  ;;  %v6862_v28 = vshrl.u32 %v8436_v3, 7 }
 0x1e8   : > { %v1940_v30 = vpop.f32.mrf.mxu1 }
 0x1e9   : > { %v6837_v33 = vadd.f32 %v1940_v30, %v1827_v29  ;;  %v1829_v41 = vpop.f32.mrf.mxu0 }
 0x1ea   : > { %v1942_v39 = vpop.f32.mrf.mxu1 }
 0x1eb   : > { %v6839_v40 = vadd.f32 %v1942_v39, %v1829_v41  ;;  %v1833_v46 = vpop.f32.mrf.mxu0  ;;  %3939 = vmatmul.mubr.bf16.gmra.mxu0 %v6702_v32  ;;  %v1893_v39 = vadd.f32 %v6766_v0, %v6764_v63 }
 0x1ec   : > { %v1946_v5 = vpop.f32.mrf.mxu1  ;;  %4052 = vmatmul.mubr.bf16.gmra.mxu1 %v6705_v8  ;;  %3948 = vmatprep.mubr.bf16.mxu0 %v5032_v34 }
 0x1ed   : > { %v6843_v24 = vadd.f32 %v1946_v5, %v1833_v46  ;;  %4061 = vmatprep.mubr.bf16.mxu1 %v5034_v37  ;;  %v1835_v47 = vpop.f32.mrf.mxu0  ;;  %v541_v46 = vand.u32 15, %v6862_v28 }
 0x1ee   : > { %v1948_v49 = vpop.f32.mrf.mxu1 }
 0x1ef   : > { %v6845_v54 = vadd.f32 %v1948_v49, %v1835_v47  ;;  %v1837_v58 = vpop.f32.mrf.mxu0  ;;  %vm6872_vm1 = vcmp.ge.s32.totalorder %v541_v46, 1  ;;  %v6890_v46 = vld [vmem:[%s8543_s22] ss:$0 sm:$0xff] }
 0x1f0   : > { %v1950_v59 = vpop.f32.mrf.mxu1 }
 0x1f1   : > { %v6847_v38 = vadd.f32 %v1950_v59, %v1837_v58  ;;  %v1839_v2 = vpop.f32.mrf.mxu0  ;;  %v522_v58 = vadd.s32 8, %v6862_v28 }
 0x1f2   : > { %v1952_v6 = vpop.f32.mrf.mxu1 }
 0x1f3   : > { %v6849_v48 = vadd.f32 %v1952_v6, %v1839_v2  ;;  %v1843_v32 = vpop.f32.mrf.mxu0  ;;  %3949 = vmatmul.mubr.bf16.gmra.mxu0 %v5031_v1  ;;  %v1899_v2 = vadd.f32 %v6777_v26, %v6775_v44 }
 0x1f4   : > { %v1956_v8 = vpop.f32.mrf.mxu1  ;;  %4062 = vmatmul.mubr.bf16.gmra.mxu1 %v5033_v19  ;;  %v523_v19 = vadd.s32 16, %v6862_v28 }
 0x1f5   : > { %v6851_v7 = vadd.f32 %v1956_v8, %v1843_v32  ;;  %v1845_v31 = vpop.f32.mrf.mxu0 }
 0x1f6   : > { %v1958_v56 = vpop.f32.mrf.mxu1  ;;  %v555_v44 = vand.u32 15, %v523_v19 }
 0x1f7   : > { %v6853_v11 = vadd.f32 %v1958_v56, %v1845_v31  ;;  %v1847_v12 = vpop.f32.mrf.mxu0  ;;  %v548_v31 = vand.u32 15, %v522_v58 }
 0x1f8   : > { %v1960_v13 = vpop.f32.mrf.mxu1  ;;  %vm6899_vm5 = vcmp.ge.s32.totalorder %v555_v44, 1 }
 0x1f9   : > { %v6855_v14 = vadd.f32 %v1960_v13, %v1847_v12  ;;  %v1849_v4 = vpop.f32.mrf.mxu0  ;;  %vm6893_vm4 = vcmp.lt.s32.totalorder %v548_v31, 15 }
 0x1fa   : > { %v1962_v18 = vpop.f32.mrf.mxu1 }
 0x1fb   : > { %v6857_v9 = vadd.f32 %v1962_v18, %v1849_v4  ;;  %v1999_v22 = vpop.f32.mrf.mxu0  ;;  %v525_v18 = vadd.s32 32, %v6862_v28 }
 0x1fc   : > { %v2112_v16 = vpop.f32.mrf.mxu1  ;;  %v2000_v6 = vadd.f32 %v1999_v22, %v6752_v53  ;;  %v524_v22 = vadd.s32 24, %v6862_v28 }
 0x1fd   : > { %v2001_v29 = vpop.f32.mrf.mxu0 }
 0x1fe   : > { %v2114_v30 = vpop.f32.mrf.mxu1  ;;  %v2002_v34 = vadd.f32 %v2001_v29, %v1889_v27  ;;  %v2113_v27 = vadd.f32 %v2112_v16, %v2000_v6 }
 0x1ff   : > { %v2003_v37 = vpop.f32.mrf.mxu0 }
 0x200   : > { %v2116_v41 = vpop.f32.mrf.mxu1  ;;  %v2115_v5 = vadd.f32 %v2114_v30, %v2002_v34 }
 0x201   : > { %v2005_v47 = vpop.f32.mrf.mxu0 }
 0x202   : > { %v2118_v49 = vpop.f32.mrf.mxu1  ;;  %v2208_v51 = vrot.slane %v2115_v5, 7  ;;  %v2006_v52 = vadd.f32 %v2005_v47, %v1893_v39  ;;  %v2305_v12 = vrot.slane %v2115_v5, 1  ;;  %v2004_v39 = vadd.f32 %v2003_v37, %v6760_v61 }
 0x203   : > { %v2009_v59 = vpop.f32.mrf.mxu0  ;;  %v569_v61 = vand.u32 15, %v525_v18 }
 0x204   : > { %v2122_v1 = vpop.f32.mrf.mxu1  ;;  %v2119_v0 = vadd.f32 %v2118_v49, %v2006_v52  ;;  %v2255_v32 = vsel %vm8440_vm0, 0.0, %v2208_v51  ;;  %v2010_v31 = vadd.f32 %v2009_v59, %v6770_v20 }
 0x205   : > { %v2011_v8 = vpop.f32.mrf.mxu0  ;;  %v2288_v29 = vsel %vm6872_vm1, %v2255_v32, 0.0  ;;  %vm6917_vm6 = vcmp.ge.s32.totalorder %v569_v61, 1 }
 0x206   : > { %v2124_v56 = vpop.f32.mrf.mxu1  ;;  %v2306_v13 = vrot.slane %v2119_v0, 1  ;;  %v2012_v4 = vadd.f32 %v2011_v8, %v1899_v2  ;;  %v2209_v5 = vrot.slane %v2119_v0, 7 }
 0x207   : > { %v2013_v26 = vpop.f32.mrf.mxu0 }
 0x208   : > { %v6878_v53 = vpop.f32.mrf.mxu1  ;;  %v2307_v30 = vsel %vm8439_vm2, %v2305_v12, %v2306_v13  ;;  %v6884_v34 = vadd.f32 %v2124_v56, %v2012_v4  ;;  %v562_v12 = vand.u32 15, %v524_v22  ;;  %v2117_v4 = vadd.f32 %v2116_v41, %v2004_v39 }
 0x209   : > { %v2402_v47 = vsel %vm8437_vm3, %v2288_v29, %v2307_v30  ;;  %v2015_v16 = vpop.f32.mrf.mxu0  ;;  %v526_v39 = vadd.s32 40, %v6862_v28 }
 0x20a   : > { %v2128_v58 = vpop.f32.mrf.mxu1  ;;  %v2418_v52 = vadd.f32 %v2402_v47, %v2113_v27  ;;  %v2211_v19 = vrot.slane %v6884_v34, 7  ;;  %v2308_v2 = vrot.slane %v6884_v34, 1  ;;  %v2016_v6 = vadd.f32 %v2015_v16, %v6781_v55 }
 0x20b   : > { %v2019_v0 = vpop.f32.mrf.mxu0  ;;  %v2210_v27 = vsel %vm8440_vm0, %v2208_v51, %v2209_v5  ;;  %v6925_v16 = vadd.s32 48, %v6862_v28  ;;  %vm6937_vm7 = vcmp.lt.s32.totalorder %v562_v12, 15 }
 0x20c   : > { %v6904_v32 = vpop.f32.mrf.mxu1  ;;  %v2440_v8 = vadd.f32 %v6890_v46, %v2418_v52  ;;  %v2309_v56 = vsel %vm8439_vm2, %v2306_v13, %v2308_v2  ;;  %v2129_v44 = vadd.f32 %v2128_v58, %v2016_v6  ;;  %v2212_v34 = vsel %vm8440_vm0, %v2209_v5, %v2211_v19 }
 0x20d   : > { %v2386_v18 = vsel %vm6893_vm4, %v2309_v56, 0.0  ;;  %v2021_v29 = vpop.f32.mrf.mxu0  ;;  %v2123_v58 = vadd.f32 %v2122_v1, %v2010_v31  ;;  %v2014_v5 = vadd.f32 %v2013_v26, %v6779_v50  ;;  %v2290_v61 = vsel %vm6899_vm5, %v2212_v34, 0.0 }
 0x20e   : > { %v2134_v30 = vpop.f32.mrf.mxu1  ;;  %v6912_v55 = vmax.f32 %v2440_v8, 0.0  ;;  %v2403_v47 = vsel %vm8437_vm3, %v2210_v27, %v2386_v18  ;;  %v2022_v20 = vadd.f32 %v2021_v29, %v6790_v17  ;;  %v2310_v51 = vrot.slane %v2129_v44, 1 }
 0x20f   : > { %v2419_v41 = vadd.f32 %v2403_v47, %v2117_v4  ;;  %v2023_v13 = vpop.f32.mrf.mxu0  ;;  %v2213_v8 = vrot.slane %v2129_v44, 7  ;;  %v576_v34 = vand.u32 15, %v526_v39  ;;  %v2020_v12 = vadd.f32 %v2019_v0, %v6785_v62 }
 0x210   : > { %v6921_v22 = vpop.f32.mrf.mxu1  ;;  %v2135_v52 = vadd.f32 %v2134_v30, %v2022_v20  ;;  %v6930_v17 = vmul.f32 %v6912_v55, %v6912_v55  ;;  %v2311_v56 = vsel %vm8439_vm2, %v2308_v2, %v2310_v51 }
 0x211   : > { %v2441_v6 = vadd.f32 %v6890_v46, %v2419_v41  ;;  %v2025_v4 = vpop.f32.mrf.mxu0  ;;  %v2404_v18 = vsel %vm8437_vm3, %v2290_v61, %v2311_v56  ;;  %v583_v41 = vand.u32 15, %v6925_v16  ;;  %v2214_v61 = vsel %vm8440_vm0, %v2211_v19, %v2213_v8 }
 0x212   : > { %v2138_v27 = vpop.f32.mrf.mxu1  ;;  %v2215_v50 = vrot.slane %v2135_v52, 7  ;;  %v2312_v26 = vrot.slane %v2135_v52, 1  ;;  %2488 = vrot.lane.b32.xlu0 %v6930_v17, %s6169_s18  ;;  %v2420_v29 = vadd.f32 %v2404_v18, %v2123_v58  ;;  %v2026_v44 = vadd.f32 %v2025_v4, %v6796_v15 }
 0x213   : > { %v6943_v31 = vmax.f32 %v2441_v6, 0.0  ;;  %v2029_v2 = vpop.f32.mrf.mxu0  ;;  %v2127_v52 = vadd.f32 %v6878_v53, %v2014_v5  ;;  %v528_v53 = vadd.s32 56, %v6862_v28  ;;  %vm6965_vm8 = vcmp.lt.s32.totalorder %v576_v34, 15 }
 0x214   : > { %v6946_v30 = vpop.f32.mrf.mxu1  ;;  %v2216_v47 = vsel %vm8440_vm0, %v2213_v8, %v2215_v50  ;;  %v2313_v20 = vsel %vm8439_vm2, %v2310_v51, %v2312_v26  ;;  %v2139_v15 = vadd.f32 %v2138_v27, %v2026_v44  ;;  %v2024_v27 = vadd.f32 %v2023_v13, %v6794_v10 }
 0x215   : > { %8553 = vst [vmem:[#allocation32_spill] sm:$0xff] %v6943_v31  ;;  %v2388_v58 = vsel %vm6937_vm7, %v2313_v20, 0.0  ;;  %v2031_v6 = vpop.f32.mrf.mxu0  ;;  %v6962_v0 = vmul.f32 %v6943_v31, %v6943_v31  ;;  %v6976_v44 = vadd.s32 64, %v6862_v28  ;;  %v2442_v20 = vadd.f32 %v6890_v46, %v2420_v29 }
 0x216   : > { %v2144_v56 = vpop.f32.mrf.mxu1  ;;  %v2405_v39 = vsel %vm8437_vm3, %v2214_v61, %v2388_v58  ;;  %v2032_v62 = vadd.f32 %v2031_v6, %v6806_v35  ;;  %2554 = vrot.lane.b32.xlu0 %v6930_v17, %s6170_s3  ;;  %v2217_v51 = vrot.slane %v2139_v15, 7  ;;  %v2314_v16 = vrot.slane %v2139_v15, 1 }
 0x217   : > { %v2421_v19 = vadd.f32 %v2405_v39, %v2127_v52  ;;  %v2033_v8 = vpop.f32.mrf.mxu0  ;;  %v2133_v35 = vadd.f32 %v6904_v32, %v2020_v12  ;;  %2556 = vrot.lane.b32.xlu1 %v6962_v0, %s6170_s3  ;;  %v2292_v34 = vsel %vm6917_vm6, %v2216_v47, 0.0  ;;  %v590_v15 = vand.u32 15, %v528_v53 }
 0x218   : > { %v6969_v4 = vpop.f32.mrf.mxu1  ;;  %v2145_v18 = vadd.f32 %v2144_v56, %v2032_v62  ;;  %v2218_v52 = vsel %vm8440_vm0, %v2215_v50, %v2217_v51  ;;  %v2315_v61 = vsel %vm8439_vm2, %v2312_v26, %v2314_v16  ;;  %vm6988_vm9 = vcmp.ge.s32.totalorder %v583_v41, 1 }
 0x219   : > { %v2035_v58 = vpop.f32.mrf.mxu0  ;;  %v2406_v10 = vsel %vm8437_vm3, %v2292_v34, %v2315_v61  ;;  %v2030_v56 = vadd.f32 %v2029_v2, %v6802_v25  ;;  %v597_v53 = vand.u32 15, %v6976_v44  ;;  %v7001_v41 = vmax.f32 %v2442_v20, 0.0 }
 0x21a   : > { %v2148_v32 = vpop.f32.mrf.mxu1  ;;  %v2219_v13 = vrot.slane %v2145_v18, 7  ;;  %v2316_v12 = vrot.slane %v2145_v18, 1  ;;  %2620 = vrot.lane.b32.xlu0 %v6930_v17, %s6171_s1  ;;  %v6986_v6 = vadd.f32 %v2406_v10, %v2133_v35  ;;  %v2036_v50 = vadd.f32 %v2035_v58, %v6811_v45 }
 0x21b   : > { %v2039_v26 = vpop.f32.mrf.mxu0  ;;  %2622 = vrot.lane.b32.xlu1 %v6962_v0, %s6171_s1  ;;  %8558 = vst [vmem:[#allocation33_spill] sm:$0xff] %v7001_v41  ;;  %v2137_v35 = vadd.f32 %v6921_v22, %v2024_v27  ;;  %v2443_v25 = vadd.f32 %v6890_v46, %v2421_v19  ;;  %vm7009_vm10 = vcmp.lt.s32.totalorder %v590_v15, 15  ;;  %v530_v19 = vadd.s32 72, %v6862_v28 }
 0x21c   : > { %v6993_v47 = vpop.f32.mrf.mxu1  ;;  %v2220_v39 = vsel %vm8440_vm0, %v2217_v51, %v2219_v13  ;;  %v2317_v62 = vsel %vm8439_vm2, %v2314_v16, %v2316_v12  ;;  %v2149_v18 = vadd.f32 %v2148_v32, %v2036_v50  ;;  %v531_v10 = vadd.s32 80, %v6862_v28 }
 0x21d   : > { %v2390_v45 = vsel %vm6965_vm8, %v2317_v62, 0.0  ;;  %v2041_v34 = vpop.f32.mrf.mxu0  ;;  %v2294_v15 = vsel %vm6988_vm9, %v2220_v39, 0.0  ;;  %vm7044_vm11 = vcmp.ge.s32.totalorder %v597_v53, 1 }
 0x21e   : > { %v2154_v61 = vpop.f32.mrf.mxu1  ;;  %v2407_v2 = vsel %vm8437_vm3, %v2218_v52, %v2390_v45  ;;  %v2042_v51 = vadd.f32 %v2041_v34, %v6819_v36  ;;  %2686 = vrot.lane.b32.xlu0 %v6930_v17, %s6172_s9  ;;  %v2221_v27 = vrot.slane %v2149_v18, 7  ;;  %v2318_v44 = vrot.slane %v2149_v18, 1 }
 0x21f   : > { %v7015_v22 = vadd.f32 %v2407_v2, %v2137_v35  ;;  %v2043_v20 = vpop.f32.mrf.mxu0  ;;  %v2143_v52 = vadd.f32 %v6946_v30, %v2030_v56  ;;  %v2034_v36 = vadd.f32 %v2033_v8, %v6809_v42  ;;  %2688 = vrot.lane.b32.xlu1 %v6962_v0, %s6172_s9  ;;  %v7031_v30 = vmul.f32 %v7001_v41, %v7001_v41 }
 0x220   : > { %v7017_v58 = vpop.f32.mrf.mxu1  ;;  %v2155_v32 = vadd.f32 %v2154_v61, %v2042_v51  ;;  %v2222_v50 = vsel %vm8440_vm0, %v2219_v13, %v2221_v27  ;;  %v2319_v62 = vsel %vm8439_vm2, %v2316_v12, %v2318_v44  ;;  %v7033_v42 = vmax.f32 %v2443_v25, 0.0 }
 0x221   : > { %v2045_v35 = vpop.f32.mrf.mxu0  ;;  %v2408_v8 = vsel %vm8437_vm3, %v2294_v15, %v2319_v62  ;;  %v604_v61 = vand.u32 15, %v530_v19  ;;  %v2040_v2 = vadd.f32 %v2039_v26, %v6815_v57  ;;  %v611_v62 = vand.u32 15, %v531_v10 }
 0x222   : > { %v2158_v45 = vpop.f32.mrf.mxu1  ;;  %8561 = vst [vmem:[#allocation34_spill] sm:$0xff] %v7033_v42  ;;  %v2223_v56 = vrot.slane %v2155_v32, 7  ;;  %v2320_v18 = vrot.slane %v2155_v32, 1  ;;  %2490 = vrot.lane.b32.xlu0 %v6962_v0, %s6169_s18  ;;  %v7038_v39 = vadd.f32 %v2408_v8, %v2143_v52  ;;  %v2046_v13 = vadd.f32 %v2045_v35, %v6827_v60 }
 0x223   : > { %v2049_v12 = vpop.f32.mrf.mxu0  ;;  %2492 = vrot.lane.b32.xlu1 %v7031_v30, %s6169_s18  ;;  %v2147_v52 = vadd.f32 %v6969_v4, %v2034_v36  ;;  %v532_v4 = vadd.s32 88, %v6862_v28  ;;  %vm7066_vm12 = vcmp.lt.s32.totalorder %v604_v61, 15  ;;  %v8564_v10 = vmov 0 }
 0x224   : > { %v7041_v34 = vpop.f32.mrf.mxu1  ;;  %v2224_v51 = vsel %vm8440_vm0, %v2221_v27, %v2223_v56  ;;  %v2321_v32 = vsel %vm8439_vm2, %v2318_v44, %v2320_v18  ;;  %v2159_v15 = vadd.f32 %v2158_v45, %v2046_v13  ;;  %v7061_v27 = vmul.f32 %v7033_v42, %v7033_v42 }
 0x225   : > { %v2392_v60 = vsel %vm7009_vm10, %v2321_v32, 0.0  ;;  %v2051_v19 = vpop.f32.mrf.mxu0  ;;  %v8565_v10 = vsel %vm7066_vm12, 4294967295, %v8564_v10  ;;  %v2153_v8 = vadd.f32 %v6993_v47, %v2040_v2  ;;  %v533_v32 = vadd.s32 96, %v6862_v28 }
 0x226   : > { %v2164_v57 = vpop.f32.mrf.mxu1  ;;  %v2409_v26 = vsel %vm8437_vm3, %v2222_v50, %v2392_v60  ;;  %v2052_v53 = vadd.f32 %v2051_v19, %v6835_v23  ;;  %2558 = vrot.lane.b32.xlu0 %v7031_v30, %s6170_s3  ;;  %v2225_v36 = vrot.slane %v2159_v15, 7  ;;  %v2322_v35 = vrot.slane %v2159_v15, 1  ;;  %8566 = vst [vmem:[#allocation35_spill] sm:$0xff] %v8565_v10 }
 0x227   : > { %v7064_v44 = vadd.f32 %v2409_v26, %v2147_v52  ;;  %v2053_v50 = vpop.f32.mrf.mxu0  ;;  %v2444_v23 = vadd.f32 %v6890_v46, %v6986_v6  ;;  %2494 = vrot.lane.b32.xlu1 %v7061_v27, %s6169_s18  ;;  %v2296_v61 = vsel %vm7044_vm11, %v2224_v51, 0.0  ;;  %v2044_v52 = vadd.f32 %v2043_v20, %v6821_v43 }
 0x228   : > { %v7070_v45 = vpop.f32.mrf.mxu1  ;;  %v2165_v13 = vadd.f32 %v2164_v57, %v2052_v53  ;;  %v2226_v60 = vsel %vm8440_vm0, %v2223_v56, %v2225_v36  ;;  %v2323_v15 = vsel %vm8439_vm2, %v2320_v18, %v2322_v35  ;;  %v618_v57 = vand.u32 15, %v532_v4 }
 0x229   : > { %v2055_v19 = vpop.f32.mrf.mxu0  ;;  %v2410_v6 = vsel %vm8437_vm3, %v2296_v61, %v2323_v15  ;;  %vm7088_vm13 = vcmp.ge.s32.totalorder %v611_v62, 1  ;;  %v8567_v51 = vmov 0  ;;  %v7095_v18 = vmax.f32 %v2444_v23, 0.0 }
 0x22a   : > { %v2168_v26 = vpop.f32.mrf.mxu1  ;;  %v2227_v47 = vrot.slane %v2165_v13, 7  ;;  %v2324_v2 = vrot.slane %v2165_v13, 1  ;;  %2624 = vrot.lane.b32.xlu0 %v7031_v30, %s6171_s1  ;;  %v7086_v53 = vadd.f32 %v2410_v6, %v2153_v8  ;;  %v8568_v51 = vsel %vm7088_vm13, 4294967295, %v8567_v51 }
 0x22b   : > { %8569 = vst [vmem:[#allocation36_spill] sm:$0xff] %v8568_v51  ;;  %v2056_v43 = vadd.f32 %v2055_v19, %v6839_v40  ;;  %v2059_v20 = vpop.f32.mrf.mxu0  ;;  %8570 = vst [vmem:[#allocation37_spill] sm:$0xff] %v7095_v18  ;;  %v2050_v61 = vadd.f32 %v2049_v12, %v6831_v21  ;;  %2560 = vrot.lane.b32.xlu1 %v7061_v27, %s6170_s3  ;;  %v2157_v62 = vadd.f32 %v7017_v58, %v2044_v52 }
 0x22c   : > { %v7093_v56 = vpop.f32.mrf.mxu1  ;;  %v2228_v13 = vsel %vm8440_vm0, %v2225_v36, %v2227_v47  ;;  %v2325_v15 = vsel %vm8439_vm2, %v2322_v35, %v2324_v2  ;;  %v625_v19 = vand.u32 15, %v533_v32  ;;  %v2445_v23 = vadd.f32 %v6890_v46, %v7015_v22 }
 0x22d   : > { %v2394_v4 = vsel %vm7066_vm12, %v2325_v15, 0.0  ;;  %v2169_v40 = vadd.f32 %v2168_v26, %v2056_v43  ;;  %v2061_v8 = vpop.f32.mrf.mxu0  ;;  %vm7109_vm14 = vcmp.lt.s32.totalorder %v618_v57, 15  ;;  %v8571_v36 = vmov 0 }
 0x22e   : > { %v2174_v6 = vpop.f32.mrf.mxu1  ;;  %v2411_v21 = vsel %vm8437_vm3, %v2226_v60, %v2394_v4  ;;  %v2062_v12 = vadd.f32 %v2061_v8, %v6845_v54  ;;  %v8572_v36 = vsel %vm7109_vm14, 4294967295, %v8571_v36  ;;  %2690 = vrot.lane.b32.xlu0 %v7031_v30, %s6172_s9  ;;  %v534_v22 = vadd.s32 104, %v6862_v28 }
 0x22f   : > { %8573 = vst [vmem:[#allocation38_spill] sm:$0xff] %v8572_v36  ;;  %v7115_v58 = vadd.f32 %v2411_v21, %v2157_v62  ;;  %v2229_v35 = vrot.slane %v2169_v40, 7  ;;  %v2326_v52 = vrot.slane %v2169_v40, 1  ;;  %v2063_v32 = vpop.f32.mrf.mxu0  ;;  %v2163_v60 = vadd.f32 %v7041_v34, %v2050_v61  ;;  %2626 = vrot.lane.b32.xlu1 %v7061_v27, %s6171_s1 }
 0x230   : > { %v7117_v26 = vpop.f32.mrf.mxu1  ;;  %v2175_v43 = vadd.f32 %v2174_v6, %v2062_v12  ;;  %v7125_v54 = vmul.f32 %v7095_v18, %v7095_v18  ;;  %v7128_v57 = vadd.s32 112, %v6862_v28  ;;  %v2298_v15 = vsel %vm7088_vm13, %v2228_v13, 0.0 }
 0x231   : > { %v2054_v62 = vadd.f32 %v2053_v50, %v6837_v33  ;;  %v2230_v4 = vsel %vm8440_vm0, %v2227_v47, %v2229_v35  ;;  %v2327_v34 = vsel %vm8439_vm2, %v2324_v2, %v2326_v52  ;;  %v2065_v61 = vpop.f32.mrf.mxu0  ;;  %v7135_v8 = vmax.f32 %v2445_v23, 0.0 }
 0x232   : > { %8574 = vst [vmem:[#allocation39_spill] sm:$0xff] %v7125_v54  ;;  %v2178_v40 = vpop.f32.mrf.mxu1  ;;  %v2412_v6 = vsel %vm8437_vm3, %v2298_v15, %v2327_v34  ;;  %v2231_v21 = vrot.slane %v2175_v43, 7  ;;  %v2328_v12 = vrot.slane %v2175_v43, 1  ;;  %2496 = vrot.lane.b32.xlu0 %v7125_v54, %s6169_s18  ;;  %vm7142_vm15 = vcmp.ge.s32.totalorder %v625_v19, 1 }
 0x233   : > { %8575 = vst [vmem:[#allocation40_spill] sm:$0xff] %v7135_v8  ;;  %v7140_v3 = vadd.f32 %v2412_v6, %v2163_v60  ;;  %v8576_v13 = vmov 0  ;;  %v2066_v33 = vadd.f32 %v2065_v61, %v6849_v48  ;;  %v2069_v50 = vpop.f32.mrf.mxu0  ;;  %v2060_v2 = vadd.f32 %v2059_v20, %v6843_v24  ;;  %2692 = vrot.lane.b32.xlu1 %v7061_v27, %s6172_s9 }
 0x234   : > { %v8577_v13 = vsel %vm7142_vm15, 4294967295, %v8576_v13  ;;  %v7147_v47 = vpop.f32.mrf.mxu1  ;;  %v2232_v23 = vsel %vm8440_vm0, %v2229_v35, %v2231_v21  ;;  %v2329_v43 = vsel %vm8439_vm2, %v2326_v52, %v2328_v12  ;;  %v632_v60 = vand.u32 15, %v534_v22 }
 0x235   : > { %8578 = vst [vmem:[#allocation41_spill] sm:$0xff] %v8577_v13  ;;  %v2167_v19 = vadd.f32 %v7070_v45, %v2054_v62  ;;  %v2396_v15 = vsel %vm7109_vm14, %v2329_v43, 0.0  ;;  %v2179_v34 = vadd.f32 %v2178_v40, %v2066_v33  ;;  %v2071_v48 = vpop.f32.mrf.mxu0  ;;  %v639_v61 = vand.u32 15, %v7128_v57 }
 0x236   : > { %v2184_v6 = vpop.f32.mrf.mxu1  ;;  %v2413_v24 = vsel %vm8437_vm3, %v2230_v4, %v2396_v15  ;;  %v2072_v20 = vadd.f32 %v2071_v48, %v6853_v11  ;;  %2562 = vrot.lane.b32.xlu0 %v7125_v54, %s6170_s3  ;;  %v7164_v35 = vmul.f32 %v7135_v8, %v7135_v8  ;;  %v536_v45 = vadd.s32 120, %v6862_v28 }
 0x237   : > { %v2446_v52 = vadd.f32 %v6890_v46, %v7038_v39  ;;  %v7169_v22 = vadd.f32 %v2413_v24, %v2167_v19  ;;  %v2233_v57 = vrot.slane %v2179_v34, 7  ;;  %v2330_v62 = vrot.slane %v2179_v34, 1  ;;  %v2073_v40 = vpop.f32.mrf.mxu0 }
 0x238   : > { %8579 = vst [vmem:[#allocation42_spill] sm:$0xff] %v7164_v35  ;;  %v2186_v4 = vpop.f32.mrf.mxu1  ;;  %v2173_v11 = vadd.f32 %v7093_v56, %v2060_v2  ;;  %vm7172_vm3 = vcmp.lt.s32.totalorder %v632_v60, 15  ;;  %v8580_v33 = vmov 0  ;;  %v2185_v43 = vadd.f32 %v2184_v6, %v2072_v20  ;;  %2498 = vrot.lane.b32.xlu1 %v7164_v35, %s6169_s18 }
 0x239   : > { %v8581_v33 = vsel %vm7172_vm3, 4294967295, %v8580_v33  ;;  %v2074_v15 = vadd.f32 %v2073_v40, %v6855_v14  ;;  %v2300_v28 = vsel %vm7142_vm15, %v2232_v23, 0.0  ;;  %v2064_v39 = vadd.f32 %v2063_v32, %v6847_v38  ;;  %v2075_v56 = vpop.f32.mrf.mxu0 }
 0x23a   : > { %8582 = vst [vmem:[#allocation43_spill] sm:$0xff] %v8581_v33  ;;  %v2234_v19 = vsel %vm8440_vm0, %v2231_v21, %v2233_v57  ;;  %v2331_v34 = vsel %vm8439_vm2, %v2328_v12, %v2330_v62  ;;  %v2188_v2 = vpop.f32.mrf.mxu1  ;;  %vm8583_vm14 = vcmask 523264   ;;  %v2235_v48 = vrot.slane %v2185_v43, 7  ;;  %2628 = vrot.lane.b32.xlu0 %v7125_v54, %s6171_s1 }
 0x23b   : > { %v2414_v60 = vsel %vm8583_vm14, %v2300_v28, %v2331_v34  ;;  %v2332_v6 = vrot.slane %v2185_v43, 1  ;;  %v2187_v24 = vadd.f32 %v2186_v4, %v2074_v15  ;;  %v7187_v14 = vmax.f32 %v2446_v52, 0.0  ;;  %v3654_v21 = vpop.f32.mrf.mxu0 }
 0x23c   : > { %v7189_v20 = vadd.f32 %v2414_v60, %v2173_v11  ;;  %v2076_v38 = vadd.f32 %v2075_v56, %v6857_v9  ;;  %v646_v32 = vand.u32 15, %v536_v45  ;;  %v3767_v23 = vpop.f32.mrf.mxu1  ;;  %v2070_v12 = vadd.f32 %v2069_v50, %v6851_v7  ;;  %2564 = vrot.lane.b32.xlu1 %v7164_v35, %s6170_s3 }
 0x23d   : > { %8584 = vst [vmem:[#allocation44_spill] sm:$0xff] %v7187_v14  ;;  %v2236_v40 = vsel %vm8440_vm0, %v2233_v57, %v2235_v48  ;;  %v2333_v28 = vsel %vm8439_vm2, %v2330_v62, %v2332_v6  ;;  %v7195_v43 = vadd.f32 %v3767_v23, %v3654_v21  ;;  %v2177_v52 = vadd.f32 %v7117_v26, %v2064_v39  ;;  %v7202_v45 = vpop.f32.mrf.mxu0 }
 0x23e   : > { %v2398_v4 = vsel %vm7172_vm3, %v2333_v28, 0.0  ;;  %v2189_v9 = vadd.f32 %v2188_v2, %v2076_v38  ;;  %v7204_v11 = vpop.f32.mrf.mxu1  ;;  %v2447_v7 = vadd.f32 %v6890_v46, %v7064_v44  ;;  %vm7208_vm14 = vcmp.ge.s32.totalorder %v639_v61, 1  ;;  %2694 = vrot.lane.b32.xlu0 %v7125_v54, %s6172_s9 }
 0x23f   : > { %v8585_v50 = vmov 0  ;;  %vm8588_vm2 = vcmask 523264   ;;  %vm7217_vm0 = vcmp.lt.s32.totalorder %v646_v32, 15  ;;  %v8589_v62 = vmov 0  ;;  %v3658_v34 = vpop.f32.mrf.mxu0 }
 0x240   : > { %v8586_v50 = vsel %vm7208_vm14, 4294967295, %v8585_v50  ;;  %v2415_v57 = vsel %vm8588_vm2, %v2234_v19, %v2398_v4  ;;  %v8590_v62 = vsel %vm7217_vm0, 4294967295, %v8589_v62  ;;  %v2237_v15 = vrot.slane %v2189_v9, 7  ;;  %v3771_v56 = vpop.f32.mrf.mxu1  ;;  %2630 = vrot.lane.b32.xlu1 %v7164_v35, %s6171_s1 }
 0x241   : > { %8587 = vst [vmem:[#allocation45_spill] sm:$0xff] %v8586_v50  ;;  %v7215_v26 = vadd.f32 %v2415_v57, %v2177_v52  ;;  %8591 = vst [vmem:[#allocation46_spill] sm:$0xff] %v8590_v62  ;;  %v2334_v39 = vrot.slane %v2189_v9, 1  ;;  %v2183_v44 = vadd.f32 %v7147_v47, %v2070_v12  ;;  %v7222_v61 = vadd.f32 %v3771_v56, %v3658_v34  ;;  %v7235_v21 = vpop.f32.mrf.mxu0 }
 0x242   : > { %v7228_v19 = vmul.f32 %v7187_v14, %v7187_v14  ;;  %v2302_v2 = vsel %vm7208_vm14, %v2236_v40, 0.0  ;;  %vm8593_vm2 = vcmask 1040384   ;;  %vm8594_vm3 = vcmask 1046528   ;;  %v7237_v47 = vpop.f32.mrf.mxu1 }
 0x243   : > { %v2238_v60 = vsel %vm8593_vm2, %v2235_v48, %v2237_v15  ;;  %v2335_v38 = vsel %vm8594_vm3, %v2332_v6, %v2334_v39  ;;  %vm8595_vm15 = vmmov %vm8594_vm3  ;;  %v7239_v23 = vmax.f32 %v2447_v7, 0.0  ;;  %vm8597_vm13 = vcmask 523264   ;;  %v3664_v6 = vpop.f32.mrf.mxu0 }
 0x244   : > { %8592 = vst [vmem:[#allocation47_spill] sm:$0xff] %v7228_v19  ;;  %v2352_v32 = vsel %vm8595_vm15, %v2334_v39, 0.0  ;;  %v2416_v28 = vsel %vm8597_vm13, %v2302_v2, %v2335_v38  ;;  %2500 = vrot.lane.b32.xlu0 %v7228_v19, %s6169_s18  ;;  %vm8598_vm14 = vmmov %vm8597_vm13  ;;  %v3777_v52 = vpop.f32.mrf.mxu1  ;;  %2696 = vrot.lane.b32.xlu1 %v7164_v35, %s6172_s9 }
 0x245   : > { %8596 = vst [vmem:[#allocation48_spill] sm:$0xff] %v7239_v23  ;;  %v2400_v12 = vsel %vm7217_vm0, %v2352_v32, 0.0  ;;  %v7247_v40 = vadd.f32 %v2416_v28, %v2183_v44  ;;  %v7251_v9 = vadd.f32 %v3777_v52, %v3664_v6  ;;  %v7255_v7 = vpop.f32.mrf.mxu0  ;;  %v7263_v15 = vmul.f32 %v7239_v23, %v7239_v23  ;;  %vm8626_vm3 = vmmov %vm8593_vm2 }
 0x246   : > { %v2417_v48 = vsel %vm8598_vm14, %v2238_v60, %v2400_v12  ;;  %v7257_v57 = vpop.f32.mrf.mxu1  ;;  %v2449_v6 = vadd.f32 %v6890_v46, %v7115_v58  ;;  %vm8627_vm14 = vcmask 1046528   ;;  %vm8628_vm2 = vcmask 523264  }
 0x247   : > { %v7249_v4 = vadd.f32 %v2417_v48, %v2187_v24  ;;  %8599 = vst [vmem:[#allocation49_spill] sm:$0xff] %v7263_v15  ;;  %v3668_v39 = vpop.f32.mrf.mxu0  ;;  %v2448_v24 = vadd.f32 %v6890_v46, %v7086_v53 }
 0x248   : > { %2566 = vrot.lane.b32.xlu0 %v7228_v19, %s6170_s3  ;;  %v3781_v34 = vpop.f32.mrf.mxu1  ;;  %2502 = vrot.lane.b32.xlu1 %v7263_v15, %s6169_s18 }
 0x249   : > { %v7267_v56 = vadd.f32 %v3781_v34, %v3668_v39  ;;  %v3670_v44 = vpop.f32.mrf.mxu0  ;;  %v7275_v12 = vmax.f32 %v2448_v24, 0.0 }
 0x24a   : > { %v3783_v2 = vpop.f32.mrf.mxu1 }
 0x24b   : > { %v7271_v60 = vadd.f32 %v3783_v2, %v3670_v44  ;;  %v3674_v38 = vpop.f32.mrf.mxu0  ;;  %8600 = vst [vmem:[#allocation50_spill] sm:$0xff] %v7275_v12  ;;  %v7293_v24 = vmul.f32 %v7275_v12, %v7275_v12 }
 0x24c   : > { %2632 = vrot.lane.b32.xlu0 %v7228_v19, %s6171_s1  ;;  %v3787_v32 = vpop.f32.mrf.mxu1  ;;  %2568 = vrot.lane.b32.xlu1 %v7263_v15, %s6170_s3 }
 0x24d   : > { %v7277_v28 = vadd.f32 %v3787_v32, %v3674_v38  ;;  %v3676_v53 = vpop.f32.mrf.mxu0  ;;  %8601 = vst [vmem:[#allocation51_spill] sm:$0xff] %v7293_v24  ;;  %v7295_v32 = vmax.f32 %v2449_v6, 0.0 }
 0x24e   : > { %v3789_v48 = vpop.f32.mrf.mxu1 }
 0x24f   : > { %v7283_v52 = vadd.f32 %v3789_v48, %v3676_v53  ;;  %v3678_v39 = vpop.f32.mrf.mxu0  ;;  %8602 = vst [vmem:[#allocation52_spill] sm:$0xff] %v7295_v32  ;;  %v7311_v6 = vmul.f32 %v7295_v32, %v7295_v32 }
 0x250   : > { %2698 = vrot.lane.b32.xlu0 %v7228_v19, %s6172_s9  ;;  %v3791_v34 = vpop.f32.mrf.mxu1  ;;  %2634 = vrot.lane.b32.xlu1 %v7263_v15, %s6171_s1 }
 0x251   : > { %v7287_v44 = vadd.f32 %v3791_v34, %v3678_v39  ;;  %v3680_v2 = vpop.f32.mrf.mxu0  ;;  %8603 = vst [vmem:[#allocation53_spill] sm:$0xff] %v7311_v6 }
 0x252   : > { %v3793_v38 = vpop.f32.mrf.mxu1 }
 0x253   : > { %v7297_v58 = vadd.f32 %v3793_v38, %v3680_v2  ;;  %v3684_v53 = vpop.f32.mrf.mxu0 }
 0x254   : > { %2504 = vrot.lane.b32.xlu0 %v7293_v24, %s6169_s18  ;;  %v3797_v48 = vpop.f32.mrf.mxu1  ;;  %2700 = vrot.lane.b32.xlu1 %v7263_v15, %s6172_s9 }
 0x255   : > { %v7301_v39 = vadd.f32 %v3797_v48, %v3684_v53  ;;  %v3686_v34 = vpop.f32.mrf.mxu0  ;;  %v2450_v53 = vadd.f32 %v6890_v46, %v7140_v3 }
 0x256   : > { %v3799_v23 = vpop.f32.mrf.mxu1 }
 0x257   : > { %v7305_v12 = vadd.f32 %v3799_v23, %v3686_v34  ;;  %v3688_v2 = vpop.f32.mrf.mxu0  ;;  %v7323_v18 = vmax.f32 %v2450_v53, 0.0 }
 0x258   : > { %2570 = vrot.lane.b32.xlu0 %v7293_v24, %s6170_s3  ;;  %v3801_v38 = vpop.f32.mrf.mxu1  ;;  %2506 = vrot.lane.b32.xlu1 %v7311_v6, %s6169_s18 }
 0x259   : > { %v7315_v48 = vadd.f32 %v3801_v38, %v3688_v2  ;;  %v3690_v14 = vpop.f32.mrf.mxu0  ;;  %8604 = vst [vmem:[#allocation54_spill] sm:$0xff] %v7323_v18  ;;  %v2451_v38 = vadd.f32 %v6890_v46, %v7169_v22 }
 0x25a   : > { %v3803_v23 = vpop.f32.mrf.mxu1 }
 0x25b   : > { %v7319_v34 = vadd.f32 %v3803_v23, %v3690_v14  ;;  %v3694_v8 = vpop.f32.mrf.mxu0  ;;  %v7343_v33 = vmax.f32 %v2451_v38, 0.0 }
 0x25c   : > { %2636 = vrot.lane.b32.xlu0 %v7293_v24, %s6171_s1  ;;  %v3807_v32 = vpop.f32.mrf.mxu1  ;;  %2572 = vrot.lane.b32.xlu1 %v7311_v6, %s6170_s3 }
 0x25d   : > { %v7325_v62 = vadd.f32 %v3807_v32, %v3694_v8  ;;  %v3696_v3 = vpop.f32.mrf.mxu0  ;;  %v7341_v8 = vmul.f32 %v7323_v18, %v7323_v18  ;;  %8606 = vst [vmem:[#allocation56_spill] sm:$0xff] %v7343_v33  ;;  %v7359_v38 = vmul.f32 %v7343_v33, %v7343_v33 }
 0x25e   : > { %v3809_v2 = vpop.f32.mrf.mxu1 }
 0x25f   : > { %v7331_v50 = vadd.f32 %v3809_v2, %v3696_v3  ;;  %v3698_v14 = vpop.f32.mrf.mxu0  ;;  %8605 = vst [vmem:[#allocation55_spill] sm:$0xff] %v7341_v8  ;;  %8608 = vst [vmem:[#allocation58_spill] sm:$0xff] %v7359_v38 }
 0x260   : > { %2702 = vrot.lane.b32.xlu0 %v7293_v24, %s6172_s9  ;;  %v3811_v23 = vpop.f32.mrf.mxu1  ;;  %2638 = vrot.lane.b32.xlu1 %v7311_v6, %s6171_s1 }
 0x261   : > { %v7335_v15 = vadd.f32 %v3811_v23, %v3698_v14  ;;  %v3700_v32 = vpop.f32.mrf.mxu0 }
 0x262   : > { %v3813_v53 = vpop.f32.mrf.mxu1 }
 0x263   : > { %v7345_v22 = vadd.f32 %v3813_v53, %v3700_v32  ;;  %v3704_v3 = vpop.f32.mrf.mxu0 }
 0x264   : > { %2508 = vrot.lane.b32.xlu0 %v7341_v8, %s6169_s18  ;;  %v3817_v2 = vpop.f32.mrf.mxu1  ;;  %2704 = vrot.lane.b32.xlu1 %v7311_v6, %s6172_s9 }
 0x265   : > { %v7349_v14 = vadd.f32 %v3817_v2, %v3704_v3  ;;  %v3706_v23 = vpop.f32.mrf.mxu0  ;;  %v2452_v3 = vadd.f32 %v6890_v46, %v7189_v20 }
 0x266   : > { %v3819_v24 = vpop.f32.mrf.mxu1 }
 0x267   : > { %8607 = vst [vmem:[#allocation57_spill] sm:$0xff] %v7349_v14  ;;  %v7353_v18 = vadd.f32 %v3819_v24, %v3706_v23  ;;  %v3708_v32 = vpop.f32.mrf.mxu0  ;;  %v7371_v42 = vmax.f32 %v2452_v3, 0.0 }
 0x268   : > { %2574 = vrot.lane.b32.xlu0 %v7341_v8, %s6170_s3  ;;  %v3821_v53 = vpop.f32.mrf.mxu1  ;;  %2510 = vrot.lane.b32.xlu1 %v7359_v38, %s6169_s18 }
 0x269   : > { %v7363_v2 = vadd.f32 %v3821_v53, %v3708_v32  ;;  %v3710_v6 = vpop.f32.mrf.mxu0  ;;  %8611 = vst [vmem:[#allocation61_spill] sm:$0xff] %v7371_v42  ;;  %v2453_v53 = vadd.f32 %v6890_v46, %v7215_v26 }
 0x26a   : > { %v3823_v24 = vpop.f32.mrf.mxu1 }
 0x26b   : > { %8609 = vst [vmem:[#allocation59_spill] sm:$0xff] %v7363_v2  ;;  %v7367_v23 = vadd.f32 %v3823_v24, %v3710_v6  ;;  %v3714_v19 = vpop.f32.mrf.mxu0  ;;  %v7391_v41 = vmax.f32 %v2453_v53, 0.0 }
 0x26c   : > { %2640 = vrot.lane.b32.xlu0 %v7341_v8, %s6171_s1  ;;  %v3827_v33 = vpop.f32.mrf.mxu1  ;;  %2576 = vrot.lane.b32.xlu1 %v7359_v38, %s6170_s3 }
 0x26d   : > { %8610 = vst [vmem:[#allocation60_spill] sm:$0xff] %v7367_v23  ;;  %v7373_v13 = vadd.f32 %v3827_v33, %v3714_v19  ;;  %v3716_v20 = vpop.f32.mrf.mxu0  ;;  %v7389_v33 = vmul.f32 %v7371_v42, %v7371_v42  ;;  %8616 = vst [vmem:[#allocation66_spill] sm:$0xff] %v7391_v41  ;;  %v7407_v53 = vmul.f32 %v7391_v41, %v7391_v41 }
 0x26e   : > { %v3829_v32 = vpop.f32.mrf.mxu1 }
 0x26f   : > { %8612 = vst [vmem:[#allocation62_spill] sm:$0xff] %v7373_v13  ;;  %v7379_v36 = vadd.f32 %v3829_v32, %v3716_v20  ;;  %v3718_v6 = vpop.f32.mrf.mxu0  ;;  %8615 = vst [vmem:[#allocation65_spill] sm:$0xff] %v7389_v33 }
 0x270   : > { %2706 = vrot.lane.b32.xlu0 %v7341_v8, %s6172_s9  ;;  %v3831_v24 = vpop.f32.mrf.mxu1  ;;  %2642 = vrot.lane.b32.xlu1 %v7359_v38, %s6171_s1  ;;  %8620 = vst [vmem:[#allocation70_spill] sm:$0xff] %v7407_v53 }
 0x271   : > { %8613 = vst [vmem:[#allocation63_spill] sm:$0xff] %v7379_v36  ;;  %v7383_v35 = vadd.f32 %v3831_v24, %v3718_v6  ;;  %v3720_v19 = vpop.f32.mrf.mxu0 }
 0x272   : > { %v3833_v3 = vpop.f32.mrf.mxu1 }
 0x273   : > { %8614 = vst [vmem:[#allocation64_spill] sm:$0xff] %v7383_v35  ;;  %v7393_v26 = vadd.f32 %v3833_v3, %v3720_v19  ;;  %v3724_v20 = vpop.f32.mrf.mxu0 }
 0x274   : > { %2512 = vrot.lane.b32.xlu0 %v7389_v33, %s6169_s18  ;;  %v3837_v32 = vpop.f32.mrf.mxu1  ;;  %2708 = vrot.lane.b32.xlu1 %v7359_v38, %s6172_s9  ;;  %v8622_v38 = vlaneseq }
 0x275   : > { %8617 = vst [vmem:[#allocation67_spill] sm:$0xff] %v7393_v26  ;;  %v7397_v6 = vadd.f32 %v3837_v32, %v3724_v20  ;;  %v3726_v24 = vpop.f32.mrf.mxu0  ;;  %v2454_v20 = vadd.f32 %v6890_v46, %v7247_v40  ;;  %v3770_v40 = vadd.f32 %v7204_v11, %v7202_v45 }
 0x276   : > { %v3839_v8 = vpop.f32.mrf.mxu1 }
 0x277   : > { %8618 = vst [vmem:[#allocation68_spill] sm:$0xff] %v7397_v6  ;;  %v7401_v42 = vadd.f32 %v3839_v8, %v3726_v24  ;;  %v3728_v19 = vpop.f32.mrf.mxu0  ;;  %v762_v8 = vand.u32 127, %v8622_v38  ;;  %v7420_v26 = vmax.f32 %v2454_v20, 0.0  ;;  %v3774_v20 = vadd.f32 %v7237_v47, %v7235_v21 }
 0x278   : > { %2578 = vrot.lane.b32.xlu0 %v7389_v33, %s6170_s3  ;;  %v3841_v3 = vpop.f32.mrf.mxu1  ;;  %2514 = vrot.lane.b32.xlu1 %v7407_v53, %s6169_s18 }
 0x279   : > { %8619 = vst [vmem:[#allocation69_spill] sm:$0xff] %v7401_v42  ;;  %v7411_v32 = vadd.f32 %v3841_v3, %v3728_v19  ;;  %v3730_v24 = vpop.f32.mrf.mxu0  ;;  %8624 = vst [vmem:[#allocation73_spill] sm:$0xff] %v7420_v26  ;;  %v767_v19 = vand.u32 63, %v762_v8  ;;  %v7440_v11 = vmul.f32 %v7420_v26, %v7420_v26 }
 0x27a   : > { %v3843_v6 = vpop.f32.mrf.mxu1 }
 0x27b   : > { %8621 = vst [vmem:[#allocation71_spill] sm:$0xff] %v7411_v32  ;;  %v7416_v35 = vadd.f32 %v3843_v6, %v3730_v24  ;;  %v3880_v41 = vpop.f32.mrf.mxu0  ;;  %v2455_v6 = vadd.f32 %v6890_v46, %v7249_v4  ;;  %v7442_v8 = vadd.s32 4294967294, %v767_v19 }
 0x27c   : > { %2644 = vrot.lane.b32.xlu0 %v7389_v33, %s6171_s1  ;;  %v3993_v42 = vpop.f32.mrf.mxu1  ;;  %2580 = vrot.lane.b32.xlu1 %v7407_v53, %s6170_s3 }
 0x27d   : > { %8623 = vst [vmem:[#allocation72_spill] sm:$0xff] %v7416_v35  ;;  %v3882_v3 = vpop.f32.mrf.mxu0  ;;  %vm776_vm13 = vcmp.ge.s32.totalorder %v7442_v8, 0 }
 0x27e   : > { %v3995_v38 = vpop.f32.mrf.mxu1  ;;  %v3883_v24 = vadd.f32 %v3882_v3, %v3770_v40  ;;  %v7444_v40 = vmax.f32 %v2455_v6, 0.0  ;;  %v3780_v6 = vadd.f32 %v7257_v57, %v7255_v7 }
 0x27f   : > { %v3884_v35 = vpop.f32.mrf.mxu0 }
 0x280   : > { %2710 = vrot.lane.b32.xlu0 %v7389_v33, %s6172_s9  ;;  %v7430_v32 = vpop.f32.mrf.mxu1  ;;  %v7434_v45 = vadd.f32 %v3995_v38, %v3883_v24  ;;  %2646 = vrot.lane.b32.xlu1 %v7407_v53, %s6171_s1  ;;  %8625 = vst [vmem:[#allocation74_spill] sm:$0xff] %v7444_v40  ;;  %v7451_v38 = vadd.s32 4294967295, %v767_v19  ;;  %v3881_v24 = vadd.f32 %v3880_v41, %v7195_v43  ;;  %v7467_v43 = vadd.s32 1, %v767_v19 }
 0x281   : > { %v3886_v46 = vpop.f32.mrf.mxu0  ;;  %v7465_v41 = vmul.f32 %v7444_v40, %v7444_v40  ;;  %v3885_v10 = vadd.f32 %v3884_v35, %v7222_v61 }
 0x282   : > { %v3999_v4 = vpop.f32.mrf.mxu1  ;;  %v4088_v3 = vrot.slane %v7434_v45, 7  ;;  %v3887_v33 = vadd.f32 %v3886_v46, %v3774_v20  ;;  %v4152_v2 = vrot.slane %v7434_v45, 1  ;;  %vm8477_vm15 = vcmp.ge.s32.totalorder %v7451_v38, 0 }
 0x283   : > { %v3890_v21 = vpop.f32.mrf.mxu0  ;;  %v3994_v45 = vadd.f32 %v3993_v42, %v3881_v24 }
 0x284   : > { %2516 = vrot.lane.b32.xlu0 %v7440_v11, %s6169_s18  ;;  %v7449_v47 = vpop.f32.mrf.mxu1  ;;  %v4000_v26 = vadd.f32 %v3999_v4, %v3887_v33  ;;  %2712 = vrot.lane.b32.xlu1 %v7407_v53, %s6172_s9  ;;  %v2489_v51 = vpop.permute.xlu0 %2488  ;;  %v4135_v20 = vsel %vm8626_vm3, 0.0, %v4088_v3  ;;  %v7474_v4 = vadd.s32 2, %v767_v19  ;;  %v3891_v35 = vadd.f32 %v3890_v21, %v7251_v9 }
 0x285   : > { %v3892_v46 = vpop.f32.mrf.mxu0  ;;  %v4136_v53 = vsel %vm6872_vm1, %v4135_v20, 0.0  ;;  %v2522_v31 = vsel %vm776_vm13, %v2489_v51, 0.0  ;;  %vm785_vm1 = vcmp.lt.s32.totalorder %v7467_v43, 64 }
 0x286   : > { %v4005_v13 = vpop.f32.mrf.mxu1  ;;  %v4153_v36 = vrot.slane %v4000_v26, 1  ;;  %v3893_v33 = vadd.f32 %v3892_v46, %v3780_v6  ;;  %v4089_v46 = vrot.slane %v4000_v26, 7  ;;  %vm789_vm3 = vcmp.lt.s32.totalorder %v7474_v4, 64 }
 0x287   : > { %v7469_v7 = vpop.f32.mrf.mxu0 }
 0x288   : > { %2582 = vrot.lane.b32.xlu0 %v7440_v11, %s6170_s3  ;;  %v7471_v57 = vpop.f32.mrf.mxu1  ;;  %v4154_v40 = vsel %vm8627_vm14, %v4152_v2, %v4153_v36  ;;  %2518 = vrot.lane.b32.xlu1 %v7465_v41, %s6169_s18  ;;  %v2555_v6 = vpop.permute.xlu0 %2554  ;;  %v4006_v19 = vadd.f32 %v4005_v13, %v3893_v33  ;;  %vm8629_vm14 = vcmask 1040384  }
 0x289   : > { %v4216_v54 = vsel %vm8628_vm2, %v4136_v53, %v4154_v40  ;;  %v3896_v14 = vpop.f32.mrf.mxu0  ;;  %v7486_v20 = vpop.permute.xlu1 %2556  ;;  %v2588_v51 = vsel %vm8477_vm15, %v2555_v6, 0.0  ;;  %v3998_v40 = vadd.f32 %v7430_v32, %v3885_v10  ;;  %v4090_v21 = vsel %vm8629_vm14, %v4088_v3, %v4089_v46  ;;  %vm8631_vm15 = vmmov %vm8629_vm14 }
 0x28a   : > { %v4009_v42 = vpop.f32.mrf.mxu1  ;;  %v4232_v24 = vadd.f32 %v4216_v54, %v3994_v45  ;;  %v3897_v63 = vadd.f32 %v3896_v14, %v7271_v60  ;;  %v4091_v61 = vrot.slane %v4006_v19, 7  ;;  %v4155_v2 = vrot.slane %v4006_v19, 1  ;;  %v7499_v54 = vld [vmem:[%s8544_s20] ss:$0 sm:$0xff] }
 0x28b   : > { %v3900_v13 = vpop.f32.mrf.mxu0  ;;  %v2538_v14 = vadd.f32 %v2522_v31, %v6930_v17  ;;  %vm8630_vm2 = vcmask 1046528   ;;  %v4004_v10 = vadd.f32 %v7449_v47, %v3891_v35  ;;  %vm8632_vm14 = vcmask 523264  }
 0x28c   : > { %2648 = vrot.lane.b32.xlu0 %v7440_v11, %s6171_s1  ;;  %v7494_v26 = vpop.f32.mrf.mxu1  ;;  %v4248_v60 = vadd.f32 %v7499_v54, %v4232_v24  ;;  %v4010_v53 = vadd.f32 %v4009_v42, %v3897_v63  ;;  %2584 = vrot.lane.b32.xlu1 %v7465_v41, %s6170_s3  ;;  %v2621_v9 = vpop.permute.xlu0 %2620  ;;  %v4156_v33 = vsel %vm8630_vm2, %v4153_v36, %v4155_v2 }
 0x28d   : > { %v2654_v45 = vsel %vm785_vm1, %v2621_v9, 0.0  ;;  %v3902_v6 = vpop.f32.mrf.mxu0  ;;  %v4092_v17 = vsel %vm8631_vm15, %v4089_v46, %v4091_v61  ;;  %v4201_v31 = vsel %vm6893_vm4, %v4156_v33, 0.0  ;;  %v2604_v42 = vadd.f32 %v2588_v51, %v2538_v14  ;;  %v2623_v63 = vpop.permute.xlu1 %2622  ;;  %vm8633_vm4 = vmmov %vm8631_vm15 }
 0x28e   : > { %v4015_v19 = vpop.f32.mrf.mxu1  ;;  %v4093_v24 = vrot.slane %v4010_v53, 7  ;;  %v4217_v36 = vsel %vm8632_vm14, %v4090_v21, %v4201_v31  ;;  %v4157_v32 = vrot.slane %v4010_v53, 1  ;;  %v3903_v3 = vadd.f32 %v3902_v6, %v7283_v52  ;;  %vm8634_vm15 = vmmov %vm8630_vm2 }
 0x28f   : > { %v7519_v9 = vpop.f32.mrf.mxu0  ;;  %v7523_v46 = vmax.f32 %v4248_v60, 0.0  ;;  %v4233_v49 = vadd.f32 %v4217_v36, %v3998_v40  ;;  %v2670_v14 = vadd.f32 %v2654_v45, %v2604_v42  ;;  %v4138_v47 = vsel %vm6899_vm5, %v4092_v17, 0.0  ;;  %vm8635_vm2 = vmmov %vm8632_vm14 }
 0x290   : > { %2714 = vrot.lane.b32.xlu0 %v7440_v11, %s6172_s9  ;;  %v7521_v23 = vpop.f32.mrf.mxu1  ;;  %v4094_v51 = vsel %vm8633_vm4, %v4091_v61, %v4093_v24  ;;  %2650 = vrot.lane.b32.xlu1 %v7465_v41, %s6171_s1  ;;  %v2687_v33 = vpop.permute.xlu0 %2686  ;;  %v4158_v35 = vsel %vm8634_vm15, %v4155_v2, %v4157_v32  ;;  %v4016_v52 = vadd.f32 %v4015_v19, %v3903_v3  ;;  %vm8636_vm5 = vmmov %vm8633_vm4 }
 0x291   : > { %v2720_v53 = vsel %vm789_vm3, %v2687_v33, 0.0  ;;  %v3906_v21 = vpop.f32.mrf.mxu0  ;;  %v3895_v40 = vadd.f32 %v7469_v7, %v7267_v56  ;;  %v4218_v61 = vsel %vm8635_vm2, %v4138_v47, %v4158_v35  ;;  %v2689_v31 = vpop.permute.xlu1 %2688  ;;  %v4249_v37 = vadd.f32 %v7499_v54, %v4233_v49  ;;  %vm8637_vm14 = vmmov %vm8634_vm15 }
 0x292   : > { %v4019_v60 = vpop.f32.mrf.mxu1  ;;  %v2736_v45 = vadd.f32 %v2720_v53, %v2670_v14  ;;  %v3907_v6 = vadd.f32 %v3906_v21, %v7297_v58  ;;  %v4234_v17 = vadd.f32 %v4218_v61, %v4004_v10  ;;  %v4095_v42 = vrot.slane %v4016_v52, 7  ;;  %vm8638_vm4 = vmmov %vm8635_vm2 }
 0x293   : > { %v4159_v2 = vrot.slane %v4016_v52, 1  ;;  %v3910_v19 = vpop.f32.mrf.mxu0  ;;  %v7542_v33 = vmul.f32 %v7523_v46, %v7523_v46  ;;  %v3901_v58 = vadd.f32 %v3900_v13, %v7277_v28  ;;  %v4008_v47 = vadd.f32 %v7471_v57, %v3895_v40  ;;  %vm8640_vm15 = vmmov %vm8636_vm5 }
 0x294   : > { %v7538_v36 = vpop.f32.mrf.mxu1  ;;  %v2752_v3 = vmul.f32 2e-05, %v2736_v45  ;;  %2716 = vrot.lane.b32.xlu1 %v7465_v41, %s6172_s9  ;;  %v2491_v56 = vpop.permute.xlu0 %2490  ;;  %v4096_v7 = vsel %vm8636_vm5, %v4093_v24, %v4095_v42  ;;  %v4020_v53 = vadd.f32 %v4019_v60, %v3907_v6  ;;  %v7554_v61 = vmax.f32 %v4249_v37, 0.0  ;;  %vm8641_vm2 = vmmov %vm8637_vm14 }
 0x295   : > { %v4160_v10 = vsel %vm8637_vm14, %v4157_v32, %v4159_v2  ;;  %v3912_v49 = vpop.f32.mrf.mxu0  ;;  %4296 = vrot.lane.b32.xlu0 %v7542_v33, %s6169_s18  ;;  %v2493_v21 = vpop.permute.xlu1 %2492  ;;  %v2523_v13 = vsel %vm776_vm13, %v2491_v56, 0.0  ;;  %v2655_v37 = vsel %vm785_vm1, %v2623_v63, 0.0  ;;  %vm8642_vm5 = vmmov %vm8638_vm4 }
 0x296   : > { %v4025_v14 = vpop.f32.mrf.mxu1  ;;  %v4203_v35 = vsel %vm6937_vm7, %v4160_v10, 0.0  ;;  %v2768_v52 = vadd.f32 1.0, %v2752_v3  ;;  %v3913_v24 = vadd.f32 %v3912_v49, %v7305_v12  ;;  %v4097_v40 = vrot.slane %v4020_v53, 7  ;;  %vm8644_vm14 = vmmov %vm8641_vm2 }
 0x297   : > { %v4219_v28 = vsel %vm8638_vm4, %v4094_v51, %v4203_v35  ;;  %v7560_v32 = vpop.f32.mrf.mxu0  ;;  %v4161_v45 = vrot.slane %v4020_v53, 1  ;;  %vm8639_vm7 = vcmp.ge.s32.totalorder %v7451_v38, 0  ;;  %v4014_v51 = vadd.f32 %v7494_v26, %v3901_v58 }
 0x298   : > { %v7562_v57 = vpop.f32.mrf.mxu1  ;;  %v7564_v1 = vadd.f32 %v4219_v28, %v4008_v47  ;;  %5798 = vrsqrt.f32 %v2768_v52  ;;  %v2559_v60 = vpop.permute.xlu0 %2558  ;;  %v2589_v6 = vsel %vm8639_vm7, %v7486_v20, 0.0  ;;  %v2539_v12 = vadd.f32 %v2523_v13, %v6962_v0  ;;  %vm8645_vm4 = vmmov %vm8639_vm7 }
 0x299   : > { %v3916_v3 = vpop.f32.mrf.mxu0  ;;  %v4140_v10 = vsel %vm6917_vm6, %v4096_v7, 0.0  ;;  %v4098_v49 = vsel %vm8640_vm15, %v4095_v42, %v4097_v40  ;;  %v4162_v47 = vsel %vm8641_vm2, %v4159_v2, %v4161_v45  ;;  %v2524_v35 = vsel %vm776_vm13, %v2493_v21, 0.0  ;;  %4360 = vrot.lane.b32.xlu0 %v7542_v33, %s6170_s3  ;;  %v2495_v20 = vpop.permute.xlu1 %2494  ;;  %vm8643_vm6 = vmmov %vm8640_vm15 }
 0x29a   : > { %v4029_v56 = vpop.f32.mrf.mxu1  ;;  %v4220_v26 = vsel %vm8642_vm5, %v4140_v10, %v4162_v47  ;;  %v2605_v63 = vadd.f32 %v2589_v6, %v2539_v12  ;;  %v4026_v0 = vadd.f32 %v4025_v14, %v3913_v24  ;;  %v7584_v58 = vmul.f32 %v7554_v61, %v7554_v61  ;;  %vm8646_vm7 = vmmov %vm8642_vm5 }
 0x29b   : > { %v7586_v59 = vpop.f32.mrf.mxu0  ;;  %v4250_v2 = vadd.f32 %v7499_v54, %v4234_v17  ;;  %v3905_v7 = vadd.f32 %v7519_v9, %v7287_v44  ;;  %v7593_v52 = vadd.f32 %v4220_v26, %v4014_v51  ;;  %v3917_v53 = vadd.f32 %v3916_v3, %v7319_v34  ;;  %vm8648_vm15 = vmmov %vm8641_vm2 }
 0x29c   : > { %v7588_v42 = vpop.f32.mrf.mxu1  ;;  %v2625_v21 = vpop.permute.xlu0 %2624  ;;  %v2671_v28 = vadd.f32 %v2655_v37, %v2605_v63  ;;  %v4099_v14 = vrot.slane %v4026_v0, 7  ;;  %v4163_v13 = vrot.slane %v4026_v0, 1  ;;  %4298 = vrot.lane.b32.xlu1 %v7584_v58, %s6169_s18  ;;  %v2721_v12 = vsel %vm789_vm3, %v2689_v31, 0.0  ;;  %vm8649_vm2 = vmmov %vm8642_vm5 }
 0x29d   : > { %v3922_v24 = vpop.f32.mrf.mxu0  ;;  %v3911_v17 = vadd.f32 %v3910_v19, %v7301_v39  ;;  %v2540_v44 = vadd.f32 %v2524_v35, %v7031_v30  ;;  %4424 = vrot.lane.b32.xlu0 %v7542_v33, %s6171_s1  ;;  %v2561_v34 = vpop.permute.xlu1 %2560  ;;  %v2590_v3 = vsel %vm8645_vm4, %v2559_v60, 0.0  ;;  %v7612_v31 = vmax.f32 %v4250_v2, 0.0  ;;  %vm8651_vm5 = vmmov %vm8643_vm6 }
 0x29e   : > { %v4035_v6 = vpop.f32.mrf.mxu1  ;;  %v2737_v9 = vadd.f32 %v2721_v12, %v2671_v28  ;;  %v4100_v51 = vsel %vm8643_vm6, %v4097_v40, %v4099_v14  ;;  %v4164_v37 = vsel %vm8644_vm14, %v4161_v45, %v4163_v13  ;;  %v4018_v30 = vadd.f32 %v7521_v23, %v3905_v7 }
 0x29f   : > { %v7608_v10 = vpop.f32.mrf.mxu0  ;;  %v4205_v39 = vsel %vm6965_vm8, %v4164_v37, 0.0  ;;  %v4030_v19 = vadd.f32 %v4029_v56, %v3917_v53  ;;  %v2656_v45 = vsel %vm785_vm1, %v2625_v21, 0.0  ;;  %v3923_v60 = vadd.f32 %v3922_v24, %v7331_v50  ;;  %vm8647_vm8 = vmmov %vm8643_vm6 }
 0x2a0   : > { %v7610_v47 = vpop.f32.mrf.mxu1  ;;  %v2691_v35 = vpop.permute.xlu0 %2690  ;;  %v2753_v26 = vmul.f32 2e-05, %v2737_v9  ;;  %v4221_v40 = vsel %vm8646_vm7, %v4098_v49, %v4205_v39  ;;  %4362 = vrot.lane.b32.xlu1 %v7584_v58, %s6170_s3  ;;  %v2606_v23 = vadd.f32 %v2590_v3, %v2540_v44  ;;  %v4251_v49 = vadd.f32 %v7499_v54, %v7564_v1  ;;  %vm8652_vm6 = vmmov %vm8644_vm14 }
 0x2a1   : > { %v3926_v63 = vpop.f32.mrf.mxu0  ;;  %v7623_v2 = vadd.f32 %v4221_v40, %v4018_v30  ;;  %v4101_v5 = vrot.slane %v4030_v19, 7  ;;  %v4165_v7 = vrot.slane %v4030_v19, 1  ;;  %4488 = vrot.lane.b32.xlu0 %v7542_v33, %s6172_s9  ;;  %v2627_v56 = vpop.permute.xlu1 %2626  ;;  %v4024_v28 = vadd.f32 %v7538_v36, %v3911_v17  ;;  %vm8653_vm14 = vmmov %vm8649_vm2 }
 0x2a2   : > { %v4039_v0 = vpop.f32.mrf.mxu1  ;;  %v2769_v53 = vadd.f32 1.0, %v2753_v26  ;;  %v2525_v50 = vsel %vm776_vm13, %v2495_v20, 0.0  ;;  %v4142_v12 = vsel %vm6988_vm9, %v4100_v51, 0.0  ;;  %v2672_v37 = vadd.f32 %v2656_v45, %v2606_v23  ;;  %vm8650_vm9 = vmmov %vm8645_vm4 }
 0x2a3   : > { %v7632_v21 = vpop.f32.mrf.mxu0  ;;  %v4102_v44 = vsel %vm8647_vm8, %v4099_v14, %v4101_v5  ;;  %v4166_v9 = vsel %vm8648_vm15, %v4163_v13, %v4165_v7  ;;  %v7643_v17 = vadd.f32 %v4035_v6, %v3923_v60  ;;  %v2722_v29 = vsel %vm789_vm3, %v2691_v35, 0.0  ;;  %vm8655_vm4 = vmmov %vm8652_vm6 }
 0x2a4   : > { %v7634_v24 = vpop.f32.mrf.mxu1  ;;  %v7640_v3 = vpop.permute.xlu0 %2496  ;;  %5800 = vrsqrt.f32 %v2769_v53  ;;  %v4222_v36 = vsel %vm8649_vm2, %v4142_v12, %v4166_v9  ;;  %4426 = vrot.lane.b32.xlu1 %v7584_v58, %s6171_s1  ;;  %v3915_v51 = vadd.f32 %v7560_v32, %v7315_v48  ;;  %v2738_v39 = vadd.f32 %v2722_v29, %v2672_v37  ;;  %vm8656_vm7 = vmmov %vm8649_vm2 }
 0x2a5   : > { %v5799_v1 = vpop.eup %5798  ;;  %v3932_v20 = vpop.f32.mrf.mxu0  ;;  %v7652_v30 = vadd.f32 %v4222_v36, %v4024_v28  ;;  %v2591_v6 = vsel %vm8650_vm9, %v2561_v34, 0.0  ;;  %v4103_v26 = vrot.slane %v7643_v17, 7  ;;  %v4167_v40 = vrot.slane %v7643_v17, 1  ;;  %vm8661_vm8 = vmmov %vm8655_vm4 }
 0x2a6   : > { %v4045_v14 = vpop.f32.mrf.mxu1  ;;  %v2800_v13 = vmul.f32 %v5799_v1, %v6912_v55  ;;  %v2693_v19 = vpop.permute.xlu1 %2692  ;;  %v3927_v35 = vadd.f32 %v3926_v63, %v7345_v22  ;;  %v4252_v55 = vadd.f32 %v7499_v54, %v7593_v52  ;;  %v2541_v48 = vadd.f32 %v2525_v50, %v7061_v27  ;;  %vm8662_vm15 = vmmov %vm8650_vm9 }
 0x2a7   : > { %v7659_v45 = vpop.f32.mrf.mxu0  ;;  %v2754_v32 = vmul.f32 2e-05, %v2738_v39  ;;  %v7672_v34 = vmul.f32 %v7612_v31, %v7612_v31  ;;  %v7676_v22 = vmax.f32 %v4251_v49, 0.0  ;;  %v4104_v63 = vsel %vm8651_vm5, %v4101_v5, %v4103_v26  ;;  %vm8670_vm9 = vmmov %vm8651_vm5 }
 0x2a8   : > { %v7661_v60 = vpop.f32.mrf.mxu1  ;;  %2816 = vst [vmem:[%s7664_s5] sm:$0xff] %v2800_v13  ;;  %v7674_v23 = vpop.permute.xlu0 %2562  ;;  %v4168_v53 = vsel %vm8652_vm6, %v4165_v7, %v4167_v40  ;;  %v2657_v28 = vsel %vm785_vm1, %v2627_v56, 0.0  ;;  %4490 = vrot.lane.b32.xlu1 %v7584_v58, %s6172_s9  ;;  %v4028_v50 = vadd.f32 %v7562_v57, %v3915_v51  ;;  %v2607_v12 = vadd.f32 %v2591_v6, %v2541_v48  ;;  %vm8672_vm6 = vmmov %vm8649_vm2 }
 0x2a9   : > { %v3936_v27 = vpop.f32.mrf.mxu0  ;;  %v4207_v9 = vsel %vm7009_vm10, %v4168_v53, 0.0  ;;  %v2770_v49 = vadd.f32 1.0, %v2754_v32  ;;  %4300 = vrot.lane.b32.xlu0 %v7672_v34, %s6169_s18  ;;  %v3921_v7 = vadd.f32 %v7586_v59, %v7325_v62  ;;  %v4040_v37 = vadd.f32 %v4039_v0, %v3927_v35  ;;  %vm8654_vm10 = vmmov %vm8651_vm5 }
 0x2aa   : > { %v4049_v52 = vpop.f32.mrf.mxu1  ;;  %v7689_v5 = vpop.permute.xlu1 %2498  ;;  %v4223_v56 = vsel %vm8653_vm14, %v4102_v44, %v4207_v9  ;;  %v3933_v1 = vadd.f32 %v3932_v20, %v7353_v18  ;;  %v7699_v16 = vmax.f32 %v4252_v55, 0.0  ;;  %v2673_v29 = vadd.f32 %v2657_v28, %v2607_v12  ;;  %v8657_v28 = vld [vmem:[#allocation60_spill] sm:$0xff]  ;;  %vm8674_vm14 = vmmov %vm8662_vm15 }
 0x2ab   : > { %v7695_v36 = vpop.f32.mrf.mxu0  ;;  %v7701_v17 = vadd.f32 %v4223_v56, %v4028_v50  ;;  %5802 = vrsqrt.f32 %v2770_v49  ;;  %v3925_v51 = vadd.f32 %v7608_v10, %v7335_v15  ;;  %v4105_v62 = vrot.slane %v4040_v37, 7 }
 0x2ac   : > { %v7697_v57 = vpop.f32.mrf.mxu1  ;;  %v2629_v13 = vpop.permute.xlu0 %2628  ;;  %v4169_v59 = vrot.slane %v4040_v37, 1  ;;  %v2723_v0 = vsel %vm789_vm3, %v2693_v19, 0.0  ;;  %v4253_v20 = vadd.f32 %v7499_v54, %v7623_v2  ;;  %v4046_v6 = vadd.f32 %v4045_v14, %v3933_v1 }
 0x2ad   : > { %v3942_v18 = vpop.f32.mrf.mxu0  ;;  %v2739_v39 = vadd.f32 %v2723_v0, %v2673_v29  ;;  %4364 = vrot.lane.b32.xlu0 %v7672_v34, %s6170_s3  ;;  %v7713_v35 = vmul.f32 %v7676_v22, %v7676_v22  ;;  %v4034_v10 = vadd.f32 %v7588_v42, %v3921_v7  ;;  %v4144_v19 = vsel %vm7044_vm11, %v4104_v63, 0.0  ;;  %v8658_v42 = vld [vmem:[#allocation57_spill] sm:$0xff]  ;;  %vm8659_vm11 = vmmov %vm8651_vm5  ;;  %v8660_v29 = vld [vmem:[#allocation32_spill] sm:$0xff] }
 0x2ae   : > { %v4055_v44 = vpop.f32.mrf.mxu1  ;;  %v7715_v15 = vpop.permute.xlu1 %2564  ;;  %v4106_v55 = vsel %vm8654_vm10, %v4103_v26, %v4105_v62  ;;  %v4170_v2 = vsel %vm8655_vm4, %v4167_v40, %v4169_v59  ;;  %v4107_v53 = vrot.slane %v4046_v6, 7  ;;  %v3937_v50 = vadd.f32 %v3936_v27, %v8657_v28  ;;  %vm8671_vm5 = vmmov %vm8655_vm4 }
 0x2af   : > { %v7722_v48 = vpop.f32.mrf.mxu0  ;;  %v4224_v32 = vsel %vm8656_vm7, %v4144_v19, %v4170_v2  ;;  %v2755_v14 = vmul.f32 2e-05, %v2739_v39  ;;  %4302 = vrot.lane.b32.xlu1 %v7713_v35, %s6169_s18  ;;  %v3931_v25 = vadd.f32 %v7632_v21, %v8658_v42  ;;  %v2526_v26 = vsel %vm776_vm13, %v7640_v3, 0.0  ;;  %vm8676_vm10 = vmmov %vm8670_vm9 }
 0x2b0   : > { %v2695_v12 = vpop.permute.xlu0 %2694  ;;  %v7730_v63 = vadd.f32 %v4224_v32, %v4034_v10  ;;  %v4171_v40 = vrot.slane %v4046_v6, 1  ;;  %v7735_v9 = vpop.f32.mrf.mxu1  ;;  %v7737_v7 = vmax.f32 %v4253_v20, 0.0  ;;  %v4038_v56 = vadd.f32 %v7610_v47, %v3925_v51  ;;  %v8663_v51 = vld [vmem:[#allocation39_spill] sm:$0xff] }
 0x2b1   : > { %v5801_v49 = vpop.eup %5800  ;;  %v2771_v27 = vadd.f32 1.0, %v2755_v14  ;;  %v4108_v37 = vsel %vm8659_vm11, %v4105_v62, %v4107_v53  ;;  %4428 = vrot.lane.b32.xlu0 %v7672_v34, %s6171_s1  ;;  %v3946_v21 = vpop.f32.mrf.mxu0  ;;  %v4254_v3 = vadd.f32 %v7499_v54, %v7652_v30  ;;  %v2592_v47 = vsel %vm8662_vm15, %v7674_v23, 0.0  ;;  %v8665_v23 = vld [vmem:[#allocation63_spill] sm:$0xff]  ;;  %vm8680_vm11 = vmmov %vm8649_vm2 }
 0x2b2   : > { %v2631_v1 = vpop.permute.xlu1 %2630  ;;  %v2801_v0 = vmul.f32 %v5801_v49, %v8660_v29  ;;  %v4172_v39 = vsel %vm8661_vm8, %v4169_v59, %v4171_v40  ;;  %v2542_v20 = vadd.f32 %v2526_v26, %v8663_v51  ;;  %v4050_v10 = vadd.f32 %v4049_v52, %v3937_v50  ;;  %v4059_v14 = vpop.f32.mrf.mxu1  ;;  %vm8688_vm15 = vmmov %vm8670_vm9 }
 0x2b3   : > { %5804 = vrsqrt.f32 %v2771_v27  ;;  %v4209_v6 = vsel %vm7066_vm12, %v4172_v39, 0.0  ;;  %4366 = vrot.lane.b32.xlu1 %v7713_v35, %s6170_s3  ;;  %v4044_v30 = vadd.f32 %v7634_v24, %v3931_v25  ;;  %v2658_v2 = vsel %vm785_vm1, %v2629_v13, 0.0  ;;  %v3950_v50 = vpop.f32.mrf.mxu0  ;;  %v8666_v27 = vld [vmem:[#allocation59_spill] sm:$0xff] }
 0x2b4   : > { %2817 = vst [vmem:[%s7664_s5 + $0x8] sm:$0xff] %v2801_v0  ;;  %v4225_v59 = vsel %vm8649_vm2, %v4106_v55, %v4209_v6  ;;  %v3943_v32 = vadd.f32 %v3942_v18, %v8665_v23  ;;  %v2608_v42 = vadd.f32 %v2592_v47, %v2542_v20  ;;  %v4109_v26 = vrot.slane %v4050_v10, 7  ;;  %v8667_v55 = vld [vmem:[#allocation62_spill] sm:$0xff]  ;;  %v7785_v20 = vpop.f32.mrf.mxu1  ;;  %vm8689_vm2 = vmmov %vm8655_vm4 }
 0x2b5   : > { %v7761_v28 = vadd.f32 %v4225_v59, %v4038_v56  ;;  %v4173_v52 = vrot.slane %v4050_v10, 1  ;;  %4492 = vrot.lane.b32.xlu0 %v7672_v34, %s6172_s9  ;;  %v3935_v24 = vadd.f32 %v7659_v45, %v8666_v27  ;;  %v2527_v13 = vsel %vm776_vm13, %v7689_v5, 0.0  ;;  %v8668_v56 = vld [vmem:[#allocation36_spill] sm:$0xff]  ;;  %v3952_v59 = vpop.f32.mrf.mxu0  ;;  %v8675_v23 = vld [vmem:[#allocation42_spill] sm:$0xff]  ;;  %v8677_v27 = vld [vmem:[#allocation67_spill] sm:$0xff] }
 0x2b6   : > { %v2501_v19 = vpop.permute.xlu0 %2500  ;;  %v2697_v49 = vpop.permute.xlu1 %2696  ;;  %v3941_v18 = vadd.f32 %v7695_v36, %v8667_v55  ;;  %v7772_v25 = vadd.f32 %v4055_v44, %v3943_v32  ;;  %vm8669_vm12 = vnez %v8668_v56  ;;  %v4110_v0 = vsel %vm8670_vm9, %v4107_v53, %v4109_v26  ;;  %v8673_v53 = vld [vmem:[#allocation33_spill] sm:$0xff]  ;;  %v8678_v56 = vld [vmem:[#allocation38_spill] sm:$0xff]  ;;  %vm8691_vm9 = vmmov %vm8672_vm6 }
 0x2b7   : > { %v4146_v29 = vsel %vm8669_vm12, %v4108_v37, 0.0  ;;  %v4174_v39 = vsel %vm8671_vm5, %v4171_v40, %v4173_v52  ;;  %v2674_v47 = vadd.f32 %v2658_v2, %v2608_v42  ;;  %4430 = vrot.lane.b32.xlu1 %v7713_v35, %s6171_s1  ;;  %v2724_v37 = vsel %vm789_vm3, %v2695_v12, 0.0  ;;  %vm8690_vm12 = vmmov %vm8674_vm14 }
 0x2b8   : > { %v5803_v51 = vpop.eup %5802  ;;  %v4226_v5 = vsel %vm8672_vm6, %v4146_v29, %v4174_v39  ;;  %v4111_v36 = vrot.slane %v7772_v25, 7  ;;  %v4175_v44 = vrot.slane %v7772_v25, 1  ;;  %v2593_v6 = vsel %vm8674_vm14, %v7715_v15, 0.0  ;;  %vm8694_vm5 = vmmov %vm8676_vm10 }
 0x2b9   : > { %v2802_v40 = vmul.f32 %v5803_v51, %v8673_v53  ;;  %v7788_v62 = vadd.f32 %v4226_v5, %v4044_v30  ;;  %v2740_v10 = vadd.f32 %v2724_v37, %v2674_v47  ;;  %v2543_v32 = vadd.f32 %v2527_v13, %v8675_v23  ;;  %v3954_v5 = vpop.f32.mrf.mxu0  ;;  %v8683_v23 = vld [vmem:[#allocation41_spill] sm:$0xff]  ;;  %vm8695_vm6 = vmmov %vm8689_vm2 }
 0x2ba   : > { %v2567_v45 = vpop.permute.xlu0 %2566  ;;  %v7793_v2 = vpop.permute.xlu1 %2502  ;;  %v4112_v42 = vsel %vm8676_vm10, %v4109_v26, %v4111_v36  ;;  %v4176_v12 = vsel %vm8655_vm4, %v4173_v52, %v4175_v44  ;;  %v3947_v55 = vadd.f32 %v3946_v21, %v8677_v27  ;;  %v7799_v25 = vmax.f32 %v4254_v3, 0.0  ;;  %v8685_v27 = vld [vmem:[#allocation68_spill] sm:$0xff]  ;;  %vm8698_vm10 = vmmov %vm8691_vm9 }
 0x2bb   : > { %2818 = vst [vmem:[%s7664_s5 + $0x10] sm:$0xff] %v2802_v40  ;;  %v4048_v30 = vadd.f32 %v7661_v60, %v3935_v24  ;;  %vm8679_vm7 = vnez %v8678_v56  ;;  %v2756_v29 = vmul.f32 2e-05, %v2740_v10  ;;  %4494 = vrot.lane.b32.xlu1 %v7713_v35, %s6172_s9  ;;  %v2609_v13 = vadd.f32 %v2593_v6, %v2543_v32  ;;  %v4065_v3 = vpop.f32.mrf.mxu1  ;;  %v8681_v40 = vld [vmem:[#allocation69_spill] sm:$0xff]  ;;  %v8682_v10 = vld [vmem:[#allocation64_spill] sm:$0xff]  ;;  %vm8700_vm4 = vmmov %vm8690_vm12 }
 0x2bc   : > { %v4211_v15 = vsel %vm8679_vm7, %v4176_v12, 0.0  ;;  %v2659_v52 = vsel %vm785_vm1, %v2631_v1, 0.0  ;;  %v7812_v21 = vmul.f32 %v7699_v16, %v7699_v16  ;;  %v4255_v60 = vadd.f32 %v7499_v54, %v7701_v17 }
 0x2bd   : > { %v4227_v26 = vsel %vm8680_vm11, %v4110_v0, %v4211_v15  ;;  %v4054_v24 = vadd.f32 %v7697_v57, %v3941_v18  ;;  %v2772_v51 = vadd.f32 1.0, %v2756_v29  ;;  %v2675_v53 = vadd.f32 %v2659_v52, %v2609_v13  ;;  %v4067_v56 = vpop.f32.mrf.mxu1  ;;  %v8687_v29 = vld [vmem:[#allocation47_spill] sm:$0xff]  ;;  %vm8703_vm11 = vmmov %vm8694_vm5 }
 0x2be   : > { %v2633_v39 = vpop.permute.xlu0 %2632  ;;  %v7817_v47 = vadd.f32 %v4227_v26, %v4048_v30  ;;  %v2569_v37 = vpop.permute.xlu1 %2568  ;;  %4304 = vrot.lane.b32.xlu0 %v7812_v21, %s6169_s18  ;;  %v4060_v1 = vadd.f32 %v4059_v14, %v3947_v55  ;;  %v2528_v0 = vsel %vm776_vm13, %v2501_v19, 0.0  ;;  %v3953_v6 = vadd.f32 %v3952_v59, %v8681_v40  ;;  %v8686_v59 = vld [vmem:[#allocation34_spill] sm:$0xff] }
 0x2bf   : > { %v3945_v17 = vadd.f32 %v7722_v48, %v8682_v10  ;;  %vm8684_vm8 = vnez %v8683_v23  ;;  %5806 = vrsqrt.f32 %v2772_v51  ;;  %v2725_v18 = vsel %vm789_vm3, %v2697_v49, 0.0  ;;  %v3956_v26 = vpop.f32.mrf.mxu0 }
 0x2c0   : > { %v4148_v57 = vsel %vm8684_vm8, %v4112_v42, 0.0  ;;  %v5805_v12 = vpop.eup %5804  ;;  %v3951_v30 = vadd.f32 %v3950_v50, %v8685_v27  ;;  %v4113_v14 = vrot.slane %v4060_v1, 7  ;;  %v4177_v55 = vrot.slane %v4060_v1, 1  ;;  %v8692_v1 = vld [vmem:[#allocation71_spill] sm:$0xff]  ;;  %v4069_v27 = vpop.f32.mrf.mxu1  ;;  %vm8704_vm8 = vmmov %vm8689_vm2 }
 0x2c1   : > { %v2741_v19 = vadd.f32 %v2725_v18, %v2675_v53  ;;  %v2803_v15 = vmul.f32 %v5805_v12, %v8686_v59  ;;  %v2544_v48 = vadd.f32 %v2528_v0, %v8687_v29  ;;  %v4066_v13 = vadd.f32 %v4065_v3, %v3953_v6  ;;  %v8693_v18 = vld [vmem:[#allocation72_spill] sm:$0xff]  ;;  %v8696_v29 = vld [vmem:[#allocation43_spill] sm:$0xff] }
 0x2c2   : > { %v2699_v32 = vpop.permute.xlu0 %2698  ;;  %v7835_v42 = vmul.f32 %v7737_v7, %v7737_v7  ;;  %v2635_v49 = vpop.permute.xlu1 %2634  ;;  %v4114_v52 = vsel %vm8688_vm15, %v4111_v36, %v4113_v14  ;;  %v4178_v50 = vsel %vm8689_vm2, %v4175_v44, %v4177_v55  ;;  %4368 = vrot.lane.b32.xlu0 %v7812_v21, %s6170_s3  ;;  %v2594_v53 = vsel %vm8690_vm12, %v2567_v45, 0.0  ;;  %vm8705_vm15 = vmmov %vm8689_vm2 }
 0x2c3   : > { %v2757_v51 = vmul.f32 2e-05, %v2741_v19  ;;  %2819 = vst [vmem:[%s7664_s5 + $0x18] sm:$0xff] %v2803_v15  ;;  %v4228_v3 = vsel %vm8691_vm9, %v4148_v57, %v4178_v50  ;;  %v3955_v0 = vadd.f32 %v3954_v5, %v8692_v1  ;;  %v4115_v40 = vrot.slane %v4066_v13, 7  ;;  %vm8707_vm2 = vmmov %vm8691_vm9 }
 0x2c4   : > { %v4179_v6 = vrot.slane %v4066_v13, 1  ;;  %4306 = vrot.lane.b32.xlu1 %v7835_v42, %s6169_s18  ;;  %v7848_v10 = vadd.f32 %v4228_v3, %v4054_v24  ;;  %v2610_v23 = vadd.f32 %v2594_v53, %v2544_v48  ;;  %v3957_v12 = vadd.f32 %v3956_v26, %v8693_v18  ;;  %v8701_v3 = vld [vmem:[#allocation45_spill] sm:$0xff]  ;;  %vm8709_vm12 = vmmov %vm8707_vm2 }
 0x2c5   : > { %v2773_v44 = vadd.f32 1.0, %v2757_v51  ;;  %v4116_v45 = vsel %vm8694_vm5, %v4113_v14, %v4115_v40  ;;  %v2529_v5 = vsel %vm776_vm13, %v7793_v2, 0.0  ;;  %v2660_v57 = vsel %vm785_vm1, %v2633_v39, 0.0 }
 0x2c6   : > { %v2505_v36 = vpop.permute.xlu0 %2504  ;;  %v4180_v19 = vsel %vm8695_vm6, %v4177_v55, %v4179_v6  ;;  %v2701_v59 = vpop.permute.xlu1 %2700  ;;  %v7858_v15 = vmax.f32 %v4255_v60, 0.0  ;;  %v4058_v24 = vadd.f32 %v7735_v9, %v3945_v17  ;;  %vm8697_vm14 = vnez %v8696_v29  ;;  %4432 = vrot.lane.b32.xlu0 %v7812_v21, %s6171_s1  ;;  %v8699_v9 = vld [vmem:[#allocation49_spill] sm:$0xff] }
 0x2c7   : > { %5808 = vrsqrt.f32 %v2773_v44  ;;  %v4213_v48 = vsel %vm8697_vm14, %v4180_v19, 0.0  ;;  %v4064_v14 = vadd.f32 %v7785_v20, %v3951_v30  ;;  %v4070_v2 = vadd.f32 %v4069_v27, %v3957_v12 }
 0x2c8   : > { %v4229_v55 = vsel %vm8698_vm10, %v4114_v52, %v4213_v48  ;;  %4370 = vrot.lane.b32.xlu1 %v7835_v42, %s6170_s3  ;;  %v2676_v39 = vadd.f32 %v2660_v57, %v2610_v23  ;;  %v2545_v17 = vadd.f32 %v2529_v5, %v8699_v9  ;;  %v2595_v26 = vsel %vm8700_vm4, %v2569_v37, 0.0 }
 0x2c9   : > { %v7869_v13 = vadd.f32 %v4229_v55, %v4058_v24  ;;  %v2726_v50 = vsel %vm789_vm3, %v2699_v32, 0.0  ;;  %v4068_v51 = vadd.f32 %v4067_v56, %v3955_v0  ;;  %v4117_v20 = vrot.slane %v4070_v2, 7 }
 0x2ca   : > { %v2571_v60 = vpop.permute.xlu0 %2570  ;;  %v4181_v30 = vrot.slane %v4070_v2, 1  ;;  %v2742_v52 = vadd.f32 %v2726_v50, %v2676_v39  ;;  %v2507_v53 = vpop.permute.xlu1 %2506  ;;  %vm8702_vm7 = vnez %v8701_v3  ;;  %v2611_v44 = vadd.f32 %v2595_v26, %v2545_v17  ;;  %4496 = vrot.lane.b32.xlu0 %v7812_v21, %s6172_s9  ;;  %v8710_v2 = vld [vmem:[#allocation51_spill] sm:$0xff] }
 0x2cb   : > { %v4150_v1 = vsel %vm8702_vm7, %v4116_v45, 0.0  ;;  %v2661_v23 = vsel %vm785_vm1, %v2635_v49, 0.0  ;;  %v2530_v37 = vsel %vm776_vm13, %v2505_v36, 0.0  ;;  %v4118_v32 = vsel %vm8703_vm11, %v4115_v40, %v4117_v20 }
 0x2cc   : > { %v4182_v56 = vsel %vm8704_vm8, %v4179_v6, %v4181_v30  ;;  %v4199_v0 = vsel %vm8705_vm15, %v4181_v30, 0.0  ;;  %4434 = vrot.lane.b32.xlu1 %v7835_v42, %s6171_s1  ;;  %v2758_v18 = vmul.f32 2e-05, %v2742_v52  ;;  %v5807_v27 = vpop.eup %5806  ;;  %v2677_v5 = vadd.f32 %v2661_v23, %v2611_v44  ;;  %v8708_v6 = vld [vmem:[#allocation37_spill] sm:$0xff] }
 0x2cd   : > { %v4215_v19 = vsel %vm7217_vm0, %v4199_v0, 0.0  ;;  %v4230_v49 = vsel %vm8707_vm2, %v4150_v1, %v4182_v56  ;;  %v7894_v40 = vmul.f32 %v7799_v25, %v7799_v25  ;;  %v2804_v36 = vmul.f32 %v5807_v27, %v8708_v6  ;;  %vm8711_vm0 = vmmov %vm8700_vm4  ;;  %v8712_v52 = vld [vmem:[#allocation53_spill] sm:$0xff] }
 0x2ce   : > { %v2637_v12 = vpop.permute.xlu0 %2636  ;;  %v4231_v57 = vsel %vm8709_vm12, %v4118_v32, %v4215_v19  ;;  %v7898_v24 = vadd.f32 %v4230_v49, %v4064_v14  ;;  %v2774_v29 = vadd.f32 1.0, %v2758_v18  ;;  %v2573_v48 = vpop.permute.xlu1 %2572  ;;  %v2546_v39 = vadd.f32 %v2530_v37, %v8710_v2  ;;  %vm8713_vm9 = vmmov %vm8711_vm0 }
 0x2cf   : > { %v7900_v55 = vadd.f32 %v4231_v57, %v4068_v51  ;;  %4308 = vrot.lane.b32.xlu0 %v7894_v40, %s6169_s18  ;;  %v2727_v9 = vsel %vm789_vm3, %v2701_v59, 0.0  ;;  %2820 = vst [vmem:[%s7664_s5 + $0x20] sm:$0xff] %v2804_v36  ;;  %v2596_v14 = vsel %vm8711_vm0, %v2571_v60, 0.0  ;;  %v2531_v51 = vsel %vm776_vm13, %v2507_v53, 0.0  ;;  %vm8715_vm5 = vmmov %vm8711_vm0 }
 0x2d0   : > { %5810 = vrsqrt.f32 %v2774_v29  ;;  %4498 = vrot.lane.b32.xlu1 %v7835_v42, %s6172_s9  ;;  %v2743_v17 = vadd.f32 %v2727_v9, %v2677_v5  ;;  %v2612_v50 = vadd.f32 %v2596_v14, %v2546_v39  ;;  %v2662_v20 = vsel %vm785_vm1, %v2637_v12, 0.0  ;;  %v8714_v12 = vld [vmem:[#allocation40_spill] sm:$0xff]  ;;  %v8716_v14 = vld [vmem:[#allocation55_spill] sm:$0xff]  ;;  %vm8718_vm6 = vmmov %vm8711_vm0 }
 0x2d1   : > { %v7918_v59 = vmul.f32 %v7858_v15, %v7858_v15  ;;  %v2547_v3 = vadd.f32 %v2531_v51, %v8712_v52  ;;  %v2597_v1 = vsel %vm8713_vm9, %v2573_v48, 0.0  ;;  %v4256_v18 = vadd.f32 %v7499_v54, %v7730_v63  ;;  %vm8722_vm14 = vmmov %vm8711_vm0 }
 0x2d2   : > { %v2703_v26 = vpop.permute.xlu0 %2702  ;;  %v2759_v30 = vmul.f32 2e-05, %v2743_v17  ;;  %v2639_v44 = vpop.permute.xlu1 %2638  ;;  %v2678_v60 = vadd.f32 %v2662_v20, %v2612_v50  ;;  %v4257_v2 = vadd.f32 %v7499_v54, %v7761_v28  ;;  %vm8725_vm10 = vmmov %vm8711_vm0 }
 0x2d3   : > { %4372 = vrot.lane.b32.xlu0 %v7894_v40, %s6170_s3  ;;  %v2728_v53 = vsel %vm789_vm3, %v2703_v26, 0.0  ;;  %v2663_v23 = vsel %vm785_vm1, %v2639_v44, 0.0  ;;  %v2613_v56 = vadd.f32 %v2597_v1, %v2547_v3  ;;  %v7941_v63 = vmax.f32 %v4256_v18, 0.0  ;;  %v8717_v3 = vld [vmem:[#allocation44_spill] sm:$0xff]  ;;  %v8719_v18 = vld [vmem:[#allocation58_spill] sm:$0xff]  ;;  %vm8728_vm4 = vmmov %vm8711_vm0 }
 0x2d4   : > { %v5809_v37 = vpop.eup %5808  ;;  %v2775_v32 = vadd.f32 1.0, %v2759_v30  ;;  %4310 = vrot.lane.b32.xlu1 %v7918_v59, %s6169_s18  ;;  %v2744_v45 = vadd.f32 %v2728_v53, %v2678_v60  ;;  %v7960_v52 = vmax.f32 %v4257_v2, 0.0  ;;  %vm8730_vm7 = vmmov %vm8711_vm0 }
 0x2d5   : > { %v2805_v27 = vmul.f32 %v5809_v37, %v8714_v12  ;;  %v2679_v19 = vadd.f32 %v2663_v23, %v2613_v56  ;;  %v7956_v28 = vmul.f32 %v7941_v63, %v7941_v63  ;;  %vm8733_vm11 = vmmov %vm8711_vm0 }
 0x2d6   : > { %v2509_v0 = vpop.permute.xlu0 %2508  ;;  %5812 = vrsqrt.f32 %v2775_v32  ;;  %v2705_v49 = vpop.permute.xlu1 %2704  ;;  %v2760_v5 = vmul.f32 2e-05, %v2744_v45  ;;  %vm8735_vm8 = vmmov %vm8711_vm0 }
 0x2d7   : > { %2821 = vst [vmem:[%s7664_s5 + $0x28] sm:$0xff] %v2805_v27  ;;  %4436 = vrot.lane.b32.xlu0 %v7894_v40, %s6171_s1  ;;  %v2729_v6 = vsel %vm789_vm3, %v2705_v49, 0.0  ;;  %v2532_v48 = vsel %vm776_vm13, %v2509_v0, 0.0  ;;  %v7976_v0 = vmul.f32 %v7960_v52, %v7960_v52  ;;  %vm8737_vm15 = vmmov %vm8711_vm0 }
 0x2d8   : > { %4374 = vrot.lane.b32.xlu1 %v7918_v59, %s6170_s3  ;;  %v2745_v36 = vadd.f32 %v2729_v6, %v2679_v19  ;;  %v2776_v29 = vadd.f32 1.0, %v2760_v5  ;;  %v2548_v26 = vadd.f32 %v2532_v48, %v8716_v14  ;;  %v8720_v5 = vld [vmem:[#allocation48_spill] sm:$0xff]  ;;  %v4258_v48 = vadd.f32 %v7499_v54, %v7788_v62  ;;  %v8721_v62 = vld [vmem:[#allocation50_spill] sm:$0xff]  ;;  %vm8738_vm2 = vmmov %vm8711_vm0 }
 0x2d9   : > { %vm8739_vm12 = vmmov %vm8711_vm0 }
 0x2da   : > { %v2575_v57 = vpop.permute.xlu0 %2574  ;;  %v2761_v39 = vmul.f32 2e-05, %v2745_v36  ;;  %v2511_v9 = vpop.permute.xlu1 %2510  ;;  %5814 = vrsqrt.f32 %v2776_v29  ;;  %vm8740_vm9 = vmmov %vm8711_vm0 }
 0x2db   : > { %4500 = vrot.lane.b32.xlu0 %v7894_v40, %s6172_s9  ;;  %v2598_v17 = vsel %vm8715_vm5, %v2575_v57, 0.0  ;;  %v2533_v53 = vsel %vm776_vm13, %v2511_v9, 0.0  ;;  %vm8741_vm5 = vmmov %vm8711_vm0 }
 0x2dc   : > { %4438 = vrot.lane.b32.xlu1 %v7918_v59, %s6171_s1  ;;  %v2777_v50 = vadd.f32 1.0, %v2761_v39  ;;  %v2614_v44 = vadd.f32 %v2598_v17, %v2548_v26  ;;  %v2549_v12 = vadd.f32 %v2533_v53, %v8719_v18 }
 0x2dd   : > { %v5811_v20 = vpop.eup %5810 }
 0x2de   : > { %v2641_v51 = vpop.permute.xlu0 %2640  ;;  %v2806_v1 = vmul.f32 %v5811_v20, %v8717_v3  ;;  %5816 = vrsqrt.f32 %v2777_v50  ;;  %v2577_v60 = vpop.permute.xlu1 %2576  ;;  %v4259_v3 = vadd.f32 %v7499_v54, %v7817_v47 }
 0x2df   : > { %v2664_v30 = vsel %vm785_vm1, %v2641_v51, 0.0  ;;  %4312 = vrot.lane.b32.xlu0 %v7956_v28, %s6169_s18  ;;  %v2599_v32 = vsel %vm8718_vm6, %v2577_v60, 0.0  ;;  %v7995_v51 = vmax.f32 %v4258_v48, 0.0  ;;  %v8726_v48 = vld [vmem:[#allocation70_spill] sm:$0xff]  ;;  %vm8742_vm6 = vmmov %vm8711_vm0 }
 0x2e0   : > { %2822 = vst [vmem:[%s7664_s5 + $0x30] sm:$0xff] %v2806_v1  ;;  %4502 = vrot.lane.b32.xlu1 %v7918_v59, %s6172_s9  ;;  %v2680_v23 = vadd.f32 %v2664_v30, %v2614_v44  ;;  %v2615_v36 = vadd.f32 %v2599_v32, %v2549_v12  ;;  %v8724_v32 = vld [vmem:[#allocation65_spill] sm:$0xff] }
 0x2e1   : > { %v8013_v54 = vmul.f32 %v7995_v51, %v7995_v51 }
 0x2e2   : > { %v2707_v37 = vpop.permute.xlu0 %2706  ;;  %v2643_v45 = vpop.permute.xlu1 %2642 }
 0x2e3   : > { %v2730_v56 = vsel %vm789_vm3, %v2707_v37, 0.0  ;;  %v5813_v19 = vpop.eup %5812  ;;  %4376 = vrot.lane.b32.xlu0 %v7956_v28, %s6170_s3  ;;  %v2665_v49 = vsel %vm785_vm1, %v2643_v45, 0.0 }
 0x2e4   : > { %v2746_v27 = vadd.f32 %v2730_v56, %v2680_v23  ;;  %v2807_v6 = vmul.f32 %v5813_v19, %v8720_v5  ;;  %4314 = vrot.lane.b32.xlu1 %v7976_v0, %s6169_s18  ;;  %v2681_v39 = vadd.f32 %v2665_v49, %v2615_v36  ;;  %v8723_v23 = vld [vmem:[#allocation52_spill] sm:$0xff] }
 0x2e6   : > { %v2762_v57 = vmul.f32 2e-05, %v2746_v27  ;;  %v2513_v29 = vpop.permute.xlu0 %2512  ;;  %2823 = vst [vmem:[%s7664_s5 + $0x38] sm:$0xff] %v2807_v6  ;;  %v2709_v9 = vpop.permute.xlu1 %2708  ;;  %v8017_v27 = vmax.f32 %v4259_v3, 0.0  ;;  %v8727_v3 = vld [vmem:[#allocation54_spill] sm:$0xff] }
 0x2e7   : > { %4440 = vrot.lane.b32.xlu0 %v7956_v28, %s6171_s1  ;;  %v2731_v17 = vsel %vm789_vm3, %v2709_v9, 0.0  ;;  %v5815_v14 = vpop.eup %5814  ;;  %v2534_v30 = vsel %vm776_vm13, %v2513_v29, 0.0 }
 0x2e8   : > { %v2778_v2 = vadd.f32 1.0, %v2762_v57  ;;  %4378 = vrot.lane.b32.xlu1 %v7976_v0, %s6170_s3  ;;  %v2747_v26 = vadd.f32 %v2731_v17, %v2681_v39  ;;  %v2808_v20 = vmul.f32 %v5815_v14, %v8721_v62  ;;  %v2550_v56 = vadd.f32 %v2534_v30, %v8724_v32 }
 0x2e9   : > { %v8032_v29 = vmul.f32 %v8017_v27, %v8017_v27 }
 0x2ea   : > { %5818 = vrsqrt.f32 %v2778_v2  ;;  %v2579_v50 = vpop.permute.xlu0 %2578  ;;  %v2763_v1 = vmul.f32 2e-05, %v2747_v26  ;;  %v2515_v44 = vpop.permute.xlu1 %2514  ;;  %2824 = vst [vmem:[%s7664_s5 + $0x40] sm:$0xff] %v2808_v20  ;;  %v8044_v20 = vld [vmem:[%s8544_s20] ss:$0 sm:$0xff] }
 0x2eb   : > { %v5817_v60 = vpop.eup %5816  ;;  %4504 = vrot.lane.b32.xlu0 %v7956_v28, %s6172_s9  ;;  %v2600_v53 = vsel %vm8722_vm14, %v2579_v50, 0.0  ;;  %v2535_v49 = vsel %vm776_vm13, %v2515_v44, 0.0  ;;  %v4260_v30 = vadd.f32 %v8044_v20, %v7848_v10  ;;  %vm8743_vm14 = vmmov %vm8711_vm0 }
 0x2ec   : > { %v2809_v37 = vmul.f32 %v5817_v60, %v8723_v23  ;;  %4442 = vrot.lane.b32.xlu1 %v7976_v0, %s6171_s1  ;;  %v2779_v18 = vadd.f32 1.0, %v2763_v1  ;;  %v2616_v45 = vadd.f32 %v2600_v53, %v2550_v56  ;;  %v2551_v2 = vadd.f32 %v2535_v49, %v8726_v48  ;;  %v8729_v49 = vld [vmem:[#allocation56_spill] sm:$0xff] }
 0x2ed   : > { %v8056_v56 = vmax.f32 %v4260_v30, 0.0 }
 0x2ee   : > { %v2645_v12 = vpop.permute.xlu0 %2644  ;;  %2825 = vst [vmem:[%s7664_s5 + $0x48] sm:$0xff] %v2809_v37  ;;  %5820 = vrsqrt.f32 %v2779_v18  ;;  %v2581_v19 = vpop.permute.xlu1 %2580  ;;  %v4261_v18 = vadd.f32 %v8044_v20, %v7869_v13 }
 0x2ef   : > { %v2666_v47 = vsel %vm785_vm1, %v2645_v12, 0.0  ;;  %4316 = vrot.lane.b32.xlu0 %v8013_v54, %s6169_s18  ;;  %v2601_v36 = vsel %vm8725_vm10, %v2581_v19, 0.0  ;;  %v8072_v13 = vmul.f32 %v8056_v56, %v8056_v56  ;;  %vm8744_vm10 = vmmov %vm8711_vm0 }
 0x2f0   : > { %4506 = vrot.lane.b32.xlu1 %v7976_v0, %s6172_s9  ;;  %v2682_v5 = vadd.f32 %v2666_v47, %v2616_v45  ;;  %v2617_v14 = vadd.f32 %v2601_v36, %v2551_v2  ;;  %v8076_v2 = vmax.f32 %v4261_v18, 0.0 }
 0x2f2   : > { %v2711_v6 = vpop.permute.xlu0 %2710  ;;  %v2647_v9 = vpop.permute.xlu1 %2646 }
 0x2f3   : > { %v2732_v57 = vsel %vm789_vm3, %v2711_v6, 0.0  ;;  %4380 = vrot.lane.b32.xlu0 %v8013_v54, %s6170_s3  ;;  %v2667_v17 = vsel %vm785_vm1, %v2647_v9, 0.0 }
 0x2f4   : > { %v2748_v39 = vadd.f32 %v2732_v57, %v2682_v5  ;;  %4318 = vrot.lane.b32.xlu1 %v8032_v29, %s6169_s18  ;;  %v2683_v60 = vadd.f32 %v2667_v17, %v2617_v14 }
 0x2f6   : > { %v2764_v26 = vmul.f32 2e-05, %v2748_v39  ;;  %v2517_v50 = vpop.permute.xlu0 %2516  ;;  %v2713_v53 = vpop.permute.xlu1 %2712 }
 0x2f7   : > { %v5819_v62 = vpop.eup %5818  ;;  %4444 = vrot.lane.b32.xlu0 %v8013_v54, %s6171_s1  ;;  %v2733_v23 = vsel %vm789_vm3, %v2713_v53, 0.0  ;;  %v2536_v10 = vsel %vm776_vm13, %v2517_v50, 0.0 }
 0x2f8   : > { %v2810_v1 = vmul.f32 %v5819_v62, %v8727_v3  ;;  %v2780_v44 = vadd.f32 1.0, %v2764_v26  ;;  %4382 = vrot.lane.b32.xlu1 %v8032_v29, %s6170_s3  ;;  %v2749_v37 = vadd.f32 %v2733_v23, %v2683_v60  ;;  %v2552_v6 = vadd.f32 %v2536_v10, %v7440_v11 }
 0x2f9   : > { %v8091_v62 = vmul.f32 %v8076_v2, %v8076_v2 }
 0x2fa   : > { %2826 = vst [vmem:[%s7664_s5 + $0x50] sm:$0xff] %v2810_v1  ;;  %5822 = vrsqrt.f32 %v2780_v44  ;;  %v2583_v32 = vpop.permute.xlu0 %2582  ;;  %v2765_v12 = vmul.f32 2e-05, %v2749_v37  ;;  %v2519_v47 = vpop.permute.xlu1 %2518  ;;  %v4262_v37 = vadd.f32 %v8044_v20, %v7898_v24 }
 0x2fb   : > { %v5821_v45 = vpop.eup %5820  ;;  %4508 = vrot.lane.b32.xlu0 %v8013_v54, %s6172_s9  ;;  %v2602_v19 = vsel %vm8728_vm4, %v2583_v32, 0.0  ;;  %v2537_v11 = vsel %vm776_vm13, %v2519_v47, 0.0  ;;  %v8731_v32 = vld [vmem:[#allocation61_spill] sm:$0xff]  ;;  %vm8745_vm4 = vmmov %vm8711_vm0 }
 0x2fc   : > { %v2811_v5 = vmul.f32 %v5821_v45, %v8729_v49  ;;  %4446 = vrot.lane.b32.xlu1 %v8032_v29, %s6171_s1  ;;  %v2781_v36 = vadd.f32 1.0, %v2765_v12  ;;  %v2618_v39 = vadd.f32 %v2602_v19, %v2552_v6  ;;  %v2553_v30 = vadd.f32 %v2537_v11, %v7465_v41 }
 0x2fd   : > { %v8110_v24 = vmax.f32 %v4262_v37, 0.0  ;;  %v4263_v49 = vadd.f32 %v8044_v20, %v7900_v55  ;;  %v8734_v37 = vld [vmem:[#allocation73_spill] sm:$0xff] }
 0x2fe   : > { %v2649_v57 = vpop.permute.xlu0 %2648  ;;  %2827 = vst [vmem:[%s7664_s5 + $0x58] sm:$0xff] %v2811_v5  ;;  %5824 = vrsqrt.f32 %v2781_v36  ;;  %v2585_v9 = vpop.permute.xlu1 %2584  ;;  %v8732_v36 = vld [vmem:[#allocation66_spill] sm:$0xff] }
 0x2ff   : > { %v2668_v48 = vsel %vm785_vm1, %v2649_v57, 0.0  ;;  %4320 = vrot.lane.b32.xlu0 %v8072_v13, %s6169_s18  ;;  %v2603_v26 = vsel %vm8730_vm7, %v2585_v9, 0.0  ;;  %v8121_v9 = vmul.f32 %v8110_v24, %v8110_v24  ;;  %v8125_v55 = vmax.f32 %v4263_v49, 0.0  ;;  %vm8746_vm7 = vmmov %vm8711_vm0 }
 0x300   : > { %4510 = vrot.lane.b32.xlu1 %v8032_v29, %s6172_s9  ;;  %v2684_v17 = vadd.f32 %v2668_v48, %v2618_v39  ;;  %v2619_v60 = vadd.f32 %v2603_v26, %v2553_v30 }
 0x301   : > { %v8139_v30 = vmul.f32 %v8125_v55, %v8125_v55 }
 0x302   : > { %v2715_v14 = vpop.permute.xlu0 %2714  ;;  %v2651_v1 = vpop.permute.xlu1 %2650 }
 0x303   : > { %v2734_v50 = vsel %vm789_vm3, %v2715_v14, 0.0  ;;  %4384 = vrot.lane.b32.xlu0 %v8072_v13, %s6170_s3  ;;  %v2669_v44 = vsel %vm785_vm1, %v2651_v1, 0.0 }
 0x304   : > { %v2750_v3 = vadd.f32 %v2734_v50, %v2684_v17  ;;  %4322 = vrot.lane.b32.xlu1 %v8091_v62, %s6169_s18  ;;  %v2685_v18 = vadd.f32 %v2669_v44, %v2619_v60 }
 0x306   : > { %v2766_v53 = vmul.f32 2e-05, %v2750_v3  ;;  %v2717_v12 = vpop.permute.xlu1 %2716 }
 0x307   : > { %v5823_v23 = vpop.eup %5822  ;;  %4448 = vrot.lane.b32.xlu0 %v8072_v13, %s6171_s1  ;;  %v2735_v47 = vsel %vm789_vm3, %v2717_v12, 0.0  ;;  %v4297_v45 = vpop.permute.xlu0 %4296 }
 0x308   : > { %v2812_v41 = vmul.f32 %v5823_v23, %v8731_v32  ;;  %v2782_v10 = vadd.f32 1.0, %v2766_v53  ;;  %4386 = vrot.lane.b32.xlu1 %v8091_v62, %s6170_s3  ;;  %v2751_v19 = vadd.f32 %v2735_v47, %v2685_v18  ;;  %v4328_v11 = vsel %vm776_vm13, %v4297_v45, 0.0 }
 0x309   : > { %v4344_v14 = vadd.f32 %v4328_v11, %v7542_v33 }
 0x30a   : > { %2828 = vst [vmem:[%s7664_s5 + $0x60] sm:$0xff] %v2812_v41  ;;  %5826 = vrsqrt.f32 %v2782_v10  ;;  %v2767_v5 = vmul.f32 2e-05, %v2751_v19 }
 0x30b   : > { %v5825_v6 = vpop.eup %5824  ;;  %4512 = vrot.lane.b32.xlu0 %v8072_v13, %s6172_s9  ;;  %v4361_v39 = vpop.permute.xlu0 %4360 }
 0x30c   : > { %v2813_v57 = vmul.f32 %v5825_v6, %v8732_v36  ;;  %4450 = vrot.lane.b32.xlu1 %v8091_v62, %s6171_s1  ;;  %v2783_v48 = vadd.f32 1.0, %v2767_v5  ;;  %v4392_v20 = vsel %vm8733_vm11, %v4361_v39, 0.0  ;;  %v8736_v36 = vld [vmem:[#allocation74_spill] sm:$0xff]  ;;  %vm8747_vm11 = vmmov %vm8711_vm0 }
 0x30d   : > { %v4408_v3 = vadd.f32 %v4392_v20, %v4344_v14 }
 0x30e   : > { %2829 = vst [vmem:[%s7664_s5 + $0x68] sm:$0xff] %v2813_v57  ;;  %5828 = vrsqrt.f32 %v2783_v48  ;;  %v4299_v17 = vpop.permute.xlu1 %4298 }
 0x30f   : > { %4324 = vrot.lane.b32.xlu0 %v8121_v9, %s6169_s18  ;;  %v4425_v26 = vpop.permute.xlu0 %4424  ;;  %v4329_v33 = vsel %vm776_vm13, %v4299_v17, 0.0 }
 0x310   : > { %4514 = vrot.lane.b32.xlu1 %v8091_v62, %s6172_s9  ;;  %v4456_v50 = vsel %vm785_vm1, %v4425_v26, 0.0  ;;  %v4345_v18 = vadd.f32 %v4329_v33, %v7584_v58 }
 0x311   : > { %v4472_v44 = vadd.f32 %v4456_v50, %v4408_v3 }
 0x312   : > { %v4363_v1 = vpop.permute.xlu1 %4362 }
 0x313   : > { %4388 = vrot.lane.b32.xlu0 %v8121_v9, %s6170_s3  ;;  %v4489_v60 = vpop.permute.xlu0 %4488  ;;  %v4393_v41 = vsel %vm8735_vm8, %v4363_v1, 0.0  ;;  %vm8748_vm8 = vmmov %vm8711_vm0 }
 0x314   : > { %4326 = vrot.lane.b32.xlu1 %v8139_v30, %s6169_s18  ;;  %v4520_v23 = vsel %vm789_vm3, %v4489_v60, 0.0  ;;  %v4409_v19 = vadd.f32 %v4393_v41, %v4345_v18 }
 0x315   : > { %v4536_v10 = vadd.f32 %v4520_v23, %v4472_v44 }
 0x316   : > { %v4427_v12 = vpop.permute.xlu1 %4426 }
 0x317   : > { %v5827_v53 = vpop.eup %5826  ;;  %4452 = vrot.lane.b32.xlu0 %v8121_v9, %s6171_s1  ;;  %v4552_v47 = vmul.f32 2e-05, %v4536_v10  ;;  %v4457_v45 = vsel %vm785_vm1, %v4427_v12, 0.0 }
 0x318   : > { %v2814_v32 = vmul.f32 %v5827_v53, %v8734_v37  ;;  %4390 = vrot.lane.b32.xlu1 %v8139_v30, %s6170_s3  ;;  %v4473_v58 = vadd.f32 %v4457_v45, %v4409_v19 }
 0x319   : > { %v4568_v49 = vadd.f32 1.0, %v4552_v47 }
 0x31a   : > { %2830 = vst [vmem:[%s7664_s5 + $0x70] sm:$0xff] %v2814_v32  ;;  %v4491_v6 = vpop.permute.xlu1 %4490 }
 0x31b   : > { %v5829_v5 = vpop.eup %5828  ;;  %4516 = vrot.lane.b32.xlu0 %v8121_v9, %s6172_s9  ;;  %5830 = vrsqrt.f32 %v4568_v49  ;;  %v4301_v48 = vpop.permute.xlu0 %4300  ;;  %v4521_v39 = vsel %vm789_vm3, %v4491_v6, 0.0 }
 0x31c   : > { %v2815_v57 = vmul.f32 %v5829_v5, %v8736_v36  ;;  %4454 = vrot.lane.b32.xlu1 %v8139_v30, %s6171_s1  ;;  %v4537_v11 = vadd.f32 %v4521_v39, %v4473_v58  ;;  %v4330_v14 = vsel %vm776_vm13, %v4301_v48, 0.0 }
 0x31d   : > { %v4346_v1 = vadd.f32 %v4330_v14, %v7672_v34 }
 0x31e   : > { %2831 = vst [vmem:[%s7664_s5 + $0x78] sm:$0xff] %v2815_v57  ;;  %v4553_v20 = vmul.f32 2e-05, %v4537_v11 }
 0x31f   : > { %v4365_v17 = vpop.permute.xlu0 %4364 }
 0x320   : > { %4518 = vrot.lane.b32.xlu1 %v8139_v30, %s6172_s9  ;;  %v4569_v26 = vadd.f32 1.0, %v4553_v20  ;;  %v4394_v3 = vsel %vm8737_vm15, %v4365_v17, 0.0  ;;  %vm8749_vm15 = vmmov %vm8711_vm0 }
 0x321   : > { %v4303_v50 = vpop.permute.xlu1 %4302  ;;  %v4410_v60 = vadd.f32 %v4394_v3, %v4346_v1 }
 0x322   : > { %5832 = vrsqrt.f32 %v4569_v26  ;;  %v4331_v23 = vsel %vm776_vm13, %v4303_v50, 0.0 }
 0x323   : > { %v4429_v33 = vpop.permute.xlu0 %4428  ;;  %v4347_v12 = vadd.f32 %v4331_v23, %v7713_v35 }
 0x324   : > { %v4458_v44 = vsel %vm785_vm1, %v4429_v33, 0.0 }
 0x325   : > { %v4367_v53 = vpop.permute.xlu1 %4366  ;;  %v4474_v37 = vadd.f32 %v4458_v44, %v4410_v60 }
 0x326   : > { %v4395_v10 = vsel %vm8738_vm2, %v4367_v53, 0.0 }
 0x327   : > { %v4493_v32 = vpop.permute.xlu0 %4492  ;;  %v4411_v49 = vadd.f32 %v4395_v10, %v4347_v12 }
 0x328   : > { %v5831_v41 = vpop.eup %5830  ;;  %v4522_v18 = vsel %vm789_vm3, %v4493_v32, 0.0 }
 0x329   : > { %v4600_v34 = vmul.f32 %v5831_v41, %v7523_v46  ;;  %v4538_v47 = vadd.f32 %v4522_v18, %v4474_v37  ;;  %v4431_v45 = vpop.permute.xlu1 %4430 }
 0x32a   : > { %v4459_v19 = vsel %vm785_vm1, %v4431_v45, 0.0 }
 0x32b   : > { %5163 = vst [vmem:[%s7664_s5 + $0x80] sm:$0xff] %v4600_v34  ;;  %v4554_v5 = vmul.f32 2e-05, %v4538_v47  ;;  %v4475_v6 = vadd.f32 %v4459_v19, %v4411_v49 }
 0x32d   : > { %v4570_v58 = vadd.f32 1.0, %v4554_v5  ;;  %v4495_v36 = vpop.permute.xlu1 %4494 }
 0x32e   : > { %v4523_v57 = vsel %vm789_vm3, %v4495_v36, 0.0 }
 0x32f   : > { %v5833_v48 = vpop.eup %5832  ;;  %5834 = vrsqrt.f32 %v4570_v58  ;;  %v4539_v46 = vadd.f32 %v4523_v57, %v4475_v6 }
 0x330   : > { %v4601_v35 = vmul.f32 %v5833_v48, %v7554_v61  ;;  %v4305_v39 = vpop.permute.xlu0 %4304 }
 0x331   : > { %v4555_v11 = vmul.f32 2e-05, %v4539_v46  ;;  %v4332_v14 = vsel %vm776_vm13, %v4305_v39, 0.0 }
 0x332   : > { %5164 = vst [vmem:[%s7664_s5 + $0x88] sm:$0xff] %v4601_v35  ;;  %v4348_v3 = vadd.f32 %v4332_v14, %v7812_v21 }
 0x333   : > { %v4571_v20 = vadd.f32 1.0, %v4555_v11 }
 0x334   : > { %v4369_v17 = vpop.permute.xlu0 %4368 }
 0x335   : > { %5836 = vrsqrt.f32 %v4571_v20  ;;  %v4396_v50 = vsel %vm8739_vm12, %v4369_v17, 0.0 }
 0x336   : > { %v4307_v26 = vpop.permute.xlu1 %4306  ;;  %v4412_v44 = vadd.f32 %v4396_v50, %v4348_v3 }
 0x337   : > { %v4333_v60 = vsel %vm776_vm13, %v4307_v26, 0.0 }
 0x338   : > { %v4433_v1 = vpop.permute.xlu0 %4432  ;;  %v4349_v21 = vadd.f32 %v4333_v60, %v7835_v42 }
 0x339   : > { %v4460_v61 = vsel %vm785_vm1, %v4433_v1, 0.0 }
 0x33a   : > { %v4371_v33 = vpop.permute.xlu1 %4370  ;;  %v4476_v23 = vadd.f32 %v4460_v61, %v4412_v44 }
 0x33b   : > { %v4397_v37 = vsel %vm8711_vm0, %v4371_v33, 0.0 }
 0x33c   : > { %v5835_v53 = vpop.eup %5834  ;;  %v4497_v32 = vpop.permute.xlu0 %4496  ;;  %v4413_v47 = vadd.f32 %v4397_v37, %v4349_v21 }
 0x33d   : > { %v4602_v41 = vmul.f32 %v5835_v53, %v7612_v31  ;;  %v4524_v10 = vsel %vm789_vm3, %v4497_v32, 0.0 }
 0x33e   : > { %v4435_v18 = vpop.permute.xlu1 %4434  ;;  %v4540_v34 = vadd.f32 %v4524_v10, %v4476_v23 }
 0x33f   : > { %v4461_v12 = vsel %vm785_vm1, %v4435_v18, 0.0  ;;  %5165 = vst [vmem:[%s7664_s5 + $0x90] sm:$0xff] %v4602_v41 }
 0x340   : > { %v4556_v45 = vmul.f32 2e-05, %v4540_v34  ;;  %v4477_v49 = vadd.f32 %v4461_v12, %v4413_v47 }
 0x341   : > { %v4309_v19 = vpop.permute.xlu0 %4308 }
 0x342   : > { %v4499_v5 = vpop.permute.xlu1 %4498  ;;  %v5837_v58 = vpop.eup %5836  ;;  %v4572_v6 = vadd.f32 1.0, %v4556_v45  ;;  %v4334_v48 = vsel %vm776_vm13, %v4309_v19, 0.0 }
 0x343   : > { %v4525_v31 = vsel %vm789_vm3, %v4499_v5, 0.0  ;;  %v4603_v42 = vmul.f32 %v5837_v58, %v7676_v22  ;;  %v4350_v20 = vadd.f32 %v4334_v48, %v7894_v40 }
 0x344   : > { %v4541_v36 = vadd.f32 %v4525_v31, %v4477_v49  ;;  %5838 = vrsqrt.f32 %v4572_v6 }
 0x345   : > { %v4373_v57 = vpop.permute.xlu0 %4372  ;;  %5166 = vst [vmem:[%s7664_s5 + $0x98] sm:$0xff] %v4603_v42 }
 0x346   : > { %v4557_v46 = vmul.f32 2e-05, %v4541_v36  ;;  %v4311_v35 = vpop.permute.xlu1 %4310  ;;  %v4398_v11 = vsel %vm8740_vm9, %v4373_v57, 0.0 }
 0x347   : > { %v4414_v26 = vadd.f32 %v4398_v11, %v4350_v20  ;;  %v4335_v50 = vsel %vm776_vm13, %v4311_v35, 0.0 }
 0x348   : > { %v4573_v39 = vadd.f32 1.0, %v4557_v46  ;;  %v4351_v33 = vadd.f32 %v4335_v50, %v7918_v59 }
 0x349   : > { %v4437_v17 = vpop.permute.xlu0 %4436 }
 0x34a   : > { %5840 = vrsqrt.f32 %v4573_v39  ;;  %v4462_v22 = vsel %vm785_vm1, %v4437_v17, 0.0  ;;  %v4375_v14 = vpop.permute.xlu1 %4374 }
 0x34b   : > { %v4478_v3 = vadd.f32 %v4462_v22, %v4414_v26  ;;  %v4399_v1 = vsel %vm8741_vm5, %v4375_v14, 0.0 }
 0x34c   : > { %v4415_v23 = vadd.f32 %v4399_v1, %v4351_v33 }
 0x34d   : > { %v4501_v61 = vpop.permute.xlu0 %4500 }
 0x34e   : > { %v4526_v40 = vsel %vm789_vm3, %v4501_v61, 0.0  ;;  %v4439_v44 = vpop.permute.xlu1 %4438 }
 0x34f   : > { %v4542_v60 = vadd.f32 %v4526_v40, %v4478_v3  ;;  %v4463_v53 = vsel %vm785_vm1, %v4439_v44, 0.0 }
 0x350   : > { %v4479_v21 = vadd.f32 %v4463_v53, %v4415_v23 }
 0x351   : > { %v4558_v37 = vmul.f32 2e-05, %v4542_v60  ;;  %v4313_v32 = vpop.permute.xlu0 %4312  ;;  %v5839_v41 = vpop.eup %5838 }
 0x352   : > { %v4503_v10 = vpop.permute.xlu1 %4502  ;;  %v4604_v18 = vmul.f32 %v5839_v41, %v7699_v16  ;;  %v4336_v45 = vsel %vm776_vm13, %v4313_v32, 0.0 }
 0x353   : > { %v4574_v34 = vadd.f32 1.0, %v4558_v37  ;;  %v4527_v59 = vsel %vm789_vm3, %v4503_v10, 0.0  ;;  %v4352_v31 = vadd.f32 %v4336_v45, %v7956_v28 }
 0x354   : > { %v4543_v12 = vadd.f32 %v4527_v59, %v4479_v21  ;;  %5167 = vst [vmem:[%s7664_s5 + $0xa0] sm:$0xff] %v4604_v18 }
 0x355   : > { %5842 = vrsqrt.f32 %v4574_v34  ;;  %v4377_v47 = vpop.permute.xlu0 %4376 }
 0x356   : > { %v4559_v19 = vmul.f32 2e-05, %v4543_v12  ;;  %v4315_v49 = vpop.permute.xlu1 %4314  ;;  %v4400_v16 = vsel %vm8742_vm6, %v4377_v47, 0.0 }
 0x357   : > { %v5841_v5 = vpop.eup %5840  ;;  %v4416_v48 = vadd.f32 %v4400_v16, %v4352_v31  ;;  %v4337_v46 = vsel %vm776_vm13, %v4315_v49, 0.0 }
 0x358   : > { %v4605_v58 = vmul.f32 %v5841_v5, %v7737_v7  ;;  %v4575_v6 = vadd.f32 1.0, %v4559_v19  ;;  %v4353_v11 = vadd.f32 %v4337_v46, %v7976_v0 }
 0x359   : > { %v4441_v42 = vpop.permute.xlu0 %4440 }
 0x35a   : > { %5168 = vst [vmem:[%s7664_s5 + $0xa8] sm:$0xff] %v4605_v58  ;;  %5844 = vrsqrt.f32 %v4575_v6  ;;  %v4464_v36 = vsel %vm785_vm1, %v4441_v42, 0.0  ;;  %v4379_v57 = vpop.permute.xlu1 %4378 }
 0x35b   : > { %v4480_v35 = vadd.f32 %v4464_v36, %v4416_v48  ;;  %v4401_v7 = vsel %vm8743_vm14, %v4379_v57, 0.0 }
 0x35c   : > { %v4417_v14 = vadd.f32 %v4401_v7, %v4353_v11 }
 0x35d   : > { %v4505_v39 = vpop.permute.xlu0 %4504 }
 0x35e   : > { %v4528_v28 = vsel %vm789_vm3, %v4505_v39, 0.0  ;;  %v4443_v20 = vpop.permute.xlu1 %4442 }
 0x35f   : > { %v4544_v17 = vadd.f32 %v4528_v28, %v4480_v35  ;;  %v4465_v22 = vsel %vm785_vm1, %v4443_v20, 0.0 }
 0x360   : > { %v4481_v1 = vadd.f32 %v4465_v22, %v4417_v14 }
 0x361   : > { %v4560_v26 = vmul.f32 2e-05, %v4544_v17  ;;  %v4317_v50 = vpop.permute.xlu0 %4316 }
 0x362   : > { %v5843_v3 = vpop.eup %5842  ;;  %v4507_v61 = vpop.permute.xlu1 %4506  ;;  %v4338_v53 = vsel %vm776_vm13, %v4317_v50, 0.0 }
 0x363   : > { %v4606_v33 = vmul.f32 %v5843_v3, %v7799_v25  ;;  %v4576_v40 = vadd.f32 1.0, %v4560_v26  ;;  %v4529_v0 = vsel %vm789_vm3, %v4507_v61, 0.0  ;;  %v4354_v10 = vadd.f32 %v4338_v53, %v8013_v54 }
 0x364   : > { %v4545_v44 = vadd.f32 %v4529_v0, %v4481_v1 }
 0x365   : > { %5169 = vst [vmem:[%s7664_s5 + $0xb0] sm:$0xff] %v4606_v33  ;;  %5846 = vrsqrt.f32 %v4576_v40  ;;  %v4381_v60 = vpop.permute.xlu0 %4380 }
 0x366   : > { %v4561_v23 = vmul.f32 2e-05, %v4545_v44  ;;  %v4319_v37 = vpop.permute.xlu1 %4318  ;;  %v4402_v25 = vsel %vm8744_vm10, %v4381_v60, 0.0 }
 0x367   : > { %v5845_v32 = vpop.eup %5844  ;;  %v4418_v12 = vadd.f32 %v4402_v25, %v4354_v10  ;;  %v4339_v47 = vsel %vm776_vm13, %v4319_v37, 0.0 }
 0x368   : > { %v4607_v41 = vmul.f32 %v5845_v32, %v7858_v15  ;;  %v4577_v21 = vadd.f32 1.0, %v4561_v23  ;;  %v4355_v49 = vadd.f32 %v4339_v47, %v8032_v29 }
 0x369   : > { %v4445_v18 = vpop.permute.xlu0 %4444 }
 0x36a   : > { %5170 = vst [vmem:[%s7664_s5 + $0xb8] sm:$0xff] %v4607_v41  ;;  %5848 = vrsqrt.f32 %v4577_v21  ;;  %v4466_v34 = vsel %vm785_vm1, %v4445_v18, 0.0  ;;  %v4383_v59 = vpop.permute.xlu1 %4382 }
 0x36b   : > { %v4482_v45 = vadd.f32 %v4466_v34, %v4418_v12  ;;  %v4403_v15 = vsel %vm8745_vm4, %v4383_v59, 0.0 }
 0x36c   : > { %v4419_v16 = vadd.f32 %v4403_v15, %v4355_v49 }
 0x36d   : > { %v4509_v19 = vpop.permute.xlu0 %4508 }
 0x36e   : > { %v4530_v54 = vsel %vm789_vm3, %v4509_v19, 0.0  ;;  %v4447_v5 = vpop.permute.xlu1 %4446 }
 0x36f   : > { %v4546_v58 = vadd.f32 %v4530_v54, %v4482_v45  ;;  %v4467_v6 = vsel %vm785_vm1, %v4447_v5, 0.0 }
 0x370   : > { %v4483_v57 = vadd.f32 %v4467_v6, %v4419_v16 }
 0x371   : > { %v4562_v31 = vmul.f32 2e-05, %v4546_v58  ;;  %v4321_v42 = vpop.permute.xlu0 %4320 }
 0x372   : > { %v5847_v36 = vpop.eup %5846  ;;  %v4511_v48 = vpop.permute.xlu1 %4510  ;;  %v4340_v11 = vsel %vm776_vm13, %v4321_v42, 0.0 }
 0x373   : > { %v4608_v46 = vmul.f32 %v5847_v36, %v7941_v63  ;;  %v4578_v35 = vadd.f32 1.0, %v4562_v31  ;;  %v4531_v29 = vsel %vm789_vm3, %v4511_v48, 0.0  ;;  %v4356_v26 = vadd.f32 %v4340_v11, %v8072_v13 }
 0x374   : > { %v4547_v7 = vadd.f32 %v4531_v29, %v4483_v57 }
 0x375   : > { %5171 = vst [vmem:[%s7664_s5 + $0xc0] sm:$0xff] %v4608_v46  ;;  %5850 = vrsqrt.f32 %v4578_v35  ;;  %v4385_v39 = vpop.permute.xlu0 %4384 }
 0x376   : > { %v4563_v28 = vmul.f32 2e-05, %v4547_v7  ;;  %v4323_v20 = vpop.permute.xlu1 %4322  ;;  %v4404_v63 = vsel %vm8746_vm7, %v4385_v39, 0.0 }
 0x377   : > { %v5849_v17 = vpop.eup %5848  ;;  %v4420_v61 = vadd.f32 %v4404_v63, %v4356_v26  ;;  %v4341_v33 = vsel %vm776_vm13, %v4323_v20, 0.0 }
 0x378   : > { %v4609_v22 = vmul.f32 %v5849_v17, %v7960_v52  ;;  %v4579_v14 = vadd.f32 1.0, %v4563_v28  ;;  %v4357_v44 = vadd.f32 %v4341_v33, %v8091_v62 }
 0x379   : > { %v4449_v50 = vpop.permute.xlu0 %4448 }
 0x37a   : > { %5172 = vst [vmem:[%s7664_s5 + $0xc8] sm:$0xff] %v4609_v22  ;;  %5852 = vrsqrt.f32 %v4579_v14  ;;  %v4468_v3 = vsel %vm785_vm1, %v4449_v50, 0.0  ;;  %v4387_v1 = vpop.permute.xlu1 %4386 }
 0x37b   : > { %v4484_v40 = vadd.f32 %v4468_v3, %v4420_v61  ;;  %v4405_v52 = vsel %vm8747_vm11, %v4387_v1, 0.0 }
 0x37c   : > { %v4421_v37 = vadd.f32 %v4405_v52, %v4357_v44 }
 0x37d   : > { %v4513_v0 = vpop.permute.xlu0 %4512 }
 0x37e   : > { %v4532_v13 = vsel %vm789_vm3, %v4513_v0, 0.0  ;;  %v4451_v60 = vpop.permute.xlu1 %4450 }
 0x37f   : > { %v4548_v53 = vadd.f32 %v4532_v13, %v4484_v40  ;;  %v4469_v23 = vsel %vm785_vm1, %v4451_v60, 0.0 }
 0x380   : > { %v4485_v25 = vadd.f32 %v4469_v23, %v4421_v37 }
 0x381   : > { %v4564_v32 = vmul.f32 2e-05, %v4548_v53  ;;  %v4325_v41 = vpop.permute.xlu0 %4324 }
 0x382   : > { %v5851_v21 = vpop.eup %5850  ;;  %v4515_v10 = vpop.permute.xlu1 %4514  ;;  %v4342_v47 = vsel %vm776_vm13, %v4325_v41, 0.0 }
 0x383   : > { %v4610_v18 = vmul.f32 %v5851_v21, %v7995_v51  ;;  %v4580_v34 = vadd.f32 1.0, %v4564_v32  ;;  %v4533_v62 = vsel %vm789_vm3, %v4515_v10, 0.0  ;;  %v4358_v5 = vadd.f32 %v4342_v47, %v8121_v9 }
 0x384   : > { %v4549_v59 = vadd.f32 %v4533_v62, %v4485_v25 }
 0x385   : > { %5173 = vst [vmem:[%s7664_s5 + $0xd0] sm:$0xff] %v4610_v18  ;;  %5854 = vrsqrt.f32 %v4580_v34  ;;  %v4389_v12 = vpop.permute.xlu0 %4388 }
 0x386   : > { %v4565_v45 = vmul.f32 2e-05, %v4549_v59  ;;  %v4327_v15 = vpop.permute.xlu1 %4326  ;;  %v4406_v51 = vsel %vm8748_vm8, %v4389_v12, 0.0 }
 0x387   : > { %v5853_v19 = vpop.eup %5852  ;;  %v4422_v31 = vadd.f32 %v4406_v51, %v4358_v5  ;;  %v4343_v42 = vsel %vm776_vm13, %v4327_v15, 0.0 }
 0x388   : > { %v4611_v49 = vmul.f32 %v5853_v19, %v8017_v27  ;;  %v4581_v54 = vadd.f32 1.0, %v4565_v45  ;;  %v4359_v48 = vadd.f32 %v4343_v42, %v8139_v30 }
 0x389   : > { %v4453_v58 = vpop.permute.xlu0 %4452 }
 0x38a   : > { %5174 = vst [vmem:[%s7664_s5 + $0xd8] sm:$0xff] %v4611_v49  ;;  %5856 = vrsqrt.f32 %v4581_v54  ;;  %v4470_v6 = vsel %vm785_vm1, %v4453_v58, 0.0  ;;  %v4391_v16 = vpop.permute.xlu1 %4390 }
 0x38b   : > { %v4486_v36 = vadd.f32 %v4470_v6, %v4422_v31  ;;  %v4407_v27 = vsel %vm8749_vm15, %v4391_v16, 0.0 }
 0x38c   : > { %v4423_v7 = vadd.f32 %v4407_v27, %v4359_v48 }
 0x38d   : > { %v4517_v57 = vpop.permute.xlu0 %4516 }
 0x38e   : > { %v4534_v9 = vsel %vm789_vm3, %v4517_v57, 0.0  ;;  %v4455_v46 = vpop.permute.xlu1 %4454 }
 0x38f   : > { %v4550_v35 = vadd.f32 %v4534_v9, %v4486_v36  ;;  %v4471_v29 = vsel %vm785_vm1, %v4455_v46, 0.0 }
 0x390   : > { %v4487_v11 = vadd.f32 %v4471_v29, %v4423_v7 }
 0x391   : > { %v4566_v8 = vmul.f32 2e-05, %v4550_v35 }
 0x392   : > { %v5855_v39 = vpop.eup %5854  ;;  %v4519_v38 = vpop.permute.xlu1 %4518 }
 0x393   : > { %v4612_v28 = vmul.f32 %v5855_v39, %v8056_v56  ;;  %v4582_v20 = vadd.f32 1.0, %v4566_v8  ;;  %v4535_v30 = vsel %vm789_vm3, %v4519_v38, 0.0 }
 0x394   : > { %v4551_v17 = vadd.f32 %v4535_v30, %v4487_v11 }
 0x395   : > { %5175 = vst [vmem:[%s7664_s5 + $0xe0] sm:$0xff] %v4612_v28  ;;  %5858 = vrsqrt.f32 %v4582_v20 }
 0x396   : > { %v4567_v43 = vmul.f32 2e-05, %v4551_v17 }
 0x397   : > { %v5857_v22 = vpop.eup %5856 }
 0x398   : > { %v4613_v14 = vmul.f32 %v5857_v22, %v8076_v2  ;;  %v4583_v63 = vadd.f32 1.0, %v4567_v43 }
 0x39a   : > { %5176 = vst [vmem:[%s7664_s5 + $0xe8] sm:$0xff] %v4613_v14  ;;  %5860 = vrsqrt.f32 %v4583_v63 }
 0x3a2   : > { %v5859_v26 = vpop.eup %5858 }
 0x3a3   : > { %v4614_v50 = vmul.f32 %v5859_v26, %v8110_v24 }
 0x3a5   : > { %5177 = vst [vmem:[%s7664_s5 + $0xf0] sm:$0xff] %v4614_v50 }
 0x3a7   : > { %v5861_v56 = vpop.eup %5860 }
 0x3a8   : > { %v4615_v4 = vmul.f32 %v5861_v56, %v8125_v55 }
 0x3aa   : > { %5178 = vst [vmem:[%s7664_s5 + $0xf8] sm:$0xff] %v4615_v4 }
 0x3ab   : > { %s8750_s7 = sld [smem:[#allocation24_spill]]  ;;  %s5187_s11 = sshll.u32 %s8540_s14, 4 }
 0x3ac   : > { %s8751_s13 = sld [smem:[#allocation28_spill]]  ;;  %s4660_s21 = sshll.u32 %s7664_s5, 4  ;;  %s4661_s21 = int_to_ptr.vmem [resolvable:$true] %s4660_s21 }
 0x3ad   : > { %s8752_s24 = sld [smem:[#allocation81_spill]]  ;;  %s6173_s3 = smov 2048  }
 0x3ae   : > { %s6174_s1 = smov 4096   ;;  %s6175_s9 = smov 16  }
 0x3af   : > { %s6176_s14 = smov 128   ;;  %s6177_s4 = smov 8  }
 0x3b0   : > { %s6178_s0 = smov 131072   ;;  %s6179_s5 = smov 0  }
 0x3b1   : > { %s5182_s6 = sshll.u32 %s8750_s7, 6 }
 0x3b2   : > { %s4647_s25 = sadd.s32 %s5187_s11, %s5182_s6  ;;  %p8753_p12 = scmp.ne.s32.totalorder %s8751_s13, 0 }
 0x3b3   : > { %s5183_s15 = sshll.u32 %s4647_s25, 7 }
 0x3b4   : > { %s4649_s17 = scalar_lea.hbm %s8752_s24, %s5183_s15  ;;  %5202 = sst [smem:[#allocation13]] (%p8753_p12), %s6173_s3 }
 0x3b5   : > { %5203 = sst [smem:[#allocation13 + $0x1]] (%p8753_p12), %s6174_s1 }
 0x3b6   : > { %5204 = sst [smem:[#allocation13 + $0x2]] (%p8753_p12), %s6175_s9 }
 0x3b7   : > { %5205 = sst [smem:[#allocation13 + $0x3]] (%p8753_p12), %s6176_s14 }
 0x3b8   : > { %5206 = sst [smem:[#allocation13 + $0x4]] (%p8753_p12), %s6176_s14 }
 0x3b9   : > { %5207 = sst [smem:[#allocation13 + $0x5]] (%p8753_p12), %s6177_s4 }
 0x3ba   : > { %5208 = dma.general (%p8753_p12), %s4661_s21, 4096, %s4649_s17, %s4634_s2, %s6178_s0, [#allocation13], %s6179_s5, 0  }
 0x3bb PF: > { %s8754_s16 = sld [smem:[#allocation21_spill]]  ;;  %p5236_p10 = scmp.ge.s32.totalorder %s6158_s10, 2 }
 0x3bc   : > { %s8755_s12 = sld [smem:[#allocation30_spill]] }
 0x3c1   : > { %s4688_s7 = sand.u32 1, %s8754_s16  }
 0x3c2   : > { %p8756_p0 = scmp.ne.s32.totalorder %s8755_s12, 0  ;;  %s4689_s11 = scalar_lea.sflag [#allocation4], %s4688_s7 }
 0x3c4   : > { %p5228_p2 = pnand %p5236_p10, %p8756_p0 }
 0x3c6   : > { %p5229_p11 = pneg %p5228_p2 }
 0x3c8   : > { %6101 = dma.done.wait (%p5229_p11), %s4689_s11, 4096  }
 0x3c9   : > { %6103 = vsyncadd (%p5229_p11), %s4689_s11, 4294963200  ;;  %s26_s10 = sadd.s32 1, %s6158_s10   ;;  %s8758_s21 = sld [smem:[#allocation20_spill]] }
 0x3ca   : > { %p8355_p9 = scmp.ge.s32.totalorder %s26_s10, 6   ;;  %s8759_s24 = sld [smem:[#allocation22_spill]] }
 0x3cb   : > { %s8760_s2 = smov %s6430_s27  ;;  %s8761_s7 = sld [smem:[#allocation25_spill]] }
 0x3cc   : > { %s8762_s13 = sld [smem:[#allocation27_spill]]  ;;  %s8764_s22 = smov %s6114_s23 }
 0x3cd   : > { %s8763_s9 = sld [smem:[#allocation31_spill]]  ;;  %s8765_s23 = smov %s6487_s19 }
 0x3ce   : > { %s8766_s25 = smov %s6126_s26  ;;  %s8767_s26 = smov %s6439_s30 }
 0x3cf   : > { %s8768_s27 = smov %s6134_s28  ;;  %s8769_s28 = smov %s6138_s29 }
 0x3d0   : > { %s8770_s29 = smov %s8760_s2  ;;  %s8771_s30 = smov %s6150_s8 }
 0x3d1   :  { %25 = sbr.rel (!%p8355_p9) target bundleno = 21 (0x15), region = 127 }
 0x3d2   : > { %s8772_s8 = smov %s8762_s13 }
 0x3d6   :  { %4694 = vsyncpa [#allocation3], 1 }
 0x3d7   :  { %4696 = vsyncpa [#allocation3 + $0x1], 1 }
 0x3d8   :  { %4697 = vsyncpa [#allocation6], 1 }
 0x3d9   :  { %4699 = vsyncpa [#allocation6 + $0x1], 1 }
 0x3da   :  { %4700 = vsyncpa [#allocation9], 1 }
 0x3db   :  { %4701 = vsyncpa [#allocation4], 1 }
 0x3dc   :  { %4703 = vsyncpa [#allocation4 + $0x1], 1 }

</bundles_post_ra>
